<compile_context>
chip_gen: v7x
topology: tpu7x:2x2x1
jax: 0.10.0
libtpu: 0.0.40
codegen_flags: <defaults>
</compile_context>

<pallas_src>
import jax
import jax.numpy as jnp
from jax.experimental import pallas as pl
from jax.experimental.pallas import tpu as pltpu


NUM_HEADS = 20
NUM_CLASSES = 1
CONV_OUT = 512


# -----------------------------------------------------------------------------
# Kernel 1: fused Conv2d(3x3, pad=1) + ReLU + MaxPool2d(2,2), NHWC layout.
# Grid axis p enumerates the 4 pool quadrants; im2col patches are pre-grouped
# by quadrant, so each step computes a lane-dense [B*Ho*Wo, 512] conv tile and
# max-accumulates it into the resident output (via an f32 VMEM accumulator).
# -----------------------------------------------------------------------------
def _conv_relu_pool_kernel(x_ref, w_ref, b_ref, o_ref, acc_ref):
    p = pl.program_id(0)
    y = jnp.dot(x_ref[0], w_ref[...], preferred_element_type=jnp.float32)
    y = jnp.maximum(y + b_ref[...], 0.0)

    @pl.when(p == 0)
    def _():
        acc_ref[...] = y

    @pl.when(p > 0)
    def _():
        acc_ref[...] = jnp.maximum(acc_ref[...], y)

    @pl.when(p == pl.num_programs(0) - 1)
    def _():
        o_ref[...] = acc_ref[...].astype(o_ref.dtype)


def conv_relu_pool(patches_q, wmat, bias, *, out_dtype=jnp.bfloat16):
    """patches_q: [4, R, K] quadrant-grouped im2col patches; wmat: [K, O]."""
    Q, R, K = patches_q.shape
    K2, O = wmat.shape
    assert K == K2 and Q == 4
    return pl.pallas_call(
        _conv_relu_pool_kernel,
        out_shape=jax.ShapeDtypeStruct((R, O), out_dtype),
        grid_spec=pltpu.PrefetchScalarGridSpec(
            num_scalar_prefetch=0,
            grid=(Q,),
            in_specs=[
                pl.BlockSpec((1, R, K), lambda p: (p, 0, 0)),
                pl.BlockSpec((K, O), lambda p: (0, 0)),
                pl.BlockSpec((1, O), lambda p: (0, 0)),
            ],
            out_specs=pl.BlockSpec((R, O), lambda p: (0, 0)),
            scratch_shapes=[pltpu.VMEM((R, O), jnp.float32)],
        ),
        compiler_params=pltpu.CompilerParams(
            dimension_semantics=("arbitrary",),
        ),
    )(patches_q, wmat, bias)


# -----------------------------------------------------------------------------
# Kernel 2: weight-streaming Linear + ReLU (the dominating h1 matmul).
# Grid = (N//tn, K//tk); N axis is "parallel" (uses both TCs on v7x), K axis
# is the reduction ("arbitrary", innermost).  Weights stream in bf16.
# -----------------------------------------------------------------------------
def _linear_relu_kernel(x_ref, w_ref, b_ref, o_ref, acc_ref):
    k = pl.program_id(1)

    @pl.when(k == 0)
    def _():
        acc_ref[...] = jnp.zeros_like(acc_ref)

    acc_ref[...] += jnp.dot(
        x_ref[...], w_ref[...], preferred_element_type=jnp.float32
    )

    @pl.when(k == pl.num_programs(1) - 1)
    def _():
        o_ref[...] = jnp.maximum(acc_ref[...] + b_ref[...], 0.0).astype(
            o_ref.dtype
        )


def linear_relu_streamed(x, w, b, *, tk, tn, out_dtype=jnp.bfloat16):
    M, K = x.shape
    K2, N = w.shape
    assert K == K2 and K % tk == 0 and N % tn == 0
    cost = pl.CostEstimate(
        flops=2 * M * K * N,
        transcendentals=0,
        bytes_accessed=(
            w.size * w.dtype.itemsize
            + x.size * x.dtype.itemsize * (N // tn)
            + M * N * jnp.dtype(out_dtype).itemsize
            + b.size * b.dtype.itemsize
        ),
    )
    return pl.pallas_call(
        _linear_relu_kernel,
        out_shape=jax.ShapeDtypeStruct((M, N), out_dtype),
        grid_spec=pltpu.PrefetchScalarGridSpec(
            num_scalar_prefetch=0,
            grid=(N // tn, K // tk),
            in_specs=[
                pl.BlockSpec((M, tk), lambda j, k: (0, k)),
                pl.BlockSpec((tk, tn), lambda j, k: (k, j)),
                pl.BlockSpec((1, tn), lambda j, k: (0, j)),
            ],
            out_specs=pl.BlockSpec((M, tn), lambda j, k: (0, j)),
            scratch_shapes=[pltpu.VMEM((M, tn), jnp.float32)],
        ),
        compiler_params=pltpu.CompilerParams(
            dimension_semantics=("parallel", "arbitrary"),
            vmem_limit_bytes=48 * 1024 * 1024,
        ),
        cost_estimate=cost,
    )(x, w, b)


# -----------------------------------------------------------------------------
# Kernel 3: fused tail MLP: Linear(1024->256) + ReLU + Linear(256->classes).
# Both weights fit VMEM trivially; one pallas_call, grid=(1,).
# -----------------------------------------------------------------------------
def _tail_mlp_kernel(x_ref, w2_ref, b2_ref, w3_ref, b3_ref, o_ref):
    h = jnp.dot(x_ref[...], w2_ref[...], preferred_element_type=jnp.float32)
    h = jnp.maximum(h + b2_ref[...], 0.0)
    out = jnp.dot(h, w3_ref[...], preferred_element_type=jnp.float32)
    o_ref[...] = (out + b3_ref[...]).astype(o_ref.dtype)


def tail_mlp(x, w2, b2, w3, b3):
    M, K = x.shape
    _, N1 = w2.shape
    _, N2 = w3.shape

    def full(shape):
        return pl.BlockSpec(shape, lambda i: tuple(0 for _ in shape))

    return pl.pallas_call(
        _tail_mlp_kernel,
        out_shape=jax.ShapeDtypeStruct((M, N2), jnp.float32),
        grid_spec=pltpu.PrefetchScalarGridSpec(
            num_scalar_prefetch=0,
            grid=(1,),
            in_specs=[
                full((M, K)),
                full((K, N1)),
                full((1, N1)),
                full((N1, N2)),
                full((1, N2)),
            ],
            out_specs=full((M, N2)),
        ),
    )(x, w2, b2, w3, b3)


# -----------------------------------------------------------------------------
# Parameter initialization (deterministic; mirrors _initialize_weights).
# Weights are pre-transformed / pre-cast at init, not per call.
# -----------------------------------------------------------------------------
def init_params(key, in_ch=3):
    keys = jax.random.split(key, 1 + NUM_HEADS)
    # Conv2d: kaiming_normal_(mode='fan_out', nonlinearity='relu'), zero bias.
    fan_out = CONV_OUT * 3 * 3
    wc = jax.random.normal(keys[0], (CONV_OUT, in_ch, 3, 3), jnp.float32) * (
        jnp.sqrt(2.0 / fan_out)
    )
    # im2col matrix layout: rows ordered (kh, kw, c), cols = output channel.
    wmat = wc.transpose(2, 3, 1, 0).reshape(9 * in_ch, CONV_OUT)
    bc = jnp.zeros((1, CONV_OUT), jnp.float32)

    heads = []
    for h in range(NUM_HEADS):
        hk = jax.random.split(keys[1 + h], 3)
        # nn.Linear: normal_(0, 0.01) weights, zero bias; stored as [in, out].
        # w1/w2 are stored in bf16: they dominate HBM traffic (w1 ~= 50 MB).
        w1 = (
            jax.random.normal(hk[0], (512 * 7 * 7, 1024), jnp.float32) * 0.01
        ).astype(jnp.bfloat16)
        b1 = jnp.zeros((1, 1024), jnp.float32)
        w2 = (
            jax.random.normal(hk[1], (1024, 256), jnp.float32) * 0.01
        ).astype(jnp.bfloat16)
        b2 = jnp.zeros((1, 256), jnp.float32)
        w3 = jax.random.normal(hk[2], (256, NUM_CLASSES), jnp.float32) * 0.01
        b3 = jnp.zeros((1, NUM_CLASSES), jnp.float32)
        heads.append((w1, b1, w2, b2, w3, b3))
    return (wmat, bc), heads


# -----------------------------------------------------------------------------
# Forward pass
# -----------------------------------------------------------------------------
def vgg_forward(x, idx, conv_params, heads):
    # x is NCHW float32, exactly like the PyTorch module.
    wmat, bc = conv_params
    B, C, H, W = x.shape
    O = wmat.shape[1]
    Ho, Wo = H // 2, W // 2

    # ---- im2col in NHWC, grouped by 2x2 pool quadrant (cheap XLA glue) ----
    x_nhwc = x.transpose(0, 2, 3, 1)
    xp = jnp.pad(x_nhwc, ((0, 0), (1, 1), (1, 1), (0, 0)))
    cols = [
        xp[:, kh : kh + H, kw : kw + W, :] for kh in range(3) for kw in range(3)
    ]
    patches = jnp.concatenate(cols, axis=-1)  # [B, H, W, 9*C], (kh,kw,c) order
    patches = patches.reshape(B, Ho, 2, Wo, 2, 9 * C)
    patches = patches.transpose(2, 4, 0, 1, 3, 5).reshape(
        4, B * Ho * Wo, 9 * C
    )

    # ---- features: fused Conv3x3(pad=1) + ReLU + MaxPool2d(2) ----
    pooled = conv_relu_pool(patches, wmat, bc)  # [B*Ho*Wo, 512] bf16

    # ---- avgpool: AdaptiveAvgPool2d((7,7)) is identity on a 7x7 map ----
    assert Ho == 7 and Wo == 7

    # ---- flatten(1) in NHWC order (see header note on w1 row ordering) ----
    f = pooled.reshape(B, Ho * Wo * O)  # [B, 25088] bf16

    # ---- classifier<idx>: Linear->ReLU->Dropout->Linear->ReLU->Dropout->Linear
    # TODO(synk): Dropout treated as identity (eval-mode); training-mode RNG
    # masking is not reproduced here.
    w1, b1, w2, b2, w3, b3 = heads[int(idx)]
    h1 = linear_relu_streamed(f, w1, b1, tk=3584, tn=512)  # [B, 1024] bf16
    out = tail_mlp(h1, w2, b2, w3, b3)  # [B, num_classes] f32
    return out


# -----------------------------------------------------------------------------
if __name__ == "__main__":
    key = jax.random.PRNGKey(0)
    pkey, xkey = jax.random.split(key)

    conv_params, heads = init_params(pkey, in_ch=3)

    # Small input: batch=2, 3 channels, 14x14 spatial -> features -> 512x7x7.
    x = jax.random.normal(xkey, (2, 3, 14, 14), jnp.float32)
    idx = 3  # select classifier3 (python-level branch, as in the torch forward)

    fwd = jax.jit(vgg_forward, static_argnums=(1,))
    out = fwd(x, idx, conv_params, heads)
    out = jax.block_until_ready(out)
    assert out.shape == (2, NUM_CLASSES)
    assert bool(jnp.all(jnp.isfinite(out)))
    print("KERNEL_OK")
</pallas_src>

<mosaic_0001>
module attributes {stable_mosaic.version = 11 : i64} {
  func.func @_conv_relu_pool_kernel(%arg0: i32, %arg1: memref<1x98x27xf32, #tpu.memory_space<vmem>>, %arg2: memref<27x512xf32, #tpu.memory_space<vmem>>, %arg3: memref<1x512xf32, #tpu.memory_space<vmem>>, %arg4: memref<98x512xbf16, #tpu.memory_space<vmem>>, %arg5: memref<98x512xf32, #tpu.memory_space<vmem>>) attributes {dimension_semantics = [#tpu.dimension_semantics<arbitrary>], iteration_bounds = array<i64: 4>, scalar_prefetch = 0 : i64, scratch_operands = 1 : i64, tpu.core_type = #tpu.core_type<tc>, window_params = [{transform_indices = @transform_0, window_bounds = array<i64: 1, 98, 27>}, {pipeline_mode = #tpu.pipeline_mode<synchronous>, transform_indices = @transform_1, window_bounds = array<i64: 27, 512>}, {pipeline_mode = #tpu.pipeline_mode<synchronous>, transform_indices = @transform_2, window_bounds = array<i64: 1, 512>}, {pipeline_mode = #tpu.pipeline_mode<synchronous>, transform_indices = @transform_3, window_bounds = array<i64: 98, 512>}]} {
    %c0 = arith.constant 0 : index
    %c0_0 = arith.constant 0 : index
    %c0_1 = arith.constant 0 : index
    %0 = vector.load %arg1[%c0, %c0_0, %c0_1] : memref<1x98x27xf32, #tpu.memory_space<vmem>>, vector<1x98x27xf32>
    %1 = vector.shape_cast %0 : vector<1x98x27xf32> to vector<98x27xf32>
    %c0_2 = arith.constant 0 : index
    %c0_3 = arith.constant 0 : index
    %2 = vector.load %arg2[%c0_2, %c0_3] : memref<27x512xf32, #tpu.memory_space<vmem>>, vector<27x512xf32>
    %cst = arith.constant dense<0.000000e+00> : vector<98x512xf32>
    %3 = tpu.matmul %1, %2, %cst {dimension_numbers = #tpu.dot_dimension_numbers<[1], [0], [0], [1], [0, 0, 1, 1], [], []>} : vector<98x27xf32>, vector<27x512xf32>, vector<98x512xf32> -> vector<98x512xf32>
    %c0_4 = arith.constant 0 : index
    %c0_5 = arith.constant 0 : index
    %4 = vector.load %arg3[%c0_4, %c0_5] : memref<1x512xf32, #tpu.memory_space<vmem>>, vector<1x512xf32>
    %5 = vector.broadcast %4 : vector<1x512xf32> to vector<98x512xf32>
    %6 = arith.addf %3, %5 : vector<98x512xf32>
    %cst_6 = arith.constant 0.000000e+00 : f32
    %7 = vector.broadcast %cst_6 : f32 to vector<98x512xf32>
    %8 = arith.maximumf %6, %7 : vector<98x512xf32>
    %c0_i32 = arith.constant 0 : i32
    %9 = arith.cmpi eq, %arg0, %c0_i32 : i32
    %10 = arith.extui %9 : i1 to i32
    %c0_i32_7 = arith.constant 0 : i32
    %11 = arith.cmpi ne, %10, %c0_i32_7 : i32
    scf.if %11 {
      %c0_11 = arith.constant 0 : index
      %c0_12 = arith.constant 0 : index
      %18 = vector.load %arg5[%c0_11, %c0_12] : memref<98x512xf32, #tpu.memory_space<vmem>>, vector<98x512xf32>
      tpu.vector_store %arg5[%c0_11, %c0_12], %8 {strides = array<i32>} : memref<98x512xf32, #tpu.memory_space<vmem>>, vector<98x512xf32>,
    } else {
    }
    %c0_i32_8 = arith.constant 0 : i32
    %12 = arith.cmpi sgt, %arg0, %c0_i32_8 : i32
    %13 = arith.extui %12 : i1 to i32
    %c0_i32_9 = arith.constant 0 : i32
    %14 = arith.cmpi ne, %13, %c0_i32_9 : i32
    scf.if %14 {
      %c0_11 = arith.constant 0 : index
      %c0_12 = arith.constant 0 : index
      %18 = vector.load %arg5[%c0_11, %c0_12] : memref<98x512xf32, #tpu.memory_space<vmem>>, vector<98x512xf32>
      %19 = arith.maximumf %18, %8 : vector<98x512xf32>
      %c0_13 = arith.constant 0 : index
      %c0_14 = arith.constant 0 : index
      %20 = vector.load %arg5[%c0_13, %c0_14] : memref<98x512xf32, #tpu.memory_space<vmem>>, vector<98x512xf32>
      tpu.vector_store %arg5[%c0_13, %c0_14], %19 {strides = array<i32>} : memref<98x512xf32, #tpu.memory_space<vmem>>, vector<98x512xf32>,
    } else {
    }
    %c3_i32 = arith.constant 3 : i32
    %15 = arith.cmpi eq, %arg0, %c3_i32 : i32
    %16 = arith.extui %15 : i1 to i32
    %c0_i32_10 = arith.constant 0 : i32
    %17 = arith.cmpi ne, %16, %c0_i32_10 : i32
    scf.if %17 {
      %c0_11 = arith.constant 0 : index
      %c0_12 = arith.constant 0 : index
      %18 = vector.load %arg5[%c0_11, %c0_12] : memref<98x512xf32, #tpu.memory_space<vmem>>, vector<98x512xf32>
      %19 = arith.truncf %18 : vector<98x512xf32> to vector<98x512xbf16>
      %c0_13 = arith.constant 0 : index
      %c0_14 = arith.constant 0 : index
      %20 = vector.load %arg4[%c0_13, %c0_14] : memref<98x512xbf16, #tpu.memory_space<vmem>>, vector<98x512xbf16>
      tpu.vector_store %arg4[%c0_13, %c0_14], %19 {strides = array<i32>} : memref<98x512xbf16, #tpu.memory_space<vmem>>, vector<98x512xbf16>,
    } else {
    }
    return
  }
  func.func @transform_0(%arg0: i32) -> (i32, i32, i32) {
    %c0_i32 = arith.constant 0 : i32
    %c0_i32_0 = arith.constant 0 : i32
    %c0_i32_1 = arith.constant 0 : i32
    return %arg0, %c0_i32, %c0_i32_0 : i32, i32, i32
  }
  func.func @transform_1(%arg0: i32) -> (i32, i32) {
    %c0_i32 = arith.constant 0 : i32
    %c0_i32_0 = arith.constant 0 : i32
    %c0_i32_1 = arith.constant 0 : i32
    return %c0_i32, %c0_i32_0 : i32, i32
  }
  func.func @transform_2(%arg0: i32) -> (i32, i32) {
    %c0_i32 = arith.constant 0 : i32
    %c0_i32_0 = arith.constant 0 : i32
    %c0_i32_1 = arith.constant 0 : i32
    return %c0_i32, %c0_i32_0 : i32, i32
  }
  func.func @transform_3(%arg0: i32) -> (i32, i32) {
    %c0_i32 = arith.constant 0 : i32
    %c0_i32_0 = arith.constant 0 : i32
    %c0_i32_1 = arith.constant 0 : i32
    return %c0_i32, %c0_i32_0 : i32, i32
  }
}

module attributes {stable_mosaic.version = 11 : i64} {
  func.func @_linear_relu_kernel(%arg0: i32, %arg1: i32, %arg2: memref<2x3584xbf16, #tpu.memory_space<vmem>>, %arg3: memref<3584x512xbf16, #tpu.memory_space<vmem>>, %arg4: memref<1x512xf32, #tpu.memory_space<vmem>>, %arg5: memref<2x512xbf16, #tpu.memory_space<vmem>>, %arg6: memref<2x512xf32, #tpu.memory_space<vmem>>) attributes {dimension_semantics = [#tpu.dimension_semantics<parallel>, #tpu.dimension_semantics<arbitrary>], iteration_bounds = array<i64: 2, 7>, scalar_prefetch = 0 : i64, scratch_operands = 1 : i64, tpu.core_type = #tpu.core_type<tc>, window_params = [{transform_indices = @transform_0, window_bounds = array<i64: 2, 3584>}, {transform_indices = @transform_1, window_bounds = array<i64: 3584, 512>}, {transform_indices = @transform_2, window_bounds = array<i64: 1, 512>}, {transform_indices = @transform_3, window_bounds = array<i64: 2, 512>}]} {
    %c0_i32 = arith.constant 0 : i32
    %0 = arith.cmpi eq, %arg1, %c0_i32 : i32
    %1 = arith.extui %0 : i1 to i32
    %c0_i32_0 = arith.constant 0 : i32
    %2 = arith.cmpi ne, %1, %c0_i32_0 : i32
    scf.if %2 {
      %cst_9 = arith.constant 0.000000e+00 : f32
      %12 = vector.broadcast %cst_9 : f32 to vector<2x512xf32>
      %c0_10 = arith.constant 0 : index
      %c0_11 = arith.constant 0 : index
      %13 = vector.load %arg6[%c0_10, %c0_11] : memref<2x512xf32, #tpu.memory_space<vmem>>, vector<2x512xf32>
      tpu.vector_store %arg6[%c0_10, %c0_11], %12 {strides = array<i32>} : memref<2x512xf32, #tpu.memory_space<vmem>>, vector<2x512xf32>,
    } else {
    }
    %c0 = arith.constant 0 : index
    %c0_1 = arith.constant 0 : index
    %3 = vector.load %arg6[%c0, %c0_1] : memref<2x512xf32, #tpu.memory_space<vmem>>, vector<2x512xf32>
    %c0_2 = arith.constant 0 : index
    %c0_3 = arith.constant 0 : index
    %4 = vector.load %arg2[%c0_2, %c0_3] : memref<2x3584xbf16, #tpu.memory_space<vmem>>, vector<2x3584xbf16>
    %c0_4 = arith.constant 0 : index
    %c0_5 = arith.constant 0 : index
    %5 = vector.load %arg3[%c0_4, %c0_5] : memref<3584x512xbf16, #tpu.memory_space<vmem>>, vector<3584x512xbf16>
    %cst = arith.constant dense<0.000000e+00> : vector<2x512xf32>
    %6 = tpu.matmul %4, %5, %cst {dimension_numbers = #tpu.dot_dimension_numbers<[1], [0], [0], [1], [0, 0, 1, 1], [], []>} : vector<2x3584xbf16>, vector<3584x512xbf16>, vector<2x512xf32> -> vector<2x512xf32>
    %7 = arith.addf %3, %6 : vector<2x512xf32>
    %c0_6 = arith.constant 0 : index
    %c0_7 = arith.constant 0 : index
    %8 = vector.load %arg6[%c0_6, %c0_7] : memref<2x512xf32, #tpu.memory_space<vmem>>, vector<2x512xf32>
    tpu.vector_store %arg6[%c0_6, %c0_7], %7 {strides = array<i32>} : memref<2x512xf32, #tpu.memory_space<vmem>>, vector<2x512xf32>,
    %c6_i32 = arith.constant 6 : i32
    %9 = arith.cmpi eq, %arg1, %c6_i32 : i32
    %10 = arith.extui %9 : i1 to i32
    %c0_i32_8 = arith.constant 0 : i32
    %11 = arith.cmpi ne, %10, %c0_i32_8 : i32
    scf.if %11 {
      %c0_9 = arith.constant 0 : index
      %c0_10 = arith.constant 0 : index
      %12 = vector.load %arg6[%c0_9, %c0_10] : memref<2x512xf32, #tpu.memory_space<vmem>>, vector<2x512xf32>
      %c0_11 = arith.constant 0 : index
      %c0_12 = arith.constant 0 : index
      %13 = vector.load %arg4[%c0_11, %c0_12] : memref<1x512xf32, #tpu.memory_space<vmem>>, vector<1x512xf32>
      %14 = vector.broadcast %13 : vector<1x512xf32> to vector<2x512xf32>
      %15 = arith.addf %12, %14 : vector<2x512xf32>
      %cst_13 = arith.constant 0.000000e+00 : f32
      %16 = vector.broadcast %cst_13 : f32 to vector<2x512xf32>
      %17 = arith.maximumf %15, %16 : vector<2x512xf32>
      %18 = arith.truncf %17 : vector<2x512xf32> to vector<2x512xbf16>
      %c0_14 = arith.constant 0 : index
      %c0_15 = arith.constant 0 : index
      %19 = vector.load %arg5[%c0_14, %c0_15] : memref<2x512xbf16, #tpu.memory_space<vmem>>, vector<2x512xbf16>
      tpu.vector_store %arg5[%c0_14, %c0_15], %18 {strides = array<i32>} : memref<2x512xbf16, #tpu.memory_space<vmem>>, vector<2x512xbf16>,
    } else {
    }
    return
  }
  func.func @transform_0(%arg0: i32, %arg1: i32) -> (i32, i32) {
    %c0_i32 = arith.constant 0 : i32
    %c0_i32_0 = arith.constant 0 : i32
    return %c0_i32, %arg1 : i32, i32
  }
  func.func @transform_1(%arg0: i32, %arg1: i32) -> (i32, i32) {
    %c0_i32 = arith.constant 0 : i32
    return %arg1, %arg0 : i32, i32
  }
  func.func @transform_2(%arg0: i32, %arg1: i32) -> (i32, i32) {
    %c0_i32 = arith.constant 0 : i32
    %c0_i32_0 = arith.constant 0 : i32
    return %c0_i32, %arg0 : i32, i32
  }
  func.func @transform_3(%arg0: i32, %arg1: i32) -> (i32, i32) {
    %c0_i32 = arith.constant 0 : i32
    %c0_i32_0 = arith.constant 0 : i32
    return %c0_i32, %arg0 : i32, i32
  }
}

module attributes {stable_mosaic.version = 11 : i64} {
  func.func @_tail_mlp_kernel(%arg0: i32, %arg1: memref<2x1024xbf16, #tpu.memory_space<vmem>>, %arg2: memref<1024x256xbf16, #tpu.memory_space<vmem>>, %arg3: memref<1x256xf32, #tpu.memory_space<vmem>>, %arg4: memref<256x1xf32, #tpu.memory_space<vmem>>, %arg5: memref<1x1xf32, #tpu.memory_space<vmem>>, %arg6: memref<2x1xf32, #tpu.memory_space<vmem>>) attributes {dimension_semantics = [#tpu.dimension_semantics<arbitrary>], iteration_bounds = array<i64: 1>, scalar_prefetch = 0 : i64, scratch_operands = 0 : i64, tpu.core_type = #tpu.core_type<tc>, window_params = [{pipeline_mode = #tpu.pipeline_mode<synchronous>, transform_indices = @transform_0, window_bounds = array<i64: 2, 1024>}, {pipeline_mode = #tpu.pipeline_mode<synchronous>, transform_indices = @transform_1, window_bounds = array<i64: 1024, 256>}, {pipeline_mode = #tpu.pipeline_mode<synchronous>, transform_indices = @transform_2, window_bounds = array<i64: 1, 256>}, {pipeline_mode = #tpu.pipeline_mode<synchronous>, transform_indices = @transform_3, window_bounds = array<i64: 256, 1>}, {pipeline_mode = #tpu.pipeline_mode<synchronous>, transform_indices = @transform_4, window_bounds = array<i64: 1, 1>}, {pipeline_mode = #tpu.pipeline_mode<synchronous>, transform_indices = @transform_5, window_bounds = array<i64: 2, 1>}]} {
    %c0 = arith.constant 0 : index
    %c0_0 = arith.constant 0 : index
    %0 = vector.load %arg1[%c0, %c0_0] : memref<2x1024xbf16, #tpu.memory_space<vmem>>, vector<2x1024xbf16>
    %c0_1 = arith.constant 0 : index
    %c0_2 = arith.constant 0 : index
    %1 = vector.load %arg2[%c0_1, %c0_2] : memref<1024x256xbf16, #tpu.memory_space<vmem>>, vector<1024x256xbf16>
    %cst = arith.constant dense<0.000000e+00> : vector<2x256xf32>
    %2 = tpu.matmul %0, %1, %cst {dimension_numbers = #tpu.dot_dimension_numbers<[1], [0], [0], [1], [0, 0, 1, 1], [], []>} : vector<2x1024xbf16>, vector<1024x256xbf16>, vector<2x256xf32> -> vector<2x256xf32>
    %c0_3 = arith.constant 0 : index
    %c0_4 = arith.constant 0 : index
    %3 = vector.load %arg3[%c0_3, %c0_4] : memref<1x256xf32, #tpu.memory_space<vmem>>, vector<1x256xf32>
    %4 = vector.broadcast %3 : vector<1x256xf32> to vector<2x256xf32>
    %5 = arith.addf %2, %4 : vector<2x256xf32>
    %cst_5 = arith.constant 0.000000e+00 : f32
    %6 = vector.broadcast %cst_5 : f32 to vector<2x256xf32>
    %7 = arith.maximumf %5, %6 : vector<2x256xf32>
    %c0_6 = arith.constant 0 : index
    %c0_7 = arith.constant 0 : index
    %8 = vector.load %arg4[%c0_6, %c0_7] : memref<256x1xf32, #tpu.memory_space<vmem>>, vector<256x1xf32>
    %cst_8 = arith.constant dense<0.000000e+00> : vector<2x1xf32>
    %9 = tpu.matmul %7, %8, %cst_8 {dimension_numbers = #tpu.dot_dimension_numbers<[1], [0], [0], [1], [0, 0, 1, 1], [], []>} : vector<2x256xf32>, vector<256x1xf32>, vector<2x1xf32> -> vector<2x1xf32>
    %c0_9 = arith.constant 0 : index
    %c0_10 = arith.constant 0 : index
    %10 = vector.load %arg5[%c0_9, %c0_10] : memref<1x1xf32, #tpu.memory_space<vmem>>, vector<1x1xf32>
    %11 = vector.broadcast %10 : vector<1x1xf32> to vector<2x1xf32>
    %12 = arith.addf %9, %11 : vector<2x1xf32>
    %c0_11 = arith.constant 0 : index
    %c0_12 = arith.constant 0 : index
    %13 = vector.load %arg6[%c0_11, %c0_12] : memref<2x1xf32, #tpu.memory_space<vmem>>, vector<2x1xf32>
    tpu.vector_store %arg6[%c0_11, %c0_12], %12 {strides = array<i32>} : memref<2x1xf32, #tpu.memory_space<vmem>>, vector<2x1xf32>,
    return
  }
  func.func @transform_0(%arg0: i32) -> (i32, i32) {
    %c0_i32 = arith.constant 0 : i32
    %c0_i32_0 = arith.constant 0 : i32
    %c0_i32_1 = arith.constant 0 : i32
    return %c0_i32, %c0_i32_0 : i32, i32
  }
  func.func @transform_1(%arg0: i32) -> (i32, i32) {
    %c0_i32 = arith.constant 0 : i32
    %c0_i32_0 = arith.constant 0 : i32
    %c0_i32_1 = arith.constant 0 : i32
    return %c0_i32, %c0_i32_0 : i32, i32
  }
  func.func @transform_2(%arg0: i32) -> (i32, i32) {
    %c0_i32 = arith.constant 0 : i32
    %c0_i32_0 = arith.constant 0 : i32
    %c0_i32_1 = arith.constant 0 : i32
    return %c0_i32, %c0_i32_0 : i32, i32
  }
  func.func @transform_3(%arg0: i32) -> (i32, i32) {
    %c0_i32 = arith.constant 0 : i32
    %c0_i32_0 = arith.constant 0 : i32
    %c0_i32_1 = arith.constant 0 : i32
    return %c0_i32, %c0_i32_0 : i32, i32
  }
  func.func @transform_4(%arg0: i32) -> (i32, i32) {
    %c0_i32 = arith.constant 0 : i32
    %c0_i32_0 = arith.constant 0 : i32
    %c0_i32_1 = arith.constant 0 : i32
    return %c0_i32, %c0_i32_0 : i32, i32
  }
  func.func @transform_5(%arg0: i32) -> (i32, i32) {
    %c0_i32 = arith.constant 0 : i32
    %c0_i32_0 = arith.constant 0 : i32
    %c0_i32_1 = arith.constant 0 : i32
    return %c0_i32, %c0_i32_0 : i32, i32
  }
}

</mosaic_0001>

<bundles_post_ra>
// kernel: vgg_forward.3
= control target key start
LH: loop header
LB: loop body
LE: loop exit
PB: predicated region body
PF: predicated region fallthrough
CT: control target
= control target key end

     0   :  { %8 = vsyncpa [#allocation4], 0  ;;  %s2061_s0 = inlined_call_operand.vmem [shape: f32[4,98,27], index: 0, kind: input, shape index: {}]   ;;  %s2062_s1 = inlined_call_operand.hbm [shape: f32[27,512], index: 1, kind: input, shape index: {}]   ;;  %s2063_s2 = inlined_call_operand.hbm [shape: f32[1,512], index: 2, kind: input, shape index: {}]   ;;  %s2064_s3 = inlined_call_operand.vmem [shape: bf16[98,512], index: 3, kind: output, shape index: {}]  }
   0x1   :  { %9 = vsyncpa [#allocation6], 0  ;;  %s1382_s12 = smov 0  }
   0x2 LB: > { %s1388_s13 = sadd.s32 4294967295, %s1354_s12   ;;  %p1135_p0 = scmp.ge.s32.totalorder %s1354_s12, 1  ;;  %s1354_s12 = sphi %s1382_s12, %s15_s12  }
   0x3   : > { %p109_p1 = scmp.lt.s32.totalorder %s1354_s12, 5  ;;  %s1356_s14 = smov [#allocation3]  }
   0x4   : > { %s121_s15 = sshll.u32 %s1356_s14, 4  ;;  %p2065_p4 = scmp.eq.s32.totalorder %s1388_s13, 0  ;;  %s122_s15 = int_to_ptr.vmem [resolvable:$true] %s121_s15 }
   0x5   : > { %p1393_p3 = pnand %p1135_p0, %p109_p1  ;;  %s1357_s17 = smov [#allocation5]  }
   0x6   : > { %s135_s18 = sshll.u32 %s1357_s17, 4  ;;  %s1284_s22 = scalar_lea.hbm %s2062_s1, 2048  ;;  %s1406_s18 = int_to_ptr.vmem [resolvable:$true] %s135_s18 }
   0x7   : > { %s2077_s16 = scalar_select %p1393_p3, 1, 0 }
   0x8   : > { %p1259_p5 = pneg %p1393_p3  ;;  %p1285_p7 = scmp.ne.s32.totalorder %s2062_s1, %s1284_s22 }
   0x9   : > { %p1291_p11 = scmp.lt.u32.totalorder %s1284_s22, %s2062_s1 }
   0xa   : > { %p1402_p6 = pnand %p2065_p4, %p1259_p5 }
   0xc   : > { %p1286_p8 = pneg %p1402_p6 }
   0xe   : > { %p1287_p9 = pnand %p1286_p8, %p1285_p7 }
  0x10   : > { %p1288_p10 = pneg %p1287_p9 }
  0x12   : > { %p1293_p12 = pnand %p1291_p11, %p1288_p10 }
  0x14   : > { %1296 = shalt.err (!%p1293_p12)
}
  0x15   : > { %s1297_s27 = scalar_lea.vmem %s122_s15, 2048  ;;  %p1305_p5 = scmp.lt.s32.totalorder %s122_s15, %s122_s15 }
  0x16   : > { %p1298_p13 = scmp.ne.s32.totalorder %s122_s15, %s1297_s27  ;;  %p1306_p2 = scmp.lt.s32.totalorder %s1297_s27, %s1297_s27 }
  0x18   : > { %p1300_p0 = pnand %p1298_p13, %p1286_p8  ;;  %p1307_p4 = por %p1306_p2, %p1305_p5 }
  0x1a   : > { %p1301_p1 = pneg %p1300_p0 }
  0x1c   : > { %p1308_p3 = pnand %p1307_p4, %p1301_p1 }
  0x1e   : > { %1311 = shalt.err (!%p1308_p3)
}
  0x1f   : > { %s1358_s28 = smov 512   ;;  %s1359_s29 = smov 32  }
  0x20   : > { %1262 = dma.hbm_to_vmem [thread:$0]  (!%p1402_p6), %s2062_s1, 2048, %s122_s15, [#allocation4], %s1358_s28, %s1358_s28, %s1359_s29  }
  0x21   : > { %s1312_s7 = scalar_lea.hbm %s2063_s2, 64 }
  0x22   : > { %p1313_p7 = scmp.ne.s32.totalorder %s2063_s2, %s1312_s7  ;;  %p1319_p4 = scmp.lt.u32.totalorder %s1312_s7, %s2063_s2 }
  0x24   : > { %p1315_p2 = pnand %p1313_p7, %p1286_p8 }
  0x26   : > { %p1316_p3 = pneg %p1315_p2 }
  0x28   : > { %p1321_p9 = pnand %p1319_p4, %p1316_p3 }
  0x2a   : > { %1324 = shalt.err (!%p1321_p9)
}
  0x2b   : > { %s1325_s14 = scalar_lea.vmem %s1406_s18, 64  ;;  %p1333_p13 = scmp.lt.s32.totalorder %s1406_s18, %s1406_s18 }
  0x2c   : > { %p1326_p10 = scmp.ne.s32.totalorder %s1406_s18, %s1325_s14  ;;  %p1334_p0 = scmp.lt.s32.totalorder %s1325_s14, %s1325_s14 }
  0x2e   : > { %p1328_p11 = pnand %p1326_p10, %p1286_p8  ;;  %p1335_p1 = por %p1334_p0, %p1333_p13 }
  0x30   : > { %p1329_p12 = pneg %p1328_p11 }
  0x32   : > { %p1336_p5 = pnand %p1335_p1, %p1329_p12 }
  0x34   : > { %1339 = shalt.err (!%p1336_p5)
}
  0x35   : > { %1265 = dma.hbm_to_vmem [thread:$0]  (!%p1402_p6), %s2063_s2, 64, %s1406_s18, [#allocation6]  }
  0x36   : > { %p2079_p7 = scmp.ne.s32.totalorder %s2077_s16, 0 }
  0x38   : > { %156 = sbr.rel (%p2079_p7) target bundleno = 431 (0x1af), region = 32 }
  0x3f   : > { %p2080_p2 = scmp.eq.s32.totalorder %s1388_s13, 0 }
  0x41   : > { %1345 = dma.done.wait (%p2080_p2), [#allocation4], 2048   ;;  %p2081_p8 = pmov %p2080_p2 }
  0x42   : > { %p2082_p3 = pmov %p2080_p2 }
  0x43   : > { %1347 = vsyncadd (%p2081_p8), [#allocation4], 4294965248 }
  0x44   : > { %1349 = dma.done.wait (%p2082_p3), [#allocation6], 64   ;;  %p2083_p4 = pmov %p2080_p2 }
  0x45   : > { %p179_p9 = scmp.lt.s32.totalorder %s1388_s13, 3  ;;  %v1360_v0 = vmov 0.0   ;;  %vm275_vm0 = vcmask 1042432   ;;  %vm1361_vm1 = vmmov 1   ;;  %v198_v2 = vld [vmem:[#allocation3 + $0x8] sm:$0xff]  ;;  %v200_v4 = vld [vmem:[#allocation3 + $0x18] sm:$0xff]  ;;  %v215_v39 = vlaneseq }
  0x46   : > { %1351 = vsyncadd (%p2083_p4), [#allocation6], 4294967232  ;;  %352 = vmatprep.mubr.f32.mxu0 %v1360_v0  ;;  %495 = vmatprep.mubr.f32.mxu1 %v1360_v0  ;;  %v202_v3 = vld [vmem:[#allocation3 + $0x28] sm:$0xff]  ;;  %v204_v6 = vld [vmem:[#allocation3 + $0x38] sm:$0xff]  ;;  %vm235_vm3 = vcmask 220160   ;;  %p2092_p6 = scmp.ne.s32.totalorder %s1388_s13, 0 }
  0x47   : > { %s1469_s16 = scalar_select %p179_p9, %s1388_s13, 3  ;;  %vm1471_vm2 = vmpackc.low %vm275_vm0, %vm1361_vm1  ;;  %v1230_v5 = vpack.c.bf16 %v202_v3, %v198_v2  ;;  %v197_v7 = vld [vmem:[#allocation3] sm:$0xff]  ;;  %v1240_v9 = vpack.c.bf16 %v204_v6, %v200_v4  ;;  %v199_v11 = vld [vmem:[#allocation3 + $0x10] sm:$0xff]  ;;  %v216_v40 = vshrl.u32 %v215_v39, 7 }
  0x48   : > { %v201_v8 = vld [vmem:[#allocation3 + $0x20] sm:$0xff]  ;;  %v203_v12 = vld [vmem:[#allocation3 + $0x30] sm:$0xff]  ;;  %v206_v13 = vld [vmem:[#allocation3 + $0x48] sm:$0xff] }
  0x49   : > { %s1250_s18 = smul.u32 104, %s1469_s16  ;;  %v1232_v10 = vpack.c.bf16 %v201_v8, %v197_v7  ;;  %1231 = vmatprep.subr.bf16.mxu0 %v1230_v5  ;;  %v1242_v14 = vpack.c.bf16 %v203_v12, %v199_v11  ;;  %v210_v15 = vld [vmem:[#allocation3 + $0x68] sm:$0x7]  ;;  %v208_v16 = vld [vmem:[#allocation3 + $0x58] sm:$0xff]  ;;  %1241 = vmatprep.subr.bf16.mxu1 %v1240_v9  ;;  %v205_v20 = vld [vmem:[#allocation3 + $0x40] sm:$0xff]  ;;  %v217_v41 = vsub.s32 0, %v216_v40 }
  0x4a   : > { %v212_v17 = vld [vmem:[#allocation3 + $0x78] sm:$0x7]  ;;  %v1234_v18 = vpack.c.bf16 %v210_v15, %v206_v13  ;;  %v209_v21 = vld [vmem:[#allocation3 + $0x60] sm:$0x7]  ;;  %v207_v22 = vld [vmem:[#allocation3 + $0x50] sm:$0xff]  ;;  %v225_v43 = vsub.s32 2, %v216_v40 }
  0x4b   : > { %1233 = vmatpush1.bf16.msra.mxu0 %v1232_v10  ;;  %v1244_v19 = vpack.c.bf16 %v212_v17, %v208_v16  ;;  %1243 = vmatpush1.bf16.msra.mxu1 %v1242_v14  ;;  %v1237_v23 = vpack.c.bf16 %v209_v21, %v205_v20  ;;  %v211_v24 = vld [vmem:[#allocation3 + $0x70] sm:$0x7]  ;;  %s1479_s21 = scalar_lea.vmem %s2061_s0, %s1250_s18  ;;  %v213_v42 = vld [vmem:[#allocation5] sm:$0xf]  ;;  %v221_v44 = vsub.s32 1, %v216_v40  ;;  %v229_v45 = vsub.s32 3, %v216_v40 }
  0x4c   : > { %1236 = vmatprep.subr.msk.bf16.mxu0 %vm1471_vm2, %v1234_v18  ;;  %v1247_v25 = vpack.c.bf16 %v211_v24, %v207_v22  ;;  %v184_v26 = vld [vmem:[%s1479_s21] sm:$0xff]  ;;  %v185_v27 = vld [vmem:[%s1479_s21 + $0x8] sm:$0xff]  ;;  %v186_v28 = vld [vmem:[%s1479_s21 + $0x10] sm:$0xff]  ;;  %v1552_v46 = vrot.slane %v213_v42, %v217_v41  ;;  %v1554_v47 = vrot.slane %v213_v42, %v225_v43 }
  0x4d   : > { %1246 = vmatprep.subr.msk.bf16.mxu1 %vm1471_vm2, %v1244_v19  ;;  %v187_v29 = vld [vmem:[%s1479_s21 + $0x18] sm:$0xff]  ;;  %v188_v30 = vld [vmem:[%s1479_s21 + $0x20] sm:$0xff]  ;;  %v189_v31 = vld [vmem:[%s1479_s21 + $0x28] sm:$0xff]  ;;  %v1556_v48 = vrot.slane %v213_v42, %v221_v44  ;;  %v1558_v49 = vrot.slane %v213_v42, %v229_v45 }
  0x4e   : > { %v190_v32 = vld [vmem:[%s1479_s21 + $0x30] sm:$0xff]  ;;  %v191_v33 = vld [vmem:[%s1479_s21 + $0x38] sm:$0xff]  ;;  %v192_v34 = vld [vmem:[%s1479_s21 + $0x40] sm:$0xff] }
  0x4f   : > { %1239 = vmatpush1.bf16.msk.msra.mxu0 %vm1471_vm2, %v1237_v23  ;;  %1249 = vmatpush1.bf16.msk.msra.mxu1 %vm1471_vm2, %v1247_v25  ;;  %v193_v35 = vld [vmem:[%s1479_s21 + $0x48] sm:$0xff]  ;;  %v194_v36 = vld [vmem:[%s1479_s21 + $0x50] sm:$0xff]  ;;  %v195_v37 = vld [vmem:[%s1479_s21 + $0x58] sm:$0xff] }
  0x50   : > { %v196_v38 = vld [vmem:[%s1479_s21 + $0x60] sm:$0x3] }
  0x52   : > { %1145 = vmatmul.mubr.msk.f32.vlgmr.msra.gmra.mrb[0].mxu0 %vm235_vm3, %v184_v26  ;;  %1160 = vmatmul.mubr.msk.f32.vlgmr.msra.gmra.mrb[0].mxu1 %vm235_vm3, %v184_v26 }
  0x53   : > { %358 = vmatprep.mubr.f32.mxu0 %v1360_v0  ;;  %501 = vmatprep.mubr.f32.mxu1 %v1360_v0 }
  0x56   : > { %1146 = vmatmul.mubr.msk.f32.gmra.mrb[2].mxu0 %vm235_vm3, %v185_v27  ;;  %1161 = vmatmul.mubr.msk.f32.gmra.mrb[2].mxu1 %vm235_vm3, %v185_v27 }
  0x57   : > { %364 = vmatprep.mubr.f32.mxu0 %v1360_v0  ;;  %507 = vmatprep.mubr.f32.mxu1 %v1360_v0 }
  0x5a   : > { %1147 = vmatmul.mubr.msk.f32.gmra.mrb[4].mxu0 %vm235_vm3, %v186_v28  ;;  %1162 = vmatmul.mubr.msk.f32.gmra.mrb[4].mxu1 %vm235_vm3, %v186_v28 }
  0x5b   : > { %370 = vmatprep.mubr.f32.mxu0 %v1360_v0  ;;  %513 = vmatprep.mubr.f32.mxu1 %v1360_v0 }
  0x5e   : > { %1148 = vmatmul.mubr.msk.f32.gmra.mrb[6].mxu0 %vm235_vm3, %v187_v29  ;;  %1163 = vmatmul.mubr.msk.f32.gmra.mrb[6].mxu1 %vm235_vm3, %v187_v29 }
  0x5f   : > { %376 = vmatprep.mubr.f32.mxu0 %v1360_v0  ;;  %519 = vmatprep.mubr.f32.mxu1 %v1360_v0 }
  0x62   : > { %1149 = vmatmul.mubr.msk.f32.gmra.mrb[8].mxu0 %vm235_vm3, %v188_v30  ;;  %1164 = vmatmul.mubr.msk.f32.gmra.mrb[8].mxu1 %vm235_vm3, %v188_v30 }
  0x63   : > { %382 = vmatprep.mubr.f32.mxu0 %v1360_v0  ;;  %525 = vmatprep.mubr.f32.mxu1 %v1360_v0 }
  0x66   : > { %1150 = vmatmul.mubr.msk.f32.gmra.mrb[10].mxu0 %vm235_vm3, %v189_v31  ;;  %1165 = vmatmul.mubr.msk.f32.gmra.mrb[10].mxu1 %vm235_vm3, %v189_v31 }
  0x67   : > { %388 = vmatprep.mubr.f32.mxu0 %v1360_v0  ;;  %531 = vmatprep.mubr.f32.mxu1 %v1360_v0 }
  0x6a   : > { %1151 = vmatmul.mubr.msk.f32.gmra.mrb[12].mxu0 %vm235_vm3, %v190_v32  ;;  %1166 = vmatmul.mubr.msk.f32.gmra.mrb[12].mxu1 %vm235_vm3, %v190_v32 }
  0x6b   : > { %394 = vmatprep.mubr.f32.mxu0 %v1360_v0  ;;  %537 = vmatprep.mubr.f32.mxu1 %v1360_v0 }
  0x6e   : > { %1152 = vmatmul.mubr.msk.f32.gmra.mrb[14].mxu0 %vm235_vm3, %v191_v33  ;;  %1167 = vmatmul.mubr.msk.f32.gmra.mrb[14].mxu1 %vm235_vm3, %v191_v33 }
  0x6f   : > { %400 = vmatprep.mubr.f32.mxu0 %v1360_v0  ;;  %543 = vmatprep.mubr.f32.mxu1 %v1360_v0 }
  0x72   : > { %1153 = vmatmul.mubr.msk.f32.gmra.mrb[16].mxu0 %vm235_vm3, %v192_v34  ;;  %1168 = vmatmul.mubr.msk.f32.gmra.mrb[16].mxu1 %vm235_vm3, %v192_v34 }
  0x73   : > { %406 = vmatprep.mubr.f32.mxu0 %v1360_v0  ;;  %549 = vmatprep.mubr.f32.mxu1 %v1360_v0 }
  0x76   : > { %1154 = vmatmul.mubr.msk.f32.gmra.mrb[18].mxu0 %vm235_vm3, %v193_v35  ;;  %1169 = vmatmul.mubr.msk.f32.gmra.mrb[18].mxu1 %vm235_vm3, %v193_v35 }
  0x77   : > { %412 = vmatprep.mubr.f32.mxu0 %v1360_v0  ;;  %555 = vmatprep.mubr.f32.mxu1 %v1360_v0 }
  0x7a   : > { %1155 = vmatmul.mubr.msk.f32.gmra.mrb[20].mxu0 %vm235_vm3, %v194_v36  ;;  %1170 = vmatmul.mubr.msk.f32.gmra.mrb[20].mxu1 %vm235_vm3, %v194_v36 }
  0x7b   : > { %418 = vmatprep.mubr.f32.mxu0 %v1360_v0  ;;  %561 = vmatprep.mubr.f32.mxu1 %v1360_v0 }
  0x7e   : > { %1156 = vmatmul.mubr.msk.f32.gmra.mrb[22].mxu0 %vm235_vm3, %v195_v37  ;;  %1171 = vmatmul.mubr.msk.f32.gmra.mrb[22].mxu1 %vm235_vm3, %v195_v37 }
  0x7f   : > { %424 = vmatprep.mubr.f32.mxu0 %v1360_v0  ;;  %567 = vmatprep.mubr.f32.mxu1 %v1360_v0 }
  0x82   : > { %1157 = vmatmul.mubr.msk.f32.gmra.mrb[24].mxu0 %vm235_vm3, %v196_v38  ;;  %1172 = vmatmul.mubr.msk.f32.gmra.mrb[24].mxu1 %vm235_vm3, %v196_v38 }
 0x125   : > { %v354_v50 = vpop.f32.mrb[0].mxu0  ;;  %v497_v52 = vpop.f32.mrb[0].mxu1 }
 0x126   : > { %v1561_v51 = vadd.f32 %v354_v50, %v1552_v46  ;;  %v356_v53 = vpop.f32.mrb[1].mxu0  ;;  %v1564_v54 = vadd.f32 %v497_v52, %v1554_v47  ;;  %v499_v56 = vpop.f32.mrb[1].mxu1 }
 0x127   : > { %v1567_v55 = vadd.f32 %v356_v53, %v1556_v48  ;;  %v1571_v58 = vadd.f32 %v499_v56, %v1558_v49 }
 0x128   : > { %v574_v57 = vmax.f32 %v1561_v51, 0.0 }
 0x129   : > { %v360_v61 = vpop.f32.mrb[2].mxu0  ;;  %v503_v0 = vpop.f32.mrb[2].mxu1 }
 0x12a   : > { %v1577_v63 = vadd.f32 %v360_v61, %v1552_v46  ;;  %v362_v1 = vpop.f32.mrb[3].mxu0  ;;  %v1580_v2 = vadd.f32 %v503_v0, %v1554_v47  ;;  %v505_v4 = vpop.f32.mrb[3].mxu1  ;;  %630 = vst [vmem:[#allocation2] sm:$0xff] (!%p2092_p6), %v574_v57 }
 0x12b   : > { %v1583_v3 = vadd.f32 %v362_v1, %v1556_v48  ;;  %v1587_v6 = vadd.f32 %v505_v4, %v1558_v49 }
 0x12d   : > { %v366_v9 = vpop.f32.mrb[4].mxu0  ;;  %v509_v12 = vpop.f32.mrb[4].mxu1 }
 0x12e   : > { %v1593_v11 = vadd.f32 %v366_v9, %v1552_v46  ;;  %v368_v13 = vpop.f32.mrb[5].mxu0  ;;  %v1596_v14 = vadd.f32 %v509_v12, %v1554_v47  ;;  %v511_v16 = vpop.f32.mrb[5].mxu1 }
 0x12f   : > { %v1599_v15 = vadd.f32 %v368_v13, %v1556_v48  ;;  %v1603_v18 = vadd.f32 %v511_v16, %v1558_v49 }
 0x131   : > { %v372_v21 = vpop.f32.mrb[6].mxu0  ;;  %v515_v24 = vpop.f32.mrb[6].mxu1 }
 0x132   : > { %v1609_v23 = vadd.f32 %v372_v21, %v1552_v46  ;;  %v374_v25 = vpop.f32.mrb[7].mxu0  ;;  %v1612_v26 = vadd.f32 %v515_v24, %v1554_v47  ;;  %v517_v28 = vpop.f32.mrb[7].mxu1 }
 0x133   : > { %v1615_v27 = vadd.f32 %v374_v25, %v1556_v48  ;;  %v1619_v30 = vadd.f32 %v517_v28, %v1558_v49 }
 0x135   : > { %v378_v33 = vpop.f32.mrb[8].mxu0  ;;  %v521_v36 = vpop.f32.mrb[8].mxu1 }
 0x136   : > { %v1625_v35 = vadd.f32 %v378_v33, %v1552_v46  ;;  %v380_v37 = vpop.f32.mrb[9].mxu0  ;;  %v1628_v38 = vadd.f32 %v521_v36, %v1554_v47  ;;  %v523_v40 = vpop.f32.mrb[9].mxu1 }
 0x137   : > { %v1631_v39 = vadd.f32 %v380_v37, %v1556_v48  ;;  %v1635_v42 = vadd.f32 %v523_v40, %v1558_v49 }
 0x139   : > { %v384_v45 = vpop.f32.mrb[10].mxu0  ;;  %v527_v53 = vpop.f32.mrb[10].mxu1 }
 0x13a   : > { %v1641_v52 = vadd.f32 %v384_v45, %v1552_v46  ;;  %v386_v56 = vpop.f32.mrb[11].mxu0  ;;  %v1644_v61 = vadd.f32 %v527_v53, %v1554_v47  ;;  %v529_v1 = vpop.f32.mrb[11].mxu1 }
 0x13b   : > { %v1647_v0 = vadd.f32 %v386_v56, %v1556_v48  ;;  %v1651_v9 = vadd.f32 %v529_v1, %v1558_v49 }
 0x13d   : > { %v390_v16 = vpop.f32.mrb[12].mxu0  ;;  %v533_v25 = vpop.f32.mrb[12].mxu1 }
 0x13e   : > { %v1657_v24 = vadd.f32 %v390_v16, %v1552_v46  ;;  %v392_v28 = vpop.f32.mrb[13].mxu0  ;;  %v1660_v33 = vadd.f32 %v533_v25, %v1554_v47  ;;  %v535_v37 = vpop.f32.mrb[13].mxu1 }
 0x13f   : > { %v1663_v36 = vadd.f32 %v392_v28, %v1556_v48  ;;  %v1667_v45 = vadd.f32 %v535_v37, %v1558_v49 }
 0x141   : > { %v396_v1 = vpop.f32.mrb[14].mxu0  ;;  %v539_v25 = vpop.f32.mrb[14].mxu1 }
 0x142   : > { %v1673_v21 = vadd.f32 %v396_v1, %v1552_v46  ;;  %v398_v12 = vpop.f32.mrb[15].mxu0  ;;  %v1676_v28 = vadd.f32 %v539_v25, %v1554_v47  ;;  %v541_v37 = vpop.f32.mrb[15].mxu1 }
 0x143   : > { %v1679_v40 = vadd.f32 %v398_v12, %v1556_v48  ;;  %v1683_v53 = vadd.f32 %v541_v37, %v1558_v49 }
 0x145   : > { %v402_v1 = vpop.f32.mrb[16].mxu0  ;;  %v545_v25 = vpop.f32.mrb[16].mxu1 }
 0x146   : > { %v1689_v50 = vadd.f32 %v402_v1, %v1552_v46  ;;  %v404_v43 = vpop.f32.mrb[17].mxu0  ;;  %v1692_v12 = vadd.f32 %v545_v25, %v1554_v47  ;;  %v547_v37 = vpop.f32.mrb[17].mxu1 }
 0x147   : > { %v1695_v13 = vadd.f32 %v404_v43, %v1556_v48  ;;  %v1699_v56 = vadd.f32 %v547_v37, %v1558_v49 }
 0x149   : > { %v408_v1 = vpop.f32.mrb[18].mxu0  ;;  %v551_v25 = vpop.f32.mrb[18].mxu1 }
 0x14a   : > { %v1705_v34 = vadd.f32 %v408_v1, %v1552_v46  ;;  %v410_v31 = vpop.f32.mrb[19].mxu0  ;;  %v1708_v43 = vadd.f32 %v551_v25, %v1554_v47  ;;  %v553_v37 = vpop.f32.mrb[19].mxu1 }
 0x14b   : > { %v1711_v44 = vadd.f32 %v410_v31, %v1556_v48  ;;  %v1715_v16 = vadd.f32 %v553_v37, %v1558_v49 }
 0x14d   : > { %v414_v1 = vpop.f32.mrb[20].mxu0  ;;  %v557_v25 = vpop.f32.mrb[20].mxu1 }
 0x14e   : > { %v1721_v22 = vadd.f32 %v414_v1, %v1552_v46  ;;  %v416_v19 = vpop.f32.mrb[21].mxu0  ;;  %v1724_v31 = vadd.f32 %v557_v25, %v1554_v47  ;;  %v559_v37 = vpop.f32.mrb[21].mxu1 }
 0x14f   : > { %v1727_v32 = vadd.f32 %v416_v19, %v1556_v48  ;;  %v1731_v4 = vadd.f32 %v559_v37, %v1558_v49 }
 0x151   : > { %v420_v1 = vpop.f32.mrb[22].mxu0  ;;  %v563_v25 = vpop.f32.mrb[22].mxu1 }
 0x152   : > { %v1737_v10 = vadd.f32 %v420_v1, %v1552_v46  ;;  %v422_v7 = vpop.f32.mrb[23].mxu0  ;;  %v1740_v19 = vadd.f32 %v563_v25, %v1554_v47  ;;  %v565_v37 = vpop.f32.mrb[23].mxu1 }
 0x153   : > { %v1743_v20 = vadd.f32 %v422_v7, %v1556_v48  ;;  %v1747_v41 = vadd.f32 %v565_v37, %v1558_v49  ;;  %629 = sbr.rel (%p2092_p6) target bundleno = 372 (0x174), region = 44 }
 0x154   : > { %2086 = vst [vmem:[#allocation9_spill] sm:$0xff] %v1740_v19 }
 0x155   : > { %2087 = vst [vmem:[#allocation10_spill] sm:$0xff] %v1747_v41  ;;  %v426_v1 = vpop.f32.mrb[24].mxu0  ;;  %v569_v25 = vpop.f32.mrb[24].mxu1 }
 0x156   : > { %v1753_v62 = vadd.f32 %v426_v1, %v1552_v46  ;;  %v428_v59 = vpop.f32.mrb[25].mxu0  ;;  %v1756_v7 = vadd.f32 %v569_v25, %v1554_v47  ;;  %v571_v37 = vpop.f32.mrb[25].mxu1  ;;  %v2093_v47 = vmax.f32 (!%p2092_p6), %v1567_v55, 0.0  ;;  %v2097_v1 = vmax.f32 (!%p2092_p6), %v1583_v3, 0.0 }
 0x157   : > { %v1759_v8 = vadd.f32 %v428_v59, %v1556_v48  ;;  %v1763_v29 = vadd.f32 %v571_v37, %v1558_v49  ;;  %v2094_v48 = vmax.f32 (!%p2092_p6), %v1564_v54, 0.0  ;;  %v2095_v49 = vmax.f32 (!%p2092_p6), %v1571_v58, 0.0 }
 0x158   : > { %2088 = vst [vmem:[#allocation11_spill] sm:$0xff] %v1753_v62  ;;  %2089 = vst [vmem:[#allocation12_spill] sm:$0xff] %v1756_v7  ;;  %v2069_v60 = vmax.f32 %v1753_v62, 0.0  ;;  %v2068_v17 = vmax.f32 %v1756_v7, 0.0  ;;  %v2096_v59 = vmax.f32 (!%p2092_p6), %v1577_v63, 0.0  ;;  %v2098_v25 = vmax.f32 (!%p2092_p6), %v1580_v2, 0.0 }
 0x159   : > { %2090 = vst [vmem:[#allocation13_spill] sm:$0xff] %v1759_v8  ;;  %2091 = vst [vmem:[#allocation14_spill] sm:$0xff] %v1763_v29  ;;  %v2067_v5 = vmax.f32 %v1759_v8, 0.0  ;;  %v2071_v46 = vmax.f32 %v1763_v29, 0.0  ;;  %v2099_v37 = vmax.f32 (!%p2092_p6), %v1587_v6, 0.0 }
 0x15a   : > { %631 = vst [vmem:[#allocation2 + $0x8] sm:$0xff] %v2093_v47  ;;  %632 = vst [vmem:[#allocation2 + $0x10] sm:$0xff] %v2094_v48  ;;  %v2100_v47 = vmax.f32 %v1593_v11, 0.0  ;;  %v2101_v48 = vmax.f32 %v1599_v15, 0.0 }
 0x15b   : > { %633 = vst [vmem:[#allocation2 + $0x18] sm:$0xff] %v2095_v49  ;;  %634 = vst [vmem:[#allocation2 + $0x20] sm:$0xff] %v2096_v59  ;;  %v2102_v49 = vmax.f32 %v1596_v14, 0.0  ;;  %v2103_v59 = vmax.f32 %v1603_v18, 0.0 }
 0x15c   : > { %635 = vst [vmem:[#allocation2 + $0x28] sm:$0xff] %v2097_v1  ;;  %636 = vst [vmem:[#allocation2 + $0x30] sm:$0xff] %v2098_v25  ;;  %v2104_v1 = vmax.f32 %v1609_v23, 0.0  ;;  %v2105_v25 = vmax.f32 %v1615_v27, 0.0 }
 0x15d   : > { %637 = vst [vmem:[#allocation2 + $0x38] sm:$0xff] %v2099_v37  ;;  %638 = vst [vmem:[#allocation2 + $0x40] sm:$0xff] %v2100_v47  ;;  %v2106_v37 = vmax.f32 %v1612_v26, 0.0  ;;  %v2107_v47 = vmax.f32 %v1619_v30, 0.0 }
 0x15e   : > { %639 = vst [vmem:[#allocation2 + $0x48] sm:$0xff] %v2101_v48  ;;  %640 = vst [vmem:[#allocation2 + $0x50] sm:$0xff] %v2102_v49  ;;  %v2108_v48 = vmax.f32 %v1625_v35, 0.0  ;;  %v2109_v49 = vmax.f32 %v1631_v39, 0.0 }
 0x15f   : > { %641 = vst [vmem:[#allocation2 + $0x58] sm:$0xff] %v2103_v59  ;;  %642 = vst [vmem:[#allocation2 + $0x60] sm:$0xff] %v2104_v1  ;;  %v2110_v59 = vmax.f32 %v1628_v38, 0.0  ;;  %v2111_v1 = vmax.f32 %v1635_v42, 0.0 }
 0x160   : > { %643 = vst [vmem:[#allocation2 + $0x68] sm:$0xff] %v2105_v25  ;;  %644 = vst [vmem:[#allocation2 + $0x70] sm:$0xff] %v2106_v37  ;;  %v2112_v25 = vmax.f32 %v1641_v52, 0.0  ;;  %v2113_v37 = vmax.f32 %v1647_v0, 0.0 }
 0x161   : > { %645 = vst [vmem:[#allocation2 + $0x78] sm:$0xff] %v2107_v47  ;;  %646 = vst [vmem:[#allocation2 + $0x80] sm:$0xff] %v2108_v48  ;;  %v2114_v47 = vmax.f32 %v1644_v61, 0.0  ;;  %v2115_v48 = vmax.f32 %v1651_v9, 0.0 }
 0x162   : > { %647 = vst [vmem:[#allocation2 + $0x88] sm:$0xff] %v2109_v49  ;;  %648 = vst [vmem:[#allocation2 + $0x90] sm:$0xff] %v2110_v59  ;;  %v2116_v49 = vmax.f32 %v1657_v24, 0.0  ;;  %v2117_v59 = vmax.f32 %v1663_v36, 0.0 }
 0x163   : > { %649 = vst [vmem:[#allocation2 + $0x98] sm:$0xff] %v2111_v1  ;;  %650 = vst [vmem:[#allocation2 + $0xa0] sm:$0xff] %v2112_v25  ;;  %v2118_v1 = vmax.f32 %v1660_v33, 0.0  ;;  %v2119_v25 = vmax.f32 %v1667_v45, 0.0 }
 0x164   : > { %651 = vst [vmem:[#allocation2 + $0xa8] sm:$0xff] %v2113_v37  ;;  %652 = vst [vmem:[#allocation2 + $0xb0] sm:$0xff] %v2114_v47  ;;  %v2120_v37 = vmax.f32 %v1673_v21, 0.0  ;;  %v2121_v47 = vmax.f32 %v1679_v40, 0.0 }
 0x165   : > { %653 = vst [vmem:[#allocation2 + $0xb8] sm:$0xff] %v2115_v48  ;;  %654 = vst [vmem:[#allocation2 + $0xc0] sm:$0xff] %v2116_v49  ;;  %v2122_v48 = vmax.f32 %v1676_v28, 0.0  ;;  %v2123_v49 = vmax.f32 %v1683_v53, 0.0 }
 0x166   : > { %655 = vst [vmem:[#allocation2 + $0xc8] sm:$0xff] %v2117_v59  ;;  %656 = vst [vmem:[#allocation2 + $0xd0] sm:$0xff] %v2118_v1  ;;  %v2124_v59 = vmax.f32 %v1689_v50, 0.0  ;;  %v2125_v1 = vmax.f32 %v1695_v13, 0.0 }
 0x167   : > { %657 = vst [vmem:[#allocation2 + $0xd8] sm:$0xff] %v2119_v25  ;;  %658 = vst [vmem:[#allocation2 + $0xe0] sm:$0xff] %v2120_v37  ;;  %v2126_v25 = vmax.f32 %v1692_v12, 0.0  ;;  %v2127_v37 = vmax.f32 %v1699_v56, 0.0 }
 0x168   : > { %659 = vst [vmem:[#allocation2 + $0xe8] sm:$0xff] %v2121_v47  ;;  %660 = vst [vmem:[#allocation2 + $0xf0] sm:$0xff] %v2122_v48  ;;  %v2128_v47 = vmax.f32 %v1705_v34, 0.0  ;;  %v2129_v48 = vmax.f32 %v1711_v44, 0.0 }
 0x169   : > { %661 = vst [vmem:[#allocation2 + $0xf8] sm:$0xff] %v2123_v49  ;;  %662 = vst [vmem:[#allocation2 + $0x100] sm:$0xff] %v2124_v59  ;;  %v2130_v49 = vmax.f32 %v1708_v43, 0.0  ;;  %v2131_v59 = vmax.f32 %v1715_v16, 0.0 }
 0x16a   : > { %663 = vst [vmem:[#allocation2 + $0x108] sm:$0xff] %v2125_v1  ;;  %664 = vst [vmem:[#allocation2 + $0x110] sm:$0xff] %v2126_v25  ;;  %v2132_v1 = vmax.f32 %v1721_v22, 0.0  ;;  %v2133_v25 = vmax.f32 %v1727_v32, 0.0 }
 0x16b   : > { %665 = vst [vmem:[#allocation2 + $0x118] sm:$0xff] %v2127_v37  ;;  %666 = vst [vmem:[#allocation2 + $0x120] sm:$0xff] %v2128_v47  ;;  %v2134_v37 = vmax.f32 %v1724_v31, 0.0  ;;  %v2135_v47 = vmax.f32 %v1731_v4, 0.0 }
 0x16c   : > { %667 = vst [vmem:[#allocation2 + $0x128] sm:$0xff] %v2129_v48  ;;  %668 = vst [vmem:[#allocation2 + $0x130] sm:$0xff] %v2130_v49  ;;  %v2136_v48 = vmax.f32 %v1737_v10, 0.0  ;;  %v2137_v49 = vmax.f32 %v1743_v20, 0.0 }
 0x16d   : > { %669 = vst [vmem:[#allocation2 + $0x138] sm:$0xff] %v2131_v59  ;;  %670 = vst [vmem:[#allocation2 + $0x140] sm:$0xff] %v2132_v1  ;;  %v2138_v59 = vmax.f32 %v1740_v19, 0.0  ;;  %v2139_v1 = vmax.f32 %v1747_v41, 0.0 }
 0x16e   : > { %671 = vst [vmem:[#allocation2 + $0x148] sm:$0xff] %v2133_v25  ;;  %672 = vst [vmem:[#allocation2 + $0x150] sm:$0xff] %v2134_v37 }
 0x16f   : > { %673 = vst [vmem:[#allocation2 + $0x158] sm:$0xff] %v2135_v47  ;;  %674 = vst [vmem:[#allocation2 + $0x160] sm:$0xff] %v2136_v48 }
 0x170   : > { %675 = vst [vmem:[#allocation2 + $0x168] sm:$0xff] %v2137_v49  ;;  %676 = vst [vmem:[#allocation2 + $0x170] sm:$0xff] %v2138_v59 }
 0x171   : > { %677 = vst [vmem:[#allocation2 + $0x178] sm:$0xff] %v2139_v1  ;;  %678 = vst [vmem:[#allocation2 + $0x180] sm:$0x3] %v2069_v60 }
 0x172   : > { %679 = vst [vmem:[#allocation2 + $0x188] sm:$0x3] %v2067_v5  ;;  %680 = vst [vmem:[#allocation2 + $0x190] sm:$0x3] %v2068_v17 }
 0x173   : > { %681 = vst [vmem:[#allocation2 + $0x198] sm:$0x3] %v2071_v46 }
 0x174 PF: > { %p1174_p10 = scmp.le.s32.totalorder %s1388_s13, 0 }
 0x175   : > { %v686_v25 = vld [vmem:[#allocation2] sm:$0xff] (!%p1174_p10)  ;;  %v2140_v49 = vmax.f32 (!%p1174_p10), %v1567_v55, 0.0  ;;  %v2141_v1 = vmax.f32 (!%p1174_p10), %v1564_v54, 0.0  ;;  %v689_v17 = vld [vmem:[#allocation2 + $0x18] sm:$0xff] (!%p1174_p10)  ;;  %v691_v29 = vld [vmem:[#allocation2 + $0x28] sm:$0xff] (!%p1174_p10)  ;;  %v2142_v46 = vmax.f32 (!%p1174_p10), %v1571_v58, 0.0 }
 0x176   : > { %685 = sbr.rel (%p1174_p10) target bundleno = 407 (0x197), region = 48  ;;  %v738_v48 = vmax.f32 (!%p1174_p10), %v686_v25, %v574_v57  ;;  %v690_v60 = vld [vmem:[#allocation2 + $0x20] sm:$0xff] (!%p1174_p10)  ;;  %v2143_v8 = vmax.f32 (!%p1174_p10), %v1577_v63, 0.0  ;;  %v2144_v41 = vmax.f32 (!%p1174_p10), %v1583_v3, 0.0  ;;  %v692_v51 = vld [vmem:[#allocation2 + $0x30] sm:$0xff] (!%p1174_p10)  ;;  %v693_v57 = vld [vmem:[#allocation2 + $0x38] sm:$0xff] (!%p1174_p10) }
 0x177   : > { %v741_v7 = vmax.f32 (!%p1174_p10), %v689_v17, %v2142_v46  ;;  %v694_v25 = vld [vmem:[#allocation2 + $0x40] sm:$0xff] (!%p1174_p10)  ;;  %v2145_v54 = vmax.f32 (!%p1174_p10), %v1580_v2, 0.0  ;;  %v2147_v58 = vmax.f32 (!%p1174_p10), %v1593_v11, 0.0  ;;  %v695_v63 = vld [vmem:[#allocation2 + $0x48] sm:$0xff] (!%p1174_p10)  ;;  %v2148_v3 = vmax.f32 (!%p1174_p10), %v1599_v15, 0.0 }
 0x178   : > { %v742_v62 = vmax.f32 (!%p1174_p10), %v690_v60, %v2143_v8  ;;  %v743_v19 = vmax.f32 (!%p1174_p10), %v691_v29, %v2144_v41  ;;  %790 = vst [vmem:[#allocation2] sm:$0xff] (!%p1174_p10), %v738_v48  ;;  %v696_v60 = vld [vmem:[#allocation2 + $0x50] sm:$0xff] (!%p1174_p10)  ;;  %v697_v8 = vld [vmem:[#allocation2 + $0x58] sm:$0xff] (!%p1174_p10)  ;;  %v2150_v2 = vmax.f32 (!%p1174_p10), %v1603_v18, 0.0  ;;  %v699_v48 = vld [vmem:[#allocation2 + $0x68] sm:$0xff] (!%p1174_p10)  ;;  %v2151_v11 = vmax.f32 (!%p1174_p10), %v1609_v23, 0.0 }
 0x179   : > { %v744_v55 = vmax.f32 (!%p1174_p10), %v692_v51, %v2145_v54  ;;  %v746_v17 = vmax.f32 (!%p1174_p10), %v694_v25, %v2147_v58  ;;  %793 = vst [vmem:[#allocation2 + $0x18] sm:$0xff] (!%p1174_p10), %v741_v7  ;;  %v747_v29 = vmax.f32 (!%p1174_p10), %v695_v63, %v2148_v3  ;;  %v2153_v15 = vmax.f32 (!%p1174_p10), %v1612_v26, 0.0  ;;  %v703_v51 = vld [vmem:[#allocation2 + $0x88] sm:$0xff] (!%p1174_p10)  ;;  %v709_v3 = vld [vmem:[#allocation2 + $0xb8] sm:$0xff] (!%p1174_p10) }
 0x17a   : > { %794 = vst [vmem:[#allocation2 + $0x20] sm:$0xff] (!%p1174_p10), %v742_v62  ;;  %795 = vst [vmem:[#allocation2 + $0x28] sm:$0xff] (!%p1174_p10), %v743_v19  ;;  %v749_v46 = vmax.f32 (!%p1174_p10), %v697_v8, %v2150_v2  ;;  %v2152_v62 = vmax.f32 (!%p1174_p10), %v1615_v27, 0.0  ;;  %v2154_v18 = vmax.f32 (!%p1174_p10), %v1619_v30, 0.0  ;;  %v2155_v25 = vmax.f32 (!%p1174_p10), %v1625_v35, 0.0  ;;  %v704_v27 = vld [vmem:[#allocation2 + $0x90] sm:$0xff] (!%p1174_p10) }
 0x17b   : > { %v687_v37 = vld [vmem:[#allocation2 + $0x8] sm:$0xff] (!%p1174_p10)  ;;  %v688_v47 = vld [vmem:[#allocation2 + $0x10] sm:$0xff] (!%p1174_p10)  ;;  %796 = vst [vmem:[#allocation2 + $0x30] sm:$0xff] (!%p1174_p10), %v744_v55  ;;  %798 = vst [vmem:[#allocation2 + $0x40] sm:$0xff] (!%p1174_p10), %v746_v17  ;;  %v2156_v23 = vmax.f32 (!%p1174_p10), %v1631_v39, 0.0  ;;  %v2157_v26 = vmax.f32 (!%p1174_p10), %v1628_v38, 0.0 }
 0x17c   : > { %v739_v59 = vmax.f32 (!%p1174_p10), %v687_v37, %v2140_v49  ;;  %v740_v5 = vmax.f32 (!%p1174_p10), %v688_v47, %v2141_v1  ;;  %v2146_v37 = vmax.f32 (!%p1174_p10), %v1587_v6, 0.0  ;;  %v698_v6 = vld [vmem:[#allocation2 + $0x60] sm:$0xff] (!%p1174_p10)  ;;  %v700_v49 = vld [vmem:[#allocation2 + $0x70] sm:$0xff] (!%p1174_p10)  ;;  %v751_v19 = vmax.f32 (!%p1174_p10), %v699_v48, %v2152_v62  ;;  %799 = vst [vmem:[#allocation2 + $0x48] sm:$0xff] (!%p1174_p10), %v747_v29  ;;  %801 = vst [vmem:[#allocation2 + $0x58] sm:$0xff] (!%p1174_p10), %v749_v46 }
 0x17d   : > { %v750_v7 = vmax.f32 %v698_v6, %v2151_v11  ;;  %v702_v1 = vld [vmem:[#allocation2 + $0x80] sm:$0xff]  ;;  %v755_v55 = vmax.f32 %v703_v51, %v2156_v23  ;;  %v756_v58 = vmax.f32 %v704_v27, %v2157_v26  ;;  %v2158_v17 = vmax.f32 %v1635_v42, 0.0  ;;  %v707_v35 = vld [vmem:[#allocation2 + $0xa8] sm:$0xff]  ;;  %v708_v8 = vld [vmem:[#allocation2 + $0xb0] sm:$0xff] }
 0x17e   : > { %791 = vst [vmem:[#allocation2 + $0x8] sm:$0xff] %v739_v59  ;;  %792 = vst [vmem:[#allocation2 + $0x10] sm:$0xff] %v740_v5  ;;  %v745_v47 = vmax.f32 %v693_v57, %v2146_v37  ;;  %v2149_v5 = vmax.f32 %v1596_v14, 0.0  ;;  %v752_v59 = vmax.f32 %v700_v49, %v2153_v15  ;;  %v701_v14 = vld [vmem:[#allocation2 + $0x78] sm:$0xff]  ;;  %v754_v54 = vmax.f32 %v702_v1, %v2155_v25  ;;  %v710_v42 = vld [vmem:[#allocation2 + $0xc0] sm:$0xff] }
 0x17f   : > { %v753_v57 = vmax.f32 %v701_v14, %v2154_v18  ;;  %v705_v37 = vld [vmem:[#allocation2 + $0x98] sm:$0xff]  ;;  %802 = vst [vmem:[#allocation2 + $0x60] sm:$0xff] %v750_v7  ;;  %803 = vst [vmem:[#allocation2 + $0x68] sm:$0xff] %v751_v19  ;;  %v2159_v30 = vmax.f32 %v1641_v52, 0.0  ;;  %v2160_v39 = vmax.f32 %v1647_v0, 0.0  ;;  %v2162_v38 = vmax.f32 %v1651_v9, 0.0 }
 0x180   : > { %v748_v41 = vmax.f32 %v696_v60, %v2149_v5  ;;  %797 = vst [vmem:[#allocation2 + $0x38] sm:$0xff] %v745_v47  ;;  %v706_v47 = vld [vmem:[#allocation2 + $0xa0] sm:$0xff]  ;;  %804 = vst [vmem:[#allocation2 + $0x70] sm:$0xff] %v752_v59  ;;  %v757_v63 = vmax.f32 %v705_v37, %v2158_v17  ;;  %v2161_v5 = vmax.f32 %v1644_v61, 0.0  ;;  %v711_v46 = vld [vmem:[#allocation2 + $0xc8] sm:$0xff]  ;;  %v2163_v52 = vmax.f32 %v1657_v24, 0.0 }
 0x181   : > { %v758_v60 = vmax.f32 %v706_v47, %v2159_v30  ;;  %805 = vst [vmem:[#allocation2 + $0x78] sm:$0xff] %v753_v57  ;;  %806 = vst [vmem:[#allocation2 + $0x80] sm:$0xff] %v754_v54  ;;  %v759_v29 = vmax.f32 %v707_v35, %v2160_v39  ;;  %v761_v2 = vmax.f32 %v709_v3, %v2162_v38  ;;  %v712_v6 = vld [vmem:[#allocation2 + $0xd0] sm:$0xff]  ;;  %v2164_v49 = vmax.f32 %v1663_v36, 0.0  ;;  %v713_v61 = vld [vmem:[#allocation2 + $0xd8] sm:$0xff] }
 0x182   : > { %800 = vst [vmem:[#allocation2 + $0x50] sm:$0xff] %v748_v41  ;;  %807 = vst [vmem:[#allocation2 + $0x88] sm:$0xff] %v755_v55  ;;  %v760_v41 = vmax.f32 %v708_v8, %v2161_v5  ;;  %v762_v48 = vmax.f32 %v710_v42, %v2163_v52  ;;  %v2165_v0 = vmax.f32 %v1660_v33, 0.0  ;;  %v714_v62 = vld [vmem:[#allocation2 + $0xe0] sm:$0xff]  ;;  %v715_v19 = vld [vmem:[#allocation2 + $0xe8] sm:$0xff]  ;;  %v2166_v9 = vmax.f32 %v1667_v45, 0.0 }
 0x183   : > { %808 = vst [vmem:[#allocation2 + $0x90] sm:$0xff] %v756_v58  ;;  %809 = vst [vmem:[#allocation2 + $0x98] sm:$0xff] %v757_v63  ;;  %v763_v11 = vmax.f32 %v711_v46, %v2164_v49  ;;  %v2167_v59 = vmax.f32 %v1673_v21, 0.0  ;;  %v2168_v24 = vmax.f32 %v1679_v40, 0.0  ;;  %v716_v36 = vld [vmem:[#allocation2 + $0xf0] sm:$0xff]  ;;  %v717_v51 = vld [vmem:[#allocation2 + $0xf8] sm:$0xff] }
 0x184   : > { %810 = vst [vmem:[#allocation2 + $0xa0] sm:$0xff] %v758_v60  ;;  %v764_v7 = vmax.f32 %v712_v6, %v2165_v0  ;;  %811 = vst [vmem:[#allocation2 + $0xa8] sm:$0xff] %v759_v29  ;;  %v765_v15 = vmax.f32 %v713_v61, %v2166_v9  ;;  %v718_v18 = vld [vmem:[#allocation2 + $0x100] sm:$0xff]  ;;  %v2169_v33 = vmax.f32 %v1676_v28, 0.0  ;;  %v2170_v25 = vmax.f32 %v1683_v53, 0.0  ;;  %v719_v21 = vld [vmem:[#allocation2 + $0x108] sm:$0xff] }
 0x185   : > { %812 = vst [vmem:[#allocation2 + $0xb0] sm:$0xff] %v760_v41  ;;  %813 = vst [vmem:[#allocation2 + $0xb8] sm:$0xff] %v761_v2  ;;  %v766_v14 = vmax.f32 %v714_v62, %v2167_v59  ;;  %v767_v1 = vmax.f32 %v715_v19, %v2168_v24  ;;  %v2171_v45 = vmax.f32 %v1689_v50, 0.0  ;;  %v720_v55 = vld [vmem:[#allocation2 + $0x110] sm:$0xff]  ;;  %v721_v27 = vld [vmem:[#allocation2 + $0x118] sm:$0xff]  ;;  %v2172_v40 = vmax.f32 %v1695_v13, 0.0 }
 0x186   : > { %814 = vst [vmem:[#allocation2 + $0xc0] sm:$0xff] %v762_v48  ;;  %815 = vst [vmem:[#allocation2 + $0xc8] sm:$0xff] %v763_v11  ;;  %v768_v57 = vmax.f32 %v716_v36, %v2169_v33  ;;  %v769_v54 = vmax.f32 %v717_v51, %v2170_v25  ;;  %v2173_v47 = vmax.f32 %v1692_v12, 0.0  ;;  %v2174_v28 = vmax.f32 %v1699_v56, 0.0  ;;  %v722_v53 = vld [vmem:[#allocation2 + $0x120] sm:$0xff]  ;;  %v723_v17 = vld [vmem:[#allocation2 + $0x128] sm:$0xff] }
 0x187   : > { %816 = vst [vmem:[#allocation2 + $0xd0] sm:$0xff] %v764_v7  ;;  %v770_v23 = vmax.f32 %v718_v18, %v2171_v45  ;;  %817 = vst [vmem:[#allocation2 + $0xd8] sm:$0xff] %v765_v15  ;;  %v771_v37 = vmax.f32 %v719_v21, %v2172_v40  ;;  %v724_v63 = vld [vmem:[#allocation2 + $0x130] sm:$0xff]  ;;  %v2175_v50 = vmax.f32 %v1705_v34, 0.0  ;;  %v2176_v60 = vmax.f32 %v1711_v44, 0.0  ;;  %v725_v12 = vld [vmem:[#allocation2 + $0x138] sm:$0xff] }
 0x188   : > { %818 = vst [vmem:[#allocation2 + $0xe0] sm:$0xff] %v766_v14  ;;  %819 = vst [vmem:[#allocation2 + $0xe8] sm:$0xff] %v767_v1  ;;  %v772_v26 = vmax.f32 %v720_v55, %v2173_v47  ;;  %v773_v58 = vmax.f32 %v721_v27, %v2174_v28  ;;  %v2177_v13 = vmax.f32 %v1708_v43, 0.0  ;;  %v726_v3 = vld [vmem:[#allocation2 + $0x140] sm:$0xff]  ;;  %v727_v39 = vld [vmem:[#allocation2 + $0x148] sm:$0xff]  ;;  %v2178_v56 = vmax.f32 %v1715_v16, 0.0 }
 0x189   : > { %820 = vst [vmem:[#allocation2 + $0xf0] sm:$0xff] %v768_v57  ;;  %821 = vst [vmem:[#allocation2 + $0xf8] sm:$0xff] %v769_v54  ;;  %v774_v30 = vmax.f32 %v722_v53, %v2175_v50  ;;  %v775_v35 = vmax.f32 %v723_v17, %v2176_v60  ;;  %v2179_v5 = vmax.f32 %v1721_v22, 0.0  ;;  %v2180_v34 = vmax.f32 %v1727_v32, 0.0  ;;  %v728_v44 = vld [vmem:[#allocation2 + $0x150] sm:$0xff]  ;;  %v729_v2 = vld [vmem:[#allocation2 + $0x158] sm:$0xff] }
 0x18a   : > { %822 = vst [vmem:[#allocation2 + $0x100] sm:$0xff] %v770_v23  ;;  %v776_v8 = vmax.f32 %v724_v63, %v2177_v13  ;;  %823 = vst [vmem:[#allocation2 + $0x108] sm:$0xff] %v771_v37  ;;  %v777_v29 = vmax.f32 %v725_v12, %v2178_v56  ;;  %v730_v42 = vld [vmem:[#allocation2 + $0x160] sm:$0xff]  ;;  %v2181_v43 = vmax.f32 %v1724_v31, 0.0  ;;  %v2182_v6 = vmax.f32 %v1731_v4, 0.0  ;;  %v731_v22 = vld [vmem:[#allocation2 + $0x168] sm:$0xff] }
 0x18b   : > { %824 = vst [vmem:[#allocation2 + $0x110] sm:$0xff] %v772_v26  ;;  %825 = vst [vmem:[#allocation2 + $0x118] sm:$0xff] %v773_v58  ;;  %v778_v41 = vmax.f32 %v726_v3, %v2179_v5  ;;  %v779_v38 = vmax.f32 %v727_v39, %v2180_v34  ;;  %v2183_v16 = vmax.f32 %v1737_v10, 0.0  ;;  %v732_v49 = vld [vmem:[#allocation2 + $0x170] sm:$0xff]  ;;  %v733_v11 = vld [vmem:[#allocation2 + $0x178] sm:$0xff]  ;;  %v2184_v32 = vmax.f32 %v1743_v20, 0.0 }
 0x18c   : > { %826 = vst [vmem:[#allocation2 + $0x120] sm:$0xff] %v774_v30  ;;  %827 = vst [vmem:[#allocation2 + $0x128] sm:$0xff] %v775_v35  ;;  %v780_v46 = vmax.f32 %v728_v44, %v2181_v43  ;;  %v781_v52 = vmax.f32 %v729_v2, %v2182_v6  ;;  %v2185_v7 = vld [vmem:[#allocation9_spill] sm:$0xff]  ;;  %v2187_v31 = vld [vmem:[#allocation10_spill] sm:$0xff] }
 0x18d   : > { %828 = vst [vmem:[#allocation2 + $0x130] sm:$0xff] %v776_v8  ;;  %v782_v48 = vmax.f32 %v730_v42, %v2183_v16  ;;  %829 = vst [vmem:[#allocation2 + $0x138] sm:$0xff] %v777_v29  ;;  %v783_v0 = vmax.f32 %v731_v22, %v2184_v32  ;;  %v2186_v61 = vmax.f32 %v2185_v7, 0.0  ;;  %v2188_v19 = vmax.f32 %v2187_v31, 0.0  ;;  %v734_v4 = vld [vmem:[#allocation2 + $0x180] sm:$0x3] }
 0x18e   : > { %830 = vst [vmem:[#allocation2 + $0x140] sm:$0xff] %v778_v41  ;;  %831 = vst [vmem:[#allocation2 + $0x148] sm:$0xff] %v779_v38  ;;  %v735_v15 = vld [vmem:[#allocation2 + $0x188] sm:$0x3]  ;;  %v736_v59 = vld [vmem:[#allocation2 + $0x190] sm:$0x3] }
 0x18f   : > { %v784_v62 = vmax.f32 %v732_v49, %v2186_v61  ;;  %v785_v9 = vmax.f32 %v733_v11, %v2188_v19  ;;  %832 = vst [vmem:[#allocation2 + $0x150] sm:$0xff] %v780_v46  ;;  %833 = vst [vmem:[#allocation2 + $0x158] sm:$0xff] %v781_v52  ;;  %v2189_v10 = vld [vmem:[#allocation11_spill] sm:$0xff]  ;;  %v2191_v1 = vld [vmem:[#allocation13_spill] sm:$0xff] }
 0x190   : > { %834 = vst [vmem:[#allocation2 + $0x160] sm:$0xff] %v782_v48  ;;  %v2190_v14 = vmax.f32 %v2189_v10, 0.0  ;;  %v2192_v36 = vmax.f32 %v2191_v1, 0.0  ;;  %v2193_v20 = vld [vmem:[#allocation12_spill] sm:$0xff]  ;;  %v737_v57 = vld [vmem:[#allocation2 + $0x198] sm:$0x3] }
 0x191   : > { %v2194_v18 = vmax.f32 %v2193_v20, 0.0  ;;  %835 = vst [vmem:[#allocation2 + $0x168] sm:$0xff] %v783_v0  ;;  %836 = vst [vmem:[#allocation2 + $0x170] sm:$0xff] %v784_v62  ;;  %v2195_v25 = vld [vmem:[#allocation14_spill] sm:$0xff] }
 0x192   : > { %v786_v24 = vmax.f32 %v734_v4, %v2190_v14  ;;  %v787_v51 = vmax.f32 %v735_v15, %v2192_v36  ;;  %837 = vst [vmem:[#allocation2 + $0x178] sm:$0xff] %v785_v9  ;;  %v2196_v54 = vmax.f32 %v2195_v25, 0.0 }
 0x193   : > { %v788_v33 = vmax.f32 %v736_v59, %v2194_v18 }
 0x194   : > { %v789_v45 = vmax.f32 %v737_v57, %v2196_v54  ;;  %838 = vst [vmem:[#allocation2 + $0x180] sm:$0x3] %v786_v24  ;;  %839 = vst [vmem:[#allocation2 + $0x188] sm:$0x3] %v787_v51 }
 0x195   : > { %840 = vst [vmem:[#allocation2 + $0x190] sm:$0x3] %v788_v33 }
 0x196   : > { %841 = vst [vmem:[#allocation2 + $0x198] sm:$0x3] %v789_v45 }
 0x197 PF: > { %p1175_p11 = scmp.ne.s32.totalorder %s1388_s13, 3 }
 0x198   : > { %v847_v21 = vld [vmem:[#allocation2 + $0x8] sm:$0xff] (!%p1175_p11)  ;;  %v848_v55 = vld [vmem:[#allocation2 + $0x10] sm:$0xff] (!%p1175_p11)  ;;  %v853_v53 = vld [vmem:[#allocation2 + $0x38] sm:$0xff] (!%p1175_p11) }
 0x199   : > { %845 = sbr.rel (%p1175_p11) target bundleno = 431 (0x1af), region = 52  ;;  %v846_v23 = vld [vmem:[#allocation2] sm:$0xff] (!%p1175_p11)  ;;  %v856_v30 = vld [vmem:[#allocation2 + $0x50] sm:$0xff] (!%p1175_p11)  ;;  %v859_v12 = vld [vmem:[#allocation2 + $0x68] sm:$0xff] (!%p1175_p11) }
 0x19a   : > { %v1204_v27 = vpack.c.bf16 (!%p1175_p11), %v847_v21, %v846_v23  ;;  %v849_v40 = vld [vmem:[#allocation2 + $0x18] sm:$0xff] (!%p1175_p11)  ;;  %v858_v8 = vld [vmem:[#allocation2 + $0x60] sm:$0xff] (!%p1175_p11)  ;;  %v860_v3 = vld [vmem:[#allocation2 + $0x70] sm:$0xff] (!%p1175_p11) }
 0x19b   : > { %v850_v37 = vld [vmem:[#allocation2 + $0x20] sm:$0xff] (!%p1175_p11)  ;;  %v851_v47 = vld [vmem:[#allocation2 + $0x28] sm:$0xff] (!%p1175_p11)  ;;  %v1205_v26 = vpack.c.bf16 (!%p1175_p11), %v849_v40, %v848_v55  ;;  %v1210_v39 = vpack.c.bf16 (!%p1175_p11), %v859_v12, %v858_v8  ;;  %v861_v56 = vld [vmem:[#allocation2 + $0x78] sm:$0xff] (!%p1175_p11) }
 0x19c   : > { %v1206_v28 = vpack.c.bf16 (!%p1175_p11), %v851_v47, %v850_v37  ;;  %v852_v58 = vld [vmem:[#allocation2 + $0x30] sm:$0xff] (!%p1175_p11)  ;;  %v854_v17 = vld [vmem:[#allocation2 + $0x40] sm:$0xff] (!%p1175_p11)  ;;  %1058 = vst [vmem:[%s2064_s3] sm:$0xff] (!%p1175_p11), %v1204_v27  ;;  %v863_v5 = vld [vmem:[#allocation2 + $0x88] sm:$0xff] (!%p1175_p11)  ;;  %v1211_v41 = vpack.c.bf16 (!%p1175_p11), %v861_v56, %v860_v3 }
 0x19d   : > { %v1207_v63 = vpack.c.bf16 (!%p1175_p11), %v853_v53, %v852_v58  ;;  %v855_v50 = vld [vmem:[#allocation2 + $0x48] sm:$0xff] (!%p1175_p11)  ;;  %v857_v60 = vld [vmem:[#allocation2 + $0x58] sm:$0xff] (!%p1175_p11)  ;;  %1059 = vst [vmem:[%s2064_s3 + $0x8] sm:$0xff] (!%p1175_p11), %v1205_v26  ;;  %v862_v29 = vld [vmem:[#allocation2 + $0x80] sm:$0xff] (!%p1175_p11) }
 0x19e   : > { %1060 = vst [vmem:[%s2064_s3 + $0x10] sm:$0xff] (!%p1175_p11), %v1206_v28  ;;  %v1208_v35 = vpack.c.bf16 (!%p1175_p11), %v855_v50, %v854_v17  ;;  %v1209_v13 = vpack.c.bf16 (!%p1175_p11), %v857_v60, %v856_v30  ;;  %v1212_v34 = vpack.c.bf16 (!%p1175_p11), %v863_v5, %v862_v29  ;;  %v864_v38 = vld [vmem:[#allocation2 + $0x90] sm:$0xff] (!%p1175_p11)  ;;  %v865_v44 = vld [vmem:[#allocation2 + $0x98] sm:$0xff] (!%p1175_p11)  ;;  %v866_v2 = vld [vmem:[#allocation2 + $0xa0] sm:$0xff] (!%p1175_p11) }
 0x19f   : > { %1061 = vst [vmem:[%s2064_s3 + $0x18] sm:$0xff] (!%p1175_p11), %v1207_v63  ;;  %1064 = vst [vmem:[%s2064_s3 + $0x30] sm:$0xff] (!%p1175_p11), %v1210_v39  ;;  %v1213_v42 = vpack.c.bf16 (!%p1175_p11), %v865_v44, %v864_v38  ;;  %v867_v43 = vld [vmem:[#allocation2 + $0xa8] sm:$0xff] (!%p1175_p11)  ;;  %v868_v46 = vld [vmem:[#allocation2 + $0xb0] sm:$0xff] (!%p1175_p11) }
 0x1a0   : > { %1062 = vst [vmem:[%s2064_s3 + $0x20] sm:$0xff] %v1208_v35  ;;  %1063 = vst [vmem:[%s2064_s3 + $0x28] sm:$0xff] %v1209_v13  ;;  %v869_v6 = vld [vmem:[#allocation2 + $0xb8] sm:$0xff]  ;;  %v1214_v52 = vpack.c.bf16 %v867_v43, %v866_v2  ;;  %v870_v48 = vld [vmem:[#allocation2 + $0xc0] sm:$0xff] }
 0x1a1   : > { %1065 = vst [vmem:[%s2064_s3 + $0x38] sm:$0xff] %v1211_v41  ;;  %1066 = vst [vmem:[%s2064_s3 + $0x40] sm:$0xff] %v1212_v34  ;;  %v1215_v16 = vpack.c.bf16 %v869_v6, %v868_v46  ;;  %v871_v22 = vld [vmem:[#allocation2 + $0xc8] sm:$0xff]  ;;  %v872_v49 = vld [vmem:[#allocation2 + $0xd0] sm:$0xff] }
 0x1a2   : > { %1067 = vst [vmem:[%s2064_s3 + $0x48] sm:$0xff] %v1213_v42  ;;  %v1216_v11 = vpack.c.bf16 %v871_v22, %v870_v48  ;;  %v873_v32 = vld [vmem:[#allocation2 + $0xd8] sm:$0xff]  ;;  %v874_v0 = vld [vmem:[#allocation2 + $0xe0] sm:$0xff]  ;;  %v875_v7 = vld [vmem:[#allocation2 + $0xe8] sm:$0xff] }
 0x1a3   : > { %1068 = vst [vmem:[%s2064_s3 + $0x50] sm:$0xff] %v1214_v52  ;;  %1069 = vst [vmem:[%s2064_s3 + $0x58] sm:$0xff] %v1215_v16  ;;  %v1217_v61 = vpack.c.bf16 %v873_v32, %v872_v49  ;;  %v1218_v62 = vpack.c.bf16 %v875_v7, %v874_v0  ;;  %v876_v31 = vld [vmem:[#allocation2 + $0xf0] sm:$0xff]  ;;  %v877_v19 = vld [vmem:[#allocation2 + $0xf8] sm:$0xff] }
 0x1a4   : > { %v878_v9 = vld [vmem:[#allocation2 + $0x100] sm:$0xff]  ;;  %1070 = vst [vmem:[%s2064_s3 + $0x60] sm:$0xff] %v1216_v11  ;;  %v1219_v4 = vpack.c.bf16 %v877_v19, %v876_v31  ;;  %v879_v15 = vld [vmem:[#allocation2 + $0x108] sm:$0xff]  ;;  %v880_v59 = vld [vmem:[#allocation2 + $0x110] sm:$0xff] }
 0x1a5   : > { %v881_v10 = vld [vmem:[#allocation2 + $0x118] sm:$0xff]  ;;  %1071 = vst [vmem:[%s2064_s3 + $0x68] sm:$0xff] %v1217_v61  ;;  %1072 = vst [vmem:[%s2064_s3 + $0x70] sm:$0xff] %v1218_v62  ;;  %v1220_v14 = vpack.c.bf16 %v879_v15, %v878_v9  ;;  %v882_v1 = vld [vmem:[#allocation2 + $0x120] sm:$0xff] }
 0x1a6   : > { %v1221_v24 = vpack.c.bf16 %v881_v10, %v880_v59  ;;  %v883_v36 = vld [vmem:[#allocation2 + $0x128] sm:$0xff]  ;;  %v884_v51 = vld [vmem:[#allocation2 + $0x130] sm:$0xff]  ;;  %1073 = vst [vmem:[%s2064_s3 + $0x78] sm:$0xff] %v1219_v4  ;;  %v885_v18 = vld [vmem:[#allocation2 + $0x138] sm:$0xff] }
 0x1a7   : > { %v1222_v20 = vpack.c.bf16 %v883_v36, %v882_v1  ;;  %v886_v33 = vld [vmem:[#allocation2 + $0x140] sm:$0xff]  ;;  %v887_v57 = vld [vmem:[#allocation2 + $0x148] sm:$0xff]  ;;  %1074 = vst [vmem:[%s2064_s3 + $0x80] sm:$0xff] %v1220_v14  ;;  %v1223_v25 = vpack.c.bf16 %v885_v18, %v884_v51  ;;  %v888_v45 = vld [vmem:[#allocation2 + $0x150] sm:$0xff] }
 0x1a8   : > { %1075 = vst [vmem:[%s2064_s3 + $0x88] sm:$0xff] %v1221_v24  ;;  %v1224_v54 = vpack.c.bf16 %v887_v57, %v886_v33  ;;  %v889_v23 = vld [vmem:[#allocation2 + $0x158] sm:$0xff]  ;;  %v890_v21 = vld [vmem:[#allocation2 + $0x160] sm:$0xff]  ;;  %v891_v27 = vld [vmem:[#allocation2 + $0x168] sm:$0xff] }
 0x1a9   : > { %1076 = vst [vmem:[%s2064_s3 + $0x90] sm:$0xff] %v1222_v20  ;;  %v1225_v55 = vpack.c.bf16 %v889_v23, %v888_v45  ;;  %v892_v40 = vld [vmem:[#allocation2 + $0x170] sm:$0xff]  ;;  %v893_v37 = vld [vmem:[#allocation2 + $0x178] sm:$0xff]  ;;  %1077 = vst [vmem:[%s2064_s3 + $0x98] sm:$0xff] %v1223_v25  ;;  %v1226_v47 = vpack.c.bf16 %v891_v27, %v890_v21 }
 0x1aa   : > { %1078 = vst [vmem:[%s2064_s3 + $0xa0] sm:$0xff] %v1224_v54  ;;  %v1227_v26 = vpack.c.bf16 %v893_v37, %v892_v40  ;;  %v894_v28 = vld [vmem:[#allocation2 + $0x180] sm:$0x3]  ;;  %v895_v58 = vld [vmem:[#allocation2 + $0x188] sm:$0x3] }
 0x1ab   : > { %v896_v53 = vld [vmem:[#allocation2 + $0x190] sm:$0x3]  ;;  %1079 = vst [vmem:[%s2064_s3 + $0xa8] sm:$0xff] %v1225_v55  ;;  %v1228_v17 = vpack.c.bf16 %v895_v58, %v894_v28  ;;  %v897_v63 = vld [vmem:[#allocation2 + $0x198] sm:$0x3]  ;;  %1080 = vst [vmem:[%s2064_s3 + $0xb0] sm:$0xff] %v1226_v47 }
 0x1ac   : > { %1081 = vst [vmem:[%s2064_s3 + $0xb8] sm:$0xff] %v1227_v26  ;;  %v1229_v50 = vpack.c.bf16 %v897_v63, %v896_v53 }
 0x1ad   : > { %1082 = vst [vmem:[%s2064_s3 + $0xc0] sm:$0x11] %v1228_v17 }
 0x1ae   : > { %1083 = vst [vmem:[%s2064_s3 + $0xc8] sm:$0x11] %v1229_v50 }
 0x1af PF: > { %s15_s12 = sadd.s32 1, %s1354_s12  }
 0x1b0   : > { %p12_p12 = scmp.ge.s32.totalorder %s15_s12, 6  }
 0x1b2   :  { %14 = sbr.rel (!%p12_p12) target bundleno = 2 (0x2), region = 79 }
 0x1b9   :  { %1095 = vsyncpa [#allocation4], 1 }
 0x1ba   :  { %1097 = vsyncpa [#allocation4 + $0x1], 1 }
 0x1bb   :  { %1098 = vsyncpa [#allocation6], 1 }

// kernel: vgg_forward.5
= control target key start
LH: loop header
LB: loop body
LE: loop exit
PB: predicated region body
PF: predicated region fallthrough
CT: control target
= control target key end

     0   :  { %v153_v36 = vlaneseq  ;;  %v1544_v37 = vmov 1966171168   ;;  %vm1136_vm0 = vcmask 1024   ;;  %s2082_s1 = inlined_call_operand.vmem [shape: bf16[1024,256], index: 1, kind: input, shape index: {}]   ;;  %s2083_s0 = inlined_call_operand.vmem [shape: bf16[2,1024], index: 0, kind: input, shape index: {}]   ;;  %s2084_s3 = inlined_call_operand.vmem [shape: f32[256,1], index: 3, kind: input, shape index: {}]   ;;  %s2085_s2 = inlined_call_operand.vmem [shape: f32[1,256], index: 2, kind: input, shape index: {}]   ;;  %s2086_s4 = inlined_call_operand.<no memory space> [shape: f32[1,1], index: 4, kind: input, shape index: {}]   ;;  %s2087_s5 = inlined_call_operand.vmem [shape: f32[2,1], index: 5, kind: output, shape index: {}]  }
   0x1   :  { %v1351_v0 = vld [vmem:[%s2082_s1 + $0x4] ss:$8 sps:$4 sm:$0xff]   ;;  %v1355_v2 = vld [vmem:[%s2082_s1] ss:$8 sps:$4 sm:$0xff]   ;;  %v1357_v4 = vld [vmem:[%s2082_s1 + $0x14] ss:$8 sps:$4 sm:$0xff]   ;;  %v166_v38 = vunpack.c.l.s4 %v1544_v37 }
   0x2   :  { %v1353_v1 = vld [vmem:[%s2082_s1 + $0x204] ss:$8 sps:$4 sm:$0xff]   ;;  %861 = vmatprep.subr.bf16.mxu1 %v1351_v0  ;;  %v1356_v3 = vld [vmem:[%s2082_s1 + $0x200] ss:$8 sps:$4 sm:$0xff]   ;;  %v1359_v5 = vld [vmem:[%s2082_s1 + $0x214] ss:$8 sps:$4 sm:$0xff]  }
   0x3   :  { %943 = vmatprep.subr.bf16.mxu0 %v1353_v1  ;;  %862 = vmatpush1.bf16.msra.mxu1 %v1355_v2  ;;  %v1361_v6 = vld [vmem:[%s2082_s1 + $0x10] ss:$8 sps:$4 sm:$0xff]   ;;  %v1363_v8 = vld [vmem:[%s2082_s1 + $0x24] ss:$8 sps:$4 sm:$0xff]   ;;  %v1367_v10 = vld [vmem:[%s2082_s1 + $0x20] ss:$8 sps:$4 sm:$0xff]   ;;  %v167_v43 = vunpack.c.0.s8 %v166_v38 }
   0x4   :  { %944 = vmatpush1.bf16.msra.mxu0 %v1356_v3  ;;  %863 = vmatprep.subr.bf16.mxu1 %v1357_v4  ;;  %v1362_v7 = vld [vmem:[%s2082_s1 + $0x210] ss:$8 sps:$4 sm:$0xff]   ;;  %v1365_v9 = vld [vmem:[%s2082_s1 + $0x224] ss:$8 sps:$4 sm:$0xff]   ;;  %v1368_v11 = vld [vmem:[%s2082_s1 + $0x220] ss:$8 sps:$4 sm:$0xff]  }
   0x5   :  { %945 = vmatprep.subr.bf16.mxu0 %v1359_v5  ;;  %v1369_v12 = vld [vmem:[%s2082_s1 + $0x34] ss:$8 sps:$4 sm:$0xff]   ;;  %v1373_v14 = vld [vmem:[%s2082_s1 + $0x30] ss:$8 sps:$4 sm:$0xff]   ;;  %v1375_v16 = vld [vmem:[%s2082_s1 + $0x44] ss:$8 sps:$4 sm:$0xff]  }
   0x6   :  { %v1371_v13 = vld [vmem:[%s2082_s1 + $0x234] ss:$8 sps:$4 sm:$0xff]   ;;  %v1374_v15 = vld [vmem:[%s2082_s1 + $0x230] ss:$8 sps:$4 sm:$0xff]   ;;  %v1377_v17 = vld [vmem:[%s2082_s1 + $0x244] ss:$8 sps:$4 sm:$0xff]  }
   0x7   :  { %864 = vmatpush1.bf16.msra.mxu1 %v1361_v6  ;;  %v1379_v18 = vld [vmem:[%s2082_s1 + $0x40] ss:$8 sps:$4 sm:$0xff]   ;;  %v1381_v20 = vld [vmem:[%s2082_s1 + $0x54] ss:$8 sps:$4 sm:$0xff]   ;;  %v1385_v22 = vld [vmem:[%s2082_s1 + $0x50] ss:$8 sps:$4 sm:$0xff]  }
   0x8   :  { %946 = vmatpush1.bf16.msra.mxu0 %v1362_v7  ;;  %865 = vmatprep.subr.bf16.mxu1 %v1363_v8  ;;  %v1380_v19 = vld [vmem:[%s2082_s1 + $0x240] ss:$8 sps:$4 sm:$0xff]   ;;  %v1383_v21 = vld [vmem:[%s2082_s1 + $0x254] ss:$8 sps:$4 sm:$0xff]   ;;  %v1386_v23 = vld [vmem:[%s2082_s1 + $0x250] ss:$8 sps:$4 sm:$0xff]  }
   0x9   :  { %947 = vmatprep.subr.bf16.mxu0 %v1365_v9  ;;  %v1387_v24 = vld [vmem:[%s2082_s1 + $0x64] ss:$8 sps:$4 sm:$0xff]   ;;  %v1391_v26 = vld [vmem:[%s2082_s1 + $0x60] ss:$8 sps:$4 sm:$0xff]   ;;  %v1393_v28 = vld [vmem:[%s2082_s1 + $0x74] ss:$8 sps:$4 sm:$0xff]  }
   0xa   :  { %v1389_v25 = vld [vmem:[%s2082_s1 + $0x264] ss:$8 sps:$4 sm:$0xff]   ;;  %v1392_v27 = vld [vmem:[%s2082_s1 + $0x260] ss:$8 sps:$4 sm:$0xff]   ;;  %v1395_v29 = vld [vmem:[%s2082_s1 + $0x274] ss:$8 sps:$4 sm:$0xff]  }
   0xb   :  { %866 = vmatpush1.bf16.msra.mxu1 %v1367_v10  ;;  %v1397_v30 = vld [vmem:[%s2082_s1 + $0x70] ss:$8 sps:$4 sm:$0xff]   ;;  %v1399_v32 = vld [vmem:[%s2082_s1 + $0x84] ss:$8 sps:$4 sm:$0xff]   ;;  %v1403_v34 = vld [vmem:[%s2082_s1 + $0x80] ss:$8 sps:$4 sm:$0xff]  }
   0xc   :  { %948 = vmatpush1.bf16.msra.mxu0 %v1368_v11  ;;  %867 = vmatprep.subr.bf16.mxu1 %v1369_v12  ;;  %v1398_v31 = vld [vmem:[%s2082_s1 + $0x270] ss:$8 sps:$4 sm:$0xff]   ;;  %v1401_v33 = vld [vmem:[%s2082_s1 + $0x284] ss:$8 sps:$4 sm:$0xff]   ;;  %v1404_v35 = vld [vmem:[%s2082_s1 + $0x280] ss:$8 sps:$4 sm:$0xff]  }
   0xd   :  { %949 = vmatprep.subr.bf16.mxu0 %v1371_v13  ;;  %v1405_v39 = vld [vmem:[%s2082_s1 + $0x94] ss:$8 sps:$4 sm:$0xff]   ;;  %v1409_v41 = vld [vmem:[%s2082_s1 + $0x90] ss:$8 sps:$4 sm:$0xff]   ;;  %v1692_v42 = vshrl.u32 %v153_v36, 7  ;;  %v22_v52 = vld [vmem:[%s2083_s0] sm:$0xff] }
   0xe   :  { %v1407_v40 = vld [vmem:[%s2082_s1 + $0x294] ss:$8 sps:$4 sm:$0xff]   ;;  %v1410_v44 = vld [vmem:[%s2082_s1 + $0x290] ss:$8 sps:$4 sm:$0xff]   ;;  %v1411_v45 = vld [vmem:[%s2082_s1 + $0xa4] ss:$8 sps:$4 sm:$0xff]   ;;  %v164_v55 = vcombine.high %v22_v52, %v22_v52 }
   0xf   :  { %868 = vmatpush1.bf16.msra.mxu1 %v1373_v14  ;;  %v1413_v46 = vld [vmem:[%s2082_s1 + $0x2a4] ss:$8 sps:$4 sm:$0xff]   ;;  %v1415_v47 = vld [vmem:[%s2082_s1 + $0xa0] ss:$8 sps:$4 sm:$0xff]   ;;  %v170_v49 = vsub.s32 %v167_v43, %v1692_v42  ;;  %v1417_v50 = vld [vmem:[%s2082_s1 + $0xb4] ss:$8 sps:$4 sm:$0xff]  }
  0x10   :  { %950 = vmatpush1.bf16.msra.mxu0 %v1374_v15  ;;  %869 = vmatprep.subr.bf16.mxu1 %v1375_v16  ;;  %v1416_v48 = vld [vmem:[%s2082_s1 + $0x2a0] ss:$8 sps:$4 sm:$0xff]   ;;  %v1419_v51 = vld [vmem:[%s2082_s1 + $0x2b4] ss:$8 sps:$4 sm:$0xff]   ;;  %v1421_v53 = vld [vmem:[%s2082_s1 + $0xb0] ss:$8 sps:$4 sm:$0xff]  }
  0x11   :  { %951 = vmatprep.subr.bf16.mxu0 %v1377_v17  ;;  %v171_v54 = vrot.slane %v22_v52, %v170_v49  ;;  %v1422_v56 = vld [vmem:[%s2082_s1 + $0x2b0] ss:$8 sps:$4 sm:$0xff]   ;;  %v1423_v57 = vld [vmem:[%s2082_s1 + $0xc4] ss:$8 sps:$4 sm:$0xff]   ;;  %v178_v60 = vrot.slane %v164_v55, %v170_v49  ;;  %v1427_v61 = vld [vmem:[%s2082_s1 + $0xc0] ss:$8 sps:$4 sm:$0xff]  }
  0x12   :  { %v1425_v58 = vld [vmem:[%s2082_s1 + $0x2c4] ss:$8 sps:$4 sm:$0xff]   ;;  %v1428_v0 = vld [vmem:[%s2082_s1 + $0x2c0] ss:$8 sps:$4 sm:$0xff]   ;;  %v1429_v1 = vld [vmem:[%s2082_s1 + $0xd4] ss:$8 sps:$4 sm:$0xff]  }
  0x13   :  { %870 = vmatpush1.bf16.msra.mxu1 %v1379_v18  ;;  %v179_v59 = vcombine.high %v171_v54, %v171_v54  ;;  %v180_v63 = vcombine.high %v178_v60, %v178_v60  ;;  %v1431_v2 = vld [vmem:[%s2082_s1 + $0x2d4] ss:$8 sps:$4 sm:$0xff]   ;;  %v1433_v4 = vld [vmem:[%s2082_s1 + $0xd0] ss:$8 sps:$4 sm:$0xff]   ;;  %v1435_v6 = vld [vmem:[%s2082_s1 + $0xe4] ss:$8 sps:$4 sm:$0xff]   ;;  %v1782_v17 = vrot.slane %v171_v54, %v170_v49  ;;  %v1784_v18 = vrot.slane %v178_v60, %v170_v49 }
  0x14   :  { %952 = vmatpush1.bf16.msra.mxu0 %v1380_v19  ;;  %871 = vmatprep.subr.bf16.mxu1 %v1381_v20  ;;  %v1434_v5 = vld [vmem:[%s2082_s1 + $0x2d0] ss:$8 sps:$4 sm:$0xff]   ;;  %v1437_v7 = vld [vmem:[%s2082_s1 + $0x2e4] ss:$8 sps:$4 sm:$0xff]   ;;  %v1439_v8 = vld [vmem:[%s2082_s1 + $0xe0] ss:$8 sps:$4 sm:$0xff]  }
  0x15   :  { %953 = vmatprep.subr.bf16.mxu0 %v1383_v21  ;;  %v201_v62 = vrot.slane %v179_v59, %v170_v49  ;;  %v208_v3 = vrot.slane %v180_v63, %v170_v49  ;;  %v1440_v9 = vld [vmem:[%s2082_s1 + $0x2e0] ss:$8 sps:$4 sm:$0xff]   ;;  %v1441_v10 = vld [vmem:[%s2082_s1 + $0xf4] ss:$8 sps:$4 sm:$0xff]   ;;  %v1445_v12 = vld [vmem:[%s2082_s1 + $0xf0] ss:$8 sps:$4 sm:$0xff]  }
  0x16   :  { %v1443_v11 = vld [vmem:[%s2082_s1 + $0x2f4] ss:$8 sps:$4 sm:$0xff]   ;;  %v1446_v13 = vld [vmem:[%s2082_s1 + $0x2f0] ss:$8 sps:$4 sm:$0xff]   ;;  %v1449_v14 = vld [vmem:[%s2082_s1 + $0x104] ss:$8 sps:$4 sm:$0xff]  }
  0x17   :  { %872 = vmatpush1.bf16.msra.mxu1 %v1385_v22  ;;  %893 = vmatprep.mubr.bf16.mxu1 %v201_v62  ;;  %v1453_v15 = vld [vmem:[%s2082_s1 + $0x304] ss:$8 sps:$4 sm:$0xff]   ;;  %v1447_v16 = vld [vmem:[%s2082_s1 + $0x100] ss:$8 sps:$4 sm:$0xff]   ;;  %v1456_v20 = vld [vmem:[%s2082_s1 + $0x114] ss:$8 sps:$4 sm:$0xff]   ;;  %v211_v22 = vcombine.high %v201_v62, %v201_v62 }
  0x18   :  { %954 = vmatpush1.bf16.msra.mxu0 %v1386_v23  ;;  %873 = vmatprep.subr.bf16.mxu1 %v1387_v24  ;;  %v1451_v19 = vld [vmem:[%s2082_s1 + $0x300] ss:$8 sps:$4 sm:$0xff]   ;;  %v1459_v21 = vld [vmem:[%s2082_s1 + $0x314] ss:$8 sps:$4 sm:$0xff]   ;;  %v212_v23 = vcombine.high %v208_v3, %v208_v3  ;;  %v1454_v24 = vld [vmem:[%s2082_s1 + $0x110] ss:$8 sps:$4 sm:$0xff]  }
  0x19   :  { %955 = vmatprep.subr.bf16.mxu0 %v1389_v25  ;;  %975 = vmatprep.mubr.bf16.mxu0 %v208_v3  ;;  %v1457_v25 = vld [vmem:[%s2082_s1 + $0x310] ss:$8 sps:$4 sm:$0xff]   ;;  %v1472_v36 = vld [vmem:[%s2082_s1 + $0x140] ss:$8 sps:$4 sm:$0xff]   ;;  %v1480_v38 = vld [vmem:[%s2082_s1 + $0x154] ss:$8 sps:$4 sm:$0xff]  }
  0x1a   :  { %v1475_v37 = vld [vmem:[%s2082_s1 + $0x340] ss:$8 sps:$4 sm:$0xff]   ;;  %v1486_v43 = vld [vmem:[%s2082_s1 + $0x164] ss:$8 sps:$4 sm:$0xff]   ;;  %v1490_v49 = vld [vmem:[%s2082_s1 + $0x170] ss:$8 sps:$4 sm:$0xff]  }
  0x1b   :  { %874 = vmatpush1.bf16.msra.mxu1 %v1391_v26  ;;  %v1462_v26 = vld [vmem:[%s2082_s1 + $0x124] ss:$8 sps:$4 sm:$0xff]   ;;  %v1499_v54 = vld [vmem:[%s2082_s1 + $0x380] ss:$8 sps:$4 sm:$0xff]   ;;  %v1504_v55 = vld [vmem:[%s2082_s1 + $0x194] ss:$8 sps:$4 sm:$0xff]  }
  0x1c   :  { %956 = vmatpush1.bf16.msra.mxu0 %v1392_v27  ;;  %875 = vmatprep.subr.bf16.mxu1 %v1393_v28  ;;  %v1465_v27 = vld [vmem:[%s2082_s1 + $0x324] ss:$8 sps:$4 sm:$0xff]   ;;  %v1460_v28 = vld [vmem:[%s2082_s1 + $0x120] ss:$8 sps:$4 sm:$0xff]   ;;  %v1516_v63 = vld [vmem:[%s2082_s1 + $0x1b4] ss:$8 sps:$4 sm:$0xff]  }
  0x1d   :  { %957 = vmatprep.subr.bf16.mxu0 %v1395_v29  ;;  %v1463_v29 = vld [vmem:[%s2082_s1 + $0x320] ss:$8 sps:$4 sm:$0xff]   ;;  %v1501_v52 = vld [vmem:[%s2082_s1 + $0x384] ss:$8 sps:$4 sm:$0xff]  }
  0x1e   :  { %v1510_v59 = vld [vmem:[%s2082_s1 + $0x1a4] ss:$8 sps:$4 sm:$0xff]   ;;  %v1511_v62 = vld [vmem:[%s2082_s1 + $0x3a0] ss:$8 sps:$4 sm:$0xff]  }
  0x1f   :  { %876 = vmatpush1.bf16.msra.mxu1 %v1397_v30  ;;  %v1468_v30 = vld [vmem:[%s2082_s1 + $0x134] ss:$8 sps:$4 sm:$0xff]   ;;  %v1513_v60 = vld [vmem:[%s2082_s1 + $0x3a4] ss:$8 sps:$4 sm:$0xff]  }
  0x20   :  { %958 = vmatpush1.bf16.msra.mxu0 %v1398_v31  ;;  %877 = vmatprep.subr.bf16.mxu1 %v1399_v32  ;;  %v1471_v31 = vld [vmem:[%s2082_s1 + $0x334] ss:$8 sps:$4 sm:$0xff]   ;;  %v1466_v32 = vld [vmem:[%s2082_s1 + $0x130] ss:$8 sps:$4 sm:$0xff]   ;;  %v1522_v3 = vld [vmem:[%s2082_s1 + $0x1c4] ss:$8 sps:$4 sm:$0xff]  }
  0x21   :  { %959 = vmatprep.subr.bf16.mxu0 %v1401_v33  ;;  %v1469_v33 = vld [vmem:[%s2082_s1 + $0x330] ss:$8 sps:$4 sm:$0xff]  }
  0x23   :  { %878 = vmatpush1.bf16.msra.mxu1 %v1403_v34  ;;  %v1474_v34 = vld [vmem:[%s2082_s1 + $0x144] ss:$8 sps:$4 sm:$0xff]  }
  0x24   :  { %960 = vmatpush1.bf16.msra.mxu0 %v1404_v35  ;;  %879 = vmatprep.subr.bf16.mxu1 %v1405_v39  ;;  %v1477_v35 = vld [vmem:[%s2082_s1 + $0x344] ss:$8 sps:$4 sm:$0xff]   ;;  %v1483_v39 = vld [vmem:[%s2082_s1 + $0x354] ss:$8 sps:$4 sm:$0xff]  }
  0x25   :  { %961 = vmatprep.subr.bf16.mxu0 %v1407_v40  ;;  %v1478_v40 = vld [vmem:[%s2082_s1 + $0x150] ss:$8 sps:$4 sm:$0xff]  }
  0x27   :  { %880 = vmatpush1.bf16.msra.mxu1 %v1409_v41  ;;  %v1481_v41 = vld [vmem:[%s2082_s1 + $0x350] ss:$8 sps:$4 sm:$0xff]  }
  0x28   :  { %962 = vmatpush1.bf16.msra.mxu0 %v1410_v44  ;;  %881 = vmatprep.subr.bf16.mxu1 %v1411_v45  ;;  %v1489_v44 = vld [vmem:[%s2082_s1 + $0x364] ss:$8 sps:$4 sm:$0xff]   ;;  %v1484_v45 = vld [vmem:[%s2082_s1 + $0x160] ss:$8 sps:$4 sm:$0xff]  }
  0x29   :  { %963 = vmatprep.subr.bf16.mxu0 %v1413_v46  ;;  %v1487_v46 = vld [vmem:[%s2082_s1 + $0x360] ss:$8 sps:$4 sm:$0xff]  }
  0x2b   :  { %882 = vmatpush1.bf16.msra.mxu1 %v1415_v47  ;;  %v1492_v47 = vld [vmem:[%s2082_s1 + $0x174] ss:$8 sps:$4 sm:$0xff]  }
  0x2c   :  { %964 = vmatpush1.bf16.msra.mxu0 %v1416_v48  ;;  %883 = vmatprep.subr.bf16.mxu1 %v1417_v50  ;;  %v1495_v48 = vld [vmem:[%s2082_s1 + $0x374] ss:$8 sps:$4 sm:$0xff]   ;;  %v1493_v50 = vld [vmem:[%s2082_s1 + $0x370] ss:$8 sps:$4 sm:$0xff]  }
  0x2d   :  { %965 = vmatprep.subr.bf16.mxu0 %v1419_v51  ;;  %v1498_v51 = vld [vmem:[%s2082_s1 + $0x184] ss:$8 sps:$4 sm:$0xff]  }
  0x2f   :  { %884 = vmatpush1.bf16.msra.mxu1 %v1421_v53  ;;  %v1496_v53 = vld [vmem:[%s2082_s1 + $0x180] ss:$8 sps:$4 sm:$0xff]  }
  0x30   :  { %966 = vmatpush1.bf16.msra.mxu0 %v1422_v56  ;;  %885 = vmatprep.subr.bf16.mxu1 %v1423_v57  ;;  %v1507_v56 = vld [vmem:[%s2082_s1 + $0x394] ss:$8 sps:$4 sm:$0xff]   ;;  %v1502_v57 = vld [vmem:[%s2082_s1 + $0x190] ss:$8 sps:$4 sm:$0xff]  }
  0x31   :  { %967 = vmatprep.subr.bf16.mxu0 %v1425_v58  ;;  %v1505_v58 = vld [vmem:[%s2082_s1 + $0x390] ss:$8 sps:$4 sm:$0xff]  }
  0x33   :  { %886 = vmatpush1.bf16.msra.mxu1 %v1427_v61  ;;  %v1508_v61 = vld [vmem:[%s2082_s1 + $0x1a0] ss:$8 sps:$4 sm:$0xff]  }
  0x34   :  { %968 = vmatpush1.bf16.msra.mxu0 %v1428_v0  ;;  %887 = vmatprep.subr.bf16.mxu1 %v1429_v1  ;;  %v1519_v0 = vld [vmem:[%s2082_s1 + $0x3b4] ss:$8 sps:$4 sm:$0xff]   ;;  %v1514_v1 = vld [vmem:[%s2082_s1 + $0x1b0] ss:$8 sps:$4 sm:$0xff]  }
  0x35   :  { %969 = vmatprep.subr.bf16.mxu0 %v1431_v2  ;;  %v1517_v2 = vld [vmem:[%s2082_s1 + $0x3b0] ss:$8 sps:$4 sm:$0xff]  }
  0x37   :  { %888 = vmatpush1.bf16.msra.mxu1 %v1433_v4  ;;  %v1525_v4 = vld [vmem:[%s2082_s1 + $0x3c4] ss:$8 sps:$4 sm:$0xff]  }
  0x38   :  { %970 = vmatpush1.bf16.msra.mxu0 %v1434_v5  ;;  %889 = vmatprep.subr.bf16.mxu1 %v1435_v6  ;;  %v1520_v5 = vld [vmem:[%s2082_s1 + $0x1c0] ss:$8 sps:$4 sm:$0xff]  }
  0x39   :  { %971 = vmatprep.subr.bf16.mxu0 %v1437_v7  ;;  %v1523_v6 = vld [vmem:[%s2082_s1 + $0x3c0] ss:$8 sps:$4 sm:$0xff]   ;;  %v1528_v7 = vld [vmem:[%s2082_s1 + $0x1d4] ss:$8 sps:$4 sm:$0xff]  }
  0x3b   :  { %890 = vmatpush1.bf16.msra.mxu1 %v1439_v8  ;;  %v1531_v8 = vld [vmem:[%s2082_s1 + $0x3d4] ss:$8 sps:$4 sm:$0xff]  }
  0x3c   :  { %972 = vmatpush1.bf16.msra.mxu0 %v1440_v9  ;;  %891 = vmatprep.subr.bf16.mxu1 %v1441_v10  ;;  %v1526_v9 = vld [vmem:[%s2082_s1 + $0x1d0] ss:$8 sps:$4 sm:$0xff]  }
  0x3d   :  { %973 = vmatprep.subr.bf16.mxu0 %v1443_v11  ;;  %v1529_v10 = vld [vmem:[%s2082_s1 + $0x3d0] ss:$8 sps:$4 sm:$0xff]   ;;  %v1534_v11 = vld [vmem:[%s2082_s1 + $0x1e4] ss:$8 sps:$4 sm:$0xff]  }
  0x3f   :  { %892 = vmatpush1.bf16.msra.mxu1 %v1445_v12  ;;  %v1537_v12 = vld [vmem:[%s2082_s1 + $0x3e4] ss:$8 sps:$4 sm:$0xff]  }
  0x40   :  { %974 = vmatpush1.bf16.msra.mxu0 %v1446_v13  ;;  %902 = vmatprep.subr.bf16.mxu1 %v1449_v14  ;;  %v1532_v13 = vld [vmem:[%s2082_s1 + $0x1e0] ss:$8 sps:$4 sm:$0xff]  }
  0x41   :  { %984 = vmatprep.subr.bf16.mxu0 %v1453_v15  ;;  %v1535_v14 = vld [vmem:[%s2082_s1 + $0x3e0] ss:$8 sps:$4 sm:$0xff]   ;;  %v1540_v15 = vld [vmem:[%s2082_s1 + $0x1f4] ss:$8 sps:$4 sm:$0xff]  }
  0x42   :  { %894 = vmatmul.mubr.bf16.vlgmr.msra.gmra.mrb[0].mxu1 %v1782_v17 }
  0x43   :  { %976 = vmatmul.mubr.bf16.vlgmr.msra.gmra.mrb[0].mxu0 %v1784_v18  ;;  %903 = vmatpush1.bf16.msra.mxu1 %v1447_v16  ;;  %v1543_v16 = vld [vmem:[%s2082_s1 + $0x3f4] ss:$8 sps:$4 sm:$0xff]  }
  0x44   :  { %985 = vmatpush1.bf16.msra.mxu0 %v1451_v19  ;;  %904 = vmatprep.subr.bf16.mxu1 %v1456_v20  ;;  %v1043_v19 = vld [vmem:[%s2084_s3 + $0x80] sm:$0xff]  ;;  %v1044_v20 = vld [vmem:[%s2084_s3 + $0x88] sm:$0xff] }
  0x45   :  { %986 = vmatprep.subr.bf16.mxu0 %v1459_v21  ;;  %934 = vmatprep.mubr.bf16.mxu1 %v211_v22  ;;  %v1538_v21 = vld [vmem:[%s2082_s1 + $0x1f0] ss:$8 sps:$4 sm:$0xff]  }
  0x46   :  { %1016 = vmatprep.mubr.bf16.mxu0 %v212_v23  ;;  %v1541_v22 = vld [vmem:[%s2082_s1 + $0x3f0] ss:$8 sps:$4 sm:$0xff]   ;;  %v1306_v23 = vpack.c.bf16 %v1044_v20, %v1043_v19 }
  0x47   :  { %905 = vmatpush1.bf16.msra.mxu1 %v1454_v24  ;;  %v1027_v24 = vld [vmem:[%s2084_s3] sm:$0xff] }
  0x48   :  { %987 = vmatpush1.bf16.msra.mxu0 %v1457_v25  ;;  %906 = vmatprep.subr.bf16.mxu1 %v1462_v26  ;;  %v1028_v25 = vld [vmem:[%s2084_s3 + $0x8] sm:$0xff]  ;;  %v1045_v26 = vld [vmem:[%s2084_s3 + $0x90] sm:$0xff] }
  0x49   :  { %988 = vmatprep.subr.bf16.mxu0 %v1465_v27  ;;  %v1046_v27 = vld [vmem:[%s2084_s3 + $0x98] sm:$0xff] }
  0x4b   :  { %907 = vmatpush1.bf16.msra.mxu1 %v1460_v28  ;;  %v209_v28 = vcombine.high %v1782_v17, %v1782_v17  ;;  %v1047_v17 = vld [vmem:[%s2084_s3 + $0xa0] sm:$0xff] }
  0x4c   :  { %989 = vmatpush1.bf16.msra.mxu0 %v1463_v29  ;;  %908 = vmatprep.subr.bf16.mxu1 %v1468_v30  ;;  %v210_v29 = vcombine.high %v1784_v18, %v1784_v18  ;;  %v1308_v30 = vpack.c.bf16 %v1028_v25, %v1027_v24  ;;  %v1048_v18 = vld [vmem:[%s2084_s3 + $0xa8] sm:$0xff] }
  0x4d   :  { %990 = vmatprep.subr.bf16.mxu0 %v1471_v31  ;;  %v1310_v31 = vpack.c.bf16 %v1046_v27, %v1045_v26 }
  0x4f   :  { %909 = vmatpush1.bf16.msra.mxu1 %v1466_v32  ;;  %v1029_v32 = vld [vmem:[%s2084_s3 + $0x10] sm:$0xff] }
  0x50   :  { %991 = vmatpush1.bf16.msra.mxu0 %v1469_v33  ;;  %910 = vmatprep.subr.bf16.mxu1 %v1474_v34  ;;  %v1030_v33 = vld [vmem:[%s2084_s3 + $0x18] sm:$0xff] }
  0x51   :  { %992 = vmatprep.subr.bf16.mxu0 %v1477_v35  ;;  %v1312_v34 = vpack.c.bf16 %v1030_v33, %v1029_v32  ;;  %v1314_v35 = vpack.c.bf16 %v1048_v18, %v1047_v17 }
  0x53   :  { %911 = vmatpush1.bf16.msra.mxu1 %v1472_v36  ;;  %v1031_v36 = vld [vmem:[%s2084_s3 + $0x20] sm:$0xff] }
  0x54   :  { %993 = vmatpush1.bf16.msra.mxu0 %v1475_v37  ;;  %912 = vmatprep.subr.bf16.mxu1 %v1480_v38  ;;  %v1032_v37 = vld [vmem:[%s2084_s3 + $0x28] sm:$0xff]  ;;  %v1049_v38 = vld [vmem:[%s2084_s3 + $0xb0] sm:$0xff] }
  0x55   :  { %994 = vmatprep.subr.bf16.mxu0 %v1483_v39  ;;  %v1050_v39 = vld [vmem:[%s2084_s3 + $0xb8] sm:$0xff] }
  0x57   :  { %913 = vmatpush1.bf16.msra.mxu1 %v1478_v40  ;;  %v1316_v40 = vpack.c.bf16 %v1032_v37, %v1031_v36 }
  0x58   :  { %995 = vmatpush1.bf16.msra.mxu0 %v1481_v41  ;;  %914 = vmatprep.subr.bf16.mxu1 %v1486_v43  ;;  %v1318_v41 = vpack.c.bf16 %v1050_v39, %v1049_v38  ;;  %v1033_v43 = vld [vmem:[%s2084_s3 + $0x30] sm:$0xff] }
  0x59   :  { %996 = vmatprep.subr.bf16.mxu0 %v1489_v44  ;;  %v1034_v44 = vld [vmem:[%s2084_s3 + $0x38] sm:$0xff] }
  0x5b   :  { %915 = vmatpush1.bf16.msra.mxu1 %v1484_v45  ;;  %v1051_v45 = vld [vmem:[%s2084_s3 + $0xc0] sm:$0xff] }
  0x5c   :  { %997 = vmatpush1.bf16.msra.mxu0 %v1487_v46  ;;  %916 = vmatprep.subr.bf16.mxu1 %v1492_v47  ;;  %v1052_v46 = vld [vmem:[%s2084_s3 + $0xc8] sm:$0xff]  ;;  %v1320_v47 = vpack.c.bf16 %v1034_v44, %v1033_v43 }
  0x5d   :  { %998 = vmatprep.subr.bf16.mxu0 %v1495_v48  ;;  %v1322_v48 = vpack.c.bf16 %v1052_v46, %v1051_v45 }
  0x5f   :  { %917 = vmatpush1.bf16.msra.mxu1 %v1490_v49  ;;  %v1035_v49 = vld [vmem:[%s2084_s3 + $0x40] sm:$0xff] }
  0x60   :  { %999 = vmatpush1.bf16.msra.mxu0 %v1493_v50  ;;  %918 = vmatprep.subr.bf16.mxu1 %v1498_v51  ;;  %v1036_v50 = vld [vmem:[%s2084_s3 + $0x48] sm:$0xff]  ;;  %v1053_v51 = vld [vmem:[%s2084_s3 + $0xd0] sm:$0xff] }
  0x61   :  { %1000 = vmatprep.subr.bf16.mxu0 %v1501_v52  ;;  %v1054_v52 = vld [vmem:[%s2084_s3 + $0xd8] sm:$0xff] }
  0x63   :  { %919 = vmatpush1.bf16.msra.mxu1 %v1496_v53  ;;  %v1324_v53 = vpack.c.bf16 %v1036_v50, %v1035_v49 }
  0x64   :  { %1001 = vmatpush1.bf16.msra.mxu0 %v1499_v54  ;;  %920 = vmatprep.subr.bf16.mxu1 %v1504_v55  ;;  %v1326_v54 = vpack.c.bf16 %v1054_v52, %v1053_v51  ;;  %v1037_v55 = vld [vmem:[%s2084_s3 + $0x50] sm:$0xff] }
  0x65   :  { %1002 = vmatprep.subr.bf16.mxu0 %v1507_v56  ;;  %v1038_v56 = vld [vmem:[%s2084_s3 + $0x58] sm:$0xff] }
  0x67   :  { %921 = vmatpush1.bf16.msra.mxu1 %v1502_v57  ;;  %v1328_v57 = vpack.c.bf16 %v1038_v56, %v1037_v55 }
  0x68   :  { %1003 = vmatpush1.bf16.msra.mxu0 %v1505_v58  ;;  %922 = vmatprep.subr.bf16.mxu1 %v1510_v59  ;;  %v1055_v58 = vld [vmem:[%s2084_s3 + $0xe0] sm:$0xff]  ;;  %v1056_v59 = vld [vmem:[%s2084_s3 + $0xe8] sm:$0xff] }
  0x69   :  { %1004 = vmatprep.subr.bf16.mxu0 %v1513_v60  ;;  %v1330_v60 = vpack.c.bf16 %v1056_v59, %v1055_v58 }
  0x6b   :  { %923 = vmatpush1.bf16.msra.mxu1 %v1508_v61  ;;  %v1039_v61 = vld [vmem:[%s2084_s3 + $0x60] sm:$0xff] }
  0x6c   :  { %1005 = vmatpush1.bf16.msra.mxu0 %v1511_v62  ;;  %924 = vmatprep.subr.bf16.mxu1 %v1516_v63  ;;  %v1040_v62 = vld [vmem:[%s2084_s3 + $0x68] sm:$0xff] }
  0x6d   :  { %1006 = vmatprep.subr.bf16.mxu0 %v1519_v0  ;;  %v1332_v63 = vpack.c.bf16 %v1040_v62, %v1039_v61  ;;  %v1057_v0 = vld [vmem:[%s2084_s3 + $0xf0] sm:$0xff] }
  0x6f   :  { %925 = vmatpush1.bf16.msra.mxu1 %v1514_v1  ;;  %v1058_v1 = vld [vmem:[%s2084_s3 + $0xf8] sm:$0xff] }
  0x70   :  { %1007 = vmatpush1.bf16.msra.mxu0 %v1517_v2  ;;  %926 = vmatprep.subr.bf16.mxu1 %v1522_v3  ;;  %v1334_v2 = vpack.c.bf16 %v1058_v1, %v1057_v0  ;;  %v1041_v3 = vld [vmem:[%s2084_s3 + $0x70] sm:$0xff] }
  0x71   :  { %1008 = vmatprep.subr.bf16.mxu0 %v1525_v4  ;;  %v1042_v4 = vld [vmem:[%s2084_s3 + $0x78] sm:$0xff] }
  0x73   :  { %927 = vmatpush1.bf16.msra.mxu1 %v1520_v5  ;;  %v1336_v5 = vpack.c.bf16 %v1042_v4, %v1041_v3 }
  0x74   :  { %1009 = vmatpush1.bf16.msra.mxu0 %v1523_v6  ;;  %928 = vmatprep.subr.bf16.mxu1 %v1528_v7  ;;  %v155_v6 = vsub.s32 0, %v1692_v42  ;;  %v151_v7 = vld [vmem:[%s2085_s2] sm:$0x3] }
  0x75   :  { %1010 = vmatprep.subr.bf16.mxu0 %v1531_v8  ;;  %v159_v8 = vsub.s32 1, %v1692_v42  ;;  %v10_v42 = vstv %s2086_s4 }
  0x76   :  { %11 = vst [vmem:[#allocation2] sm:$0x1] %v10_v42 }
  0x77   :  { %929 = vmatpush1.bf16.msra.mxu1 %v1526_v9  ;;  %v156_v9 = vrot.slane %v151_v7, %v155_v6 }
  0x78   :  { %1011 = vmatpush1.bf16.msra.mxu0 %v1529_v10  ;;  %930 = vmatprep.subr.bf16.mxu1 %v1534_v11  ;;  %v160_v10 = vrot.slane %v151_v7, %v159_v8 }
  0x79   :  { %1012 = vmatprep.subr.bf16.mxu0 %v1537_v12 }
  0x7b   :  { %931 = vmatpush1.bf16.msra.mxu1 %v1532_v13 }
  0x7c   :  { %1013 = vmatpush1.bf16.msra.mxu0 %v1535_v14  ;;  %932 = vmatprep.subr.bf16.mxu1 %v1540_v15 }
  0x7d   :  { %1014 = vmatprep.subr.bf16.mxu0 %v1543_v16 }
  0x7f   :  { %933 = vmatpush1.bf16.msra.mxu1 %v1538_v21 }
  0x80   :  { %1015 = vmatpush1.bf16.msra.mxu0 %v1541_v22  ;;  %1307 = vmatprep.subr.bf16.mxu1 %v1306_v23 }
  0x82   :  { %935 = vmatmul.mubr.bf16.vlgmr.msra.gmra.mrb[0].mxu1 %v209_v28  ;;  %v1270_v28 = vld [vmem:[#allocation2] ss:$0 sm:$0xff] }
  0x83   :  { %1017 = vmatmul.mubr.bf16.vlgmr.msra.gmra.mrb[0].mxu0 %v210_v29  ;;  %1309 = vmatpush3.bf16.msra.mxu1 %v1308_v30 }
  0x84   :  { %1311 = vmatprep.subr.bf16.mxu1 %v1310_v31 }
  0x87   :  { %1313 = vmatpush3.bf16.msra.mxu1 %v1312_v34 }
  0x88   :  { %1315 = vmatprep.subr.bf16.mxu1 %v1314_v35 }
  0x8b   :  { %1317 = vmatpush3.bf16.msra.mxu1 %v1316_v40 }
  0x8c   :  { %1319 = vmatprep.subr.bf16.mxu1 %v1318_v41 }
  0x8f   :  { %1321 = vmatpush3.bf16.msra.mxu1 %v1320_v47 }
  0x90   :  { %1323 = vmatprep.subr.bf16.mxu1 %v1322_v48 }
  0x93   :  { %1325 = vmatpush3.bf16.msra.mxu1 %v1324_v53 }
  0x94   :  { %1327 = vmatprep.subr.bf16.mxu1 %v1326_v54 }
  0x97   :  { %1329 = vmatpush3.bf16.msra.mxu1 %v1328_v57 }
  0x98   :  { %1331 = vmatprep.subr.bf16.mxu1 %v1330_v60 }
  0x9b   :  { %1333 = vmatpush3.bf16.msra.mxu1 %v1332_v63 }
  0x9c   :  { %1335 = vmatprep.subr.bf16.mxu1 %v1334_v2 }
  0x9f   :  { %1337 = vmatpush3.bf16.msra.mxu1 %v1336_v5 }
 0x155   :  { %v936_v11 = vpop.f32.mrb[0].mxu1 }
 0x156   :  { %v1018_v12 = vpop.f32.mrb[0].mxu0  ;;  %v1338_v13 = vadd.f32 %v936_v11, %v156_v9  ;;  %v938_v14 = vpop.f32.mrb[1].mxu1 }
 0x157   :  { %v1020_v15 = vpop.f32.mrb[1].mxu0  ;;  %v1340_v16 = vadd.f32 %v938_v14, %v160_v10  ;;  %v940_v19 = vpop.f32.mrb[2].mxu1 }
 0x158   :  { %v1022_v20 = vpop.f32.mrb[2].mxu0  ;;  %v1339_v21 = vadd.f32 %v1338_v13, %v1018_v12  ;;  %v941_v22 = vpop.f32.mrb[3].mxu1 }
 0x159   :  { %v1023_v23 = vpop.f32.mrb[3].mxu0  ;;  %v1341_v24 = vadd.f32 %v1340_v16, %v1020_v15 }
 0x15a   :  { %v1025_v26 = vmax.f32 %v1339_v21, 0.0 }
 0x15b   :  { %v1026_v25 = vmax.f32 %v1341_v24, 0.0 }
 0x15d   :  { %1130 = vmatprep.mubr.f32.mxu1 %v1026_v25 }
 0x15e   :  { %1131 = vmatmul.mubr.f32.vlgmr.msra.gmra.mrb[4].mxu1 %v1025_v26 }
 0x231   :  { %v1303_v27 = vpop.f32.mrb[4].mxu1 }
 0x232   :  { %v1304_v29 = vpop.f32.mrb[5].mxu1 }
 0x233   :  { %v1305_v30 = vadd.f32 %v1304_v29, %v1303_v27 }
 0x235   :  { %v1133_v31 = vadd.f32 %v1305_v30, %v1270_v28 }
 0x237   :  { %1137 = vst.msk [vmem:[%s2087_s5] sm:$0x3] %vm1136_vm0, %v1133_v31 }

// kernel: vgg_forward.4
= control target key start
LH: loop header
LB: loop body
LE: loop exit
PB: predicated region body
PF: predicated region fallthrough
CT: control target
= control target key end

     0   :  { %s11237_s0 = inlined_call_operand.vmem [shape: bf16[2,25088], index: 0, kind: input, shape index: {}]   ;;  %s11238_s1 = inlined_call_operand.hbm [shape: bf16[25088,1024], index: 1, kind: input, shape index: {}]   ;;  %s11239_s2 = inlined_call_operand.hbm [shape: f32[1,1024], index: 2, kind: input, shape index: {}]   ;;  %s11240_s3 = inlined_call_operand.vmem [shape: bf16[2,1024], index: 3, kind: output, shape index: {}]  }
   0x1   :  { %11246 = sst [smem:[#allocation10_spill]] %s11238_s1 }
   0x2   :  { %8 = vsyncpa [#allocation4], 0 }
   0x3   :  { %10 = vsyncpa [#allocation4 + $0x1], 0 }
   0x4   :  { %11 = vsyncpa [#allocation6], 0 }
   0x5   :  { %13 = vsyncpa [#allocation6 + $0x1], 0  ;;  %s9899_s12 = smov 0   ;;  %s9901_s13 = smov 0  }
   0x6   :  { %s9903_s14 = smov 0   ;;  %s9905_s15 = smov 0  }
   0x7   :  { %s9907_s16 = smov 0   ;;  %s9909_s17 = smov 0  }
   0x8   :  { %s9911_s18 = smov 0   ;;  %s9913_s19 = smov 0  }
   0x9   :  { %s9915_s20 = smov 0   ;;  %s9917_s21 = smov 0  }
   0xa   :  { %s9919_s22 = smov 0  }
   0xb LB: > { %s28_s23 = sadd.s32 1, %s9861_s20  ;;  %p73_p1 = scmp.ne.s32.totalorder %s9849_s17, %s9845_s16  ;;  %s9869_s22 = sphi %s9919_s22, %s19_s22   ;;  %s9865_s21 = sphi %s9917_s21, %s11274_s21   ;;  %s9861_s20 = sphi %s9915_s20, %s11273_s20   ;;  %s9857_s19 = sphi %s9913_s19, %s11272_s19   ;;  %s9853_s18 = sphi %s9911_s18, %s11271_s18   ;;  %s9849_s17 = sphi %s9909_s17, %s11270_s17   ;;  %s9845_s16 = sphi %s9907_s16, %s11269_s16   ;;  %s9841_s15 = sphi %s9905_s15, %s11268_s15   ;;  %s9837_s14 = sphi %s9903_s14, %s11267_s14   ;;  %s9833_s13 = sphi %s9901_s13, %s11266_s13   ;;  %s9829_s12 = sphi %s9899_s12, %s11265_s12  }
   0xc   : > { %p9956_p0 = scmp.ge.s32.totalorder %s28_s23, 7  ;;  %p11242_p2 = scmp.eq.s32.totalorder %s9869_s22, 0 }
   0xd   : > { %p11241_p4 = scmp.lt.s32.totalorder %s9869_s22, 14  ;;  %s163_s27 = sand.u32 1, %s9849_s17  }
   0xe   : > { %s11276_s23 = smov (%p9956_p0, %s28_s23), 0  ;;  %p75_p3 = por %p11242_p2, %p73_p1 }
   0xf   : > { %s8258_s28 = smul.u32 7168, %s163_s27  ;;  %s7239_s29 = sshll.u32 %s9865_s21, 2 }
  0x10   : > { %s8152_s30 = smul.u32 3584, %s9861_s20  ;;  %p9977_p5 = pnand %p11241_p4, %p75_p3 }
  0x11   : > { %s167_s6 = scalar_lea.vmem [#allocation3], %s8258_s28  ;;  %s11249_s1 = sld [smem:[#allocation10_spill]] }
  0x12   : > { %s174_s5 = sadd.s32 %s8152_s30, %s7239_s29  ;;  %s177_s7 = sshll.u32 %s167_s6, 4  ;;  %s9981_s7 = int_to_ptr.vmem [resolvable:$true] %s177_s7 }
  0x13   : > { %s7241_s8 = sshll.u32 %s174_s5, 6  ;;  %s9989_s24 = scalar_lea.sflag [#allocation4], %s163_s27 }
  0x14   : > { %p9717_p8 = pneg %p9977_p5 }
  0x17   : > { %s9986_s11 = scalar_lea.hbm %s11249_s1, %s7241_s8  ;;  %s9720_s30 = scalar_lea.hbm %s11249_s1, 1605632 }
  0x18   : > { %s9715_s26 = scalar_lea.hbm %s9986_s11, 114688  ;;  %p9721_p11 = scmp.lt.u32.totalorder %s9986_s11, %s11249_s1 }
  0x19   : > { %p9716_p7 = scmp.ne.s32.totalorder %s9986_s11, %s9715_s26  ;;  %p9722_p12 = scmp.lt.u32.totalorder %s9720_s30, %s9715_s26 }
  0x1a   : > { %p9724_p1 = scmp.lt.u32.totalorder %s9715_s26, %s9986_s11 }
  0x1b   : > { %p9718_p9 = pnand %p9717_p8, %p9716_p7  ;;  %p9723_p13 = por %p9722_p12, %p9721_p11 }
  0x1d   : > { %p9719_p10 = pneg %p9718_p9  ;;  %p9725_p3 = por %p9724_p1, %p9723_p13 }
  0x1f   : > { %p9726_p4 = pnand %p9725_p3, %p9719_p10 }
  0x21   : > { %9729 = shalt.err (!%p9726_p4)
}
  0x22   : > { %s9730_s27 = scalar_lea.vmem %s9981_s7, 114688  ;;  %s9871_s8 = smov [#allocation3]  }
  0x23   : > { %p9731_p7 = scmp.ne.s32.totalorder %s9981_s7, %s9730_s27  ;;  %s9735_s9 = sshll.u32 %s9871_s8, 4  ;;  %s9736_s9 = int_to_ptr.vmem [resolvable:$false] %s9735_s9 }
  0x24   : > { %s9737_s10 = scalar_lea.vmem %s9736_s9, 229376  ;;  %p9738_p6 = scmp.lt.s32.totalorder %s9981_s7, %s9736_s9 }
  0x25   : > { %p9733_p9 = pnand %p9731_p7, %p9717_p8  ;;  %p9739_p11 = scmp.lt.s32.totalorder %s9737_s10, %s9730_s27 }
  0x27   : > { %p9734_p2 = pneg %p9733_p9  ;;  %p9740_p12 = por %p9739_p11, %p9738_p6 }
  0x29   : > { %p9741_p13 = pnand %p9740_p12, %p9734_p2 }
  0x2b   : > { %9744 = shalt.err (!%p9741_p13)
}
  0x2c   : > { %s9872_s26 = smov 512   ;;  %s9873_s28 = smov 256  }
  0x2d   : > { %s9874_s29 = smov 16   ;;  %p204_p2 = scmp.lt.s32.totalorder %s9869_s22, 15 }
  0x2e   : > { %8267 = dma.hbm_to_vmem [thread:$0]  (!%p9977_p5), %s9986_s11, 114688, %s9981_s7, %s9989_s24, %s9872_s26, %s9873_s28, %s9874_s29  }
  0x2f   : > { %p11250_p4 = scmp.ge.s32.totalorder %s9869_s22, 1  ;;  %s7235_s5 = sadd.s32 4294967295, %s9869_s22  }
  0x30   : > { %s31_s6 = sadd.s32 1, %s9865_s21  ;;  %p79_p8 = scmp.ne.s32.totalorder %s9845_s16, %s9841_s15 }
  0x31   : > { %p10020_p6 = pnand %p11250_p4, %p204_p2  ;;  %s11278_s6 = smov (!%p9956_p0, %s31_s6), %s9865_s21 }
  0x32   : > { %p10031_p10 = scmp.eq.s32.totalorder %s7235_s5, 0  ;;  %p33_p5 = scmp.ge.s32.totalorder %s11278_s6, 2 }
  0x33   : > { %s92_s24 = sadd.s32 1, %s9837_s14  ;;  %p99_p3 = scmp.ne.s32.totalorder %s9837_s14, %s9833_s13 }
  0x34   : > { %p10038_p1 = por %p10031_p10, %p79_p8  ;;  %s11280_s6 = smov (%p33_p5, %s11278_s6), 0 }
  0x35   : > { %11254 = sst [smem:[#allocation9_spill]] %s11280_s6  ;;  %p11255_p0 = scmp.eq.s32.totalorder %s9869_s22, 0 }
  0x36   : > { %s11253_s7 = scalar_select %p10038_p1, 1, 0 }
  0x37   : > { %p10048_p7 = por %p99_p3, %p11255_p0  ;;  %p105_p9 = scmp.ne.s32.totalorder %s9833_s13, %s9829_s12 }
  0x38   : > { %s62_s25 = ssub.s32 %s9865_s21, %s11280_s6  ;;  %s187_s11 = sand.u32 1, %s9837_s14  }
  0x39   : > { %s11257_s27 = ssub.s32 %s9861_s20, %s11276_s23  ;;  %p90_p11 = scmp.eq.s32.totalorder %s62_s25, 0 }
  0x3a   : > { %s63_s8 = sor.u32 %s62_s25, %s11257_s27  ;;  %p10062_p13 = por %p105_p9, %p10031_p10 }
  0x3b   : > { %p64_p12 = scmp.eq.s32.totalorder %s63_s8, 0  ;;  %s11259_s26 = sadd.s32 1, %s9849_s17 }
  0x3c   : > { %s11258_s9 = scalar_select %p10062_p13, 1, 0 }
  0x3d   : > { %s10067_s10 = scalar_select %p90_p11, %s9837_s14, %s92_s24  }
  0x3e   : > { %s10072_s28 = scalar_select %p64_p12, %s9849_s17, %s11259_s26  }
  0x3f   : > { %s7242_s29 = sshll.u32 %s187_s11, 2  ;;  %s8153_s5 = sshll.u32 %s9865_s21, 6 }
  0x40   : > { %s10078_s6 = scalar_lea.hbm %s11239_s2, %s8153_s5  ;;  %s191_s4 = scalar_lea.vmem [#allocation5], %s7242_s29 }
  0x41   : > { %s199_s25 = sshll.u32 %s191_s4, 4  ;;  %p11260_p2 = scmp.lt.s32.totalorder %s9869_s22, 14  ;;  %s10080_s25 = int_to_ptr.vmem [resolvable:$true] %s199_s25 }
  0x42   : > { %s188_s27 = scalar_lea.sflag [#allocation6], %s187_s11  ;;  %s9745_s1 = scalar_lea.hbm %s10078_s6, 64 }
  0x43   : > { %p10086_p4 = pnand %p11260_p2, %p10048_p7  ;;  %p9746_p8 = scmp.ne.s32.totalorder %s10078_s6, %s9745_s1 }
  0x44   : > { %s9750_s15 = scalar_lea.hbm %s11239_s2, 128  ;;  %p9751_p0 = scmp.lt.u32.totalorder %s10078_s6, %s11239_s2 }
  0x45   : > { %p9747_p10 = pneg %p10086_p4  ;;  %p9752_p7 = scmp.lt.u32.totalorder %s9750_s15, %s9745_s1 }
  0x46   : > { %p9754_p11 = scmp.lt.u32.totalorder %s9745_s1, %s10078_s6 }
  0x47   : > { %p9748_p5 = pnand %p9747_p10, %p9746_p8  ;;  %p9753_p9 = por %p9752_p7, %p9751_p0 }
  0x49   : > { %p9749_p3 = pneg %p9748_p5  ;;  %p9755_p12 = por %p9754_p11, %p9753_p9 }
  0x4b   : > { %p9756_p2 = pnand %p9755_p12, %p9749_p3 }
  0x4d   : > { %9759 = shalt.err (!%p9756_p2)
}
  0x4e   : > { %s9760_s11 = scalar_lea.vmem %s10080_s25, 64  ;;  %s9875_s12 = smov [#allocation5]  }
  0x4f   : > { %p9761_p8 = scmp.ne.s32.totalorder %s10080_s25, %s9760_s11  ;;  %s9765_s4 = sshll.u32 %s9875_s12, 4  ;;  %s9766_s4 = int_to_ptr.vmem [resolvable:$false] %s9765_s4 }
  0x50   : > { %s9767_s8 = scalar_lea.vmem %s9766_s4, 128  ;;  %p9768_p1 = scmp.lt.s32.totalorder %s10080_s25, %s9766_s4 }
  0x51   : > { %p9763_p5 = pnand %p9761_p8, %p9747_p10  ;;  %p9769_p0 = scmp.lt.s32.totalorder %s9767_s8, %s9760_s11 }
  0x53   : > { %p9764_p13 = pneg %p9763_p5  ;;  %p9770_p7 = por %p9769_p0, %p9768_p1 }
  0x55   : > { %p9771_p9 = pnand %p9770_p7, %p9764_p13 }
  0x57   : > { %9774 = shalt.err (!%p9771_p9)
}
  0x58   : > { %8270 = dma.hbm_to_vmem [thread:$0]  (!%p10086_p4), %s10078_s6, 64, %s10080_s25, %s188_s27  }
  0x59   : > { %208 = sbr.rel (%p10020_p6) target bundleno = 1254 (0x4e6), region = 32  ;;  %s210_s1 = sand.u32 (!%p10020_p6), 1, %s9845_s16  }
  0x5a   : > { %s8259_s26 = smul.u32 (!%p10020_p6), 7168, %s210_s1  ;;  %s211_s15 = scalar_lea.sflag (!%p10020_p6), [#allocation4], %s210_s1 }
  0x5b   : > { %p11262_p10 = scmp.ne.s32.totalorder (!%p10020_p6), %s11253_s7, 0 }
  0x5c   : > { %s10118_s29 = scalar_lea.vmem (!%p10020_p6), [#allocation3], %s8259_s26 }
  0x60   : > { %9820 = dma.done.wait (%p11262_p10), %s211_s15, 114688  }
  0x61   : > { %9822 = vsyncadd (%p11262_p10), %s211_s15, 4294852608  ;;  %s219_s24 = sand.u32 1, %s9833_s13   ;;  %p11263_p6 = scmp.ne.s32.totalorder %s11258_s9, 0 }
  0x62   : > { %s10125_s5 = sshll.u32 %s219_s24, 2  ;;  %s220_s30 = scalar_lea.sflag [#allocation6], %s219_s24 }
  0x63   : > { %s223_s6 = scalar_lea.vmem [#allocation5], %s10125_s5 }
  0x64   : > { %9824 = dma.done.wait (%p11263_p6), %s220_s30, 64  }
  0x65   : > { %9826 = vsyncadd (%p11263_p6), %s220_s30, 4294967232  ;;  %s254_s25 = smul.u32 28, %s9853_s18  ;;  %s7247_s27 = sshll.u32 %s9857_s19, 2 }
  0x66   : > { %p263_p1 = scmp.lt.s32.totalorder %s7247_s27, 7  ;;  %p7248_p4 = scmp.ne.s32.totalorder %s9853_s18, 0 }
  0x67   : > { %p255_p13 = scmp.lt.s32.totalorder %s254_s25, 195  ;;  %v9876_v0 = vmov (!%p7248_p4), 0.0  }
  0x68   : > { %s11282_s27 = smov (!%p263_p1, %s7247_s27), 7  ;;  %270 = sbr.rel (%p7248_p4) target bundleno = 111 (0x6f), region = 44 }
  0x69   : > { %s11284_s25 = smov (!%p255_p13, %s254_s25), 195  ;;  %s265_s12 = scalar_lea.vmem %s11240_s3, %s11282_s27  ;;  %271 = vst [vmem:[#allocation2] sm:$0xff] (!%p7248_p4), %v9876_v0 }
  0x6a   : > { %s10143_s1 = scalar_lea.vmem %s11237_s0, %s11284_s25 }
  0x6f PF: > { %v8366_v1 = vld [vmem:[%s10118_s29 + $0x4] ss:$16 sps:$4 sm:$0xff]   ;;  %v8368_v2 = vld [vmem:[%s10118_s29 + $0xc] ss:$16 sps:$4 sm:$0xff]   ;;  %v8370_v3 = vld [vmem:[%s10118_s29] ss:$16 sps:$4 sm:$0xff]   ;;  %v1181_v39 = vlaneseq }
  0x70   : > { %5856 = vmatprep.subr.bf16.mxu0 %v8366_v1  ;;  %v8371_v4 = vld [vmem:[%s10118_s29 + $0x8] ss:$16 sps:$4 sm:$0xff]   ;;  %6430 = vmatprep.subr.bf16.mxu1 %v8368_v2  ;;  %v8372_v5 = vld [vmem:[%s10118_s29 + $0x24] ss:$16 sps:$4 sm:$0xff]   ;;  %v8374_v6 = vld [vmem:[%s10118_s29 + $0x2c] ss:$16 sps:$4 sm:$0xff]  }
  0x71   : > { %5857 = vmatpush1.bf16.msra.mxu0 %v8370_v3  ;;  %6431 = vmatpush1.bf16.msra.mxu1 %v8371_v4  ;;  %v8376_v7 = vld [vmem:[%s10118_s29 + $0x20] ss:$16 sps:$4 sm:$0xff]   ;;  %v8377_v8 = vld [vmem:[%s10118_s29 + $0x28] ss:$16 sps:$4 sm:$0xff]   ;;  %v8378_v9 = vld [vmem:[%s10118_s29 + $0x44] ss:$16 sps:$4 sm:$0xff]  }
  0x72   : > { %5858 = vmatprep.subr.bf16.mxu0 %v8372_v5  ;;  %6432 = vmatprep.subr.bf16.mxu1 %v8374_v6  ;;  %v8380_v10 = vld [vmem:[%s10118_s29 + $0x4c] ss:$16 sps:$4 sm:$0xff]   ;;  %v8382_v11 = vld [vmem:[%s10118_s29 + $0x40] ss:$16 sps:$4 sm:$0xff]   ;;  %v8383_v12 = vld [vmem:[%s10118_s29 + $0x48] ss:$16 sps:$4 sm:$0xff]  }
  0x73   : > { %v8384_v13 = vld [vmem:[%s10118_s29 + $0x64] ss:$16 sps:$4 sm:$0xff]   ;;  %v8386_v14 = vld [vmem:[%s10118_s29 + $0x6c] ss:$16 sps:$4 sm:$0xff]   ;;  %v8388_v15 = vld [vmem:[%s10118_s29 + $0x60] ss:$16 sps:$4 sm:$0xff]  }
  0x74   : > { %v8389_v16 = vld [vmem:[%s10118_s29 + $0x68] ss:$16 sps:$4 sm:$0xff]   ;;  %v8390_v17 = vld [vmem:[%s10118_s29 + $0x84] ss:$16 sps:$4 sm:$0xff]   ;;  %v8392_v18 = vld [vmem:[%s10118_s29 + $0x8c] ss:$16 sps:$4 sm:$0xff]  }
  0x75   : > { %5859 = vmatpush1.bf16.msra.mxu0 %v8376_v7  ;;  %6433 = vmatpush1.bf16.msra.mxu1 %v8377_v8  ;;  %v8394_v19 = vld [vmem:[%s10118_s29 + $0x80] ss:$16 sps:$4 sm:$0xff]   ;;  %v8395_v20 = vld [vmem:[%s10118_s29 + $0x88] ss:$16 sps:$4 sm:$0xff]   ;;  %v8396_v21 = vld [vmem:[%s10118_s29 + $0xa4] ss:$16 sps:$4 sm:$0xff]  }
  0x76   : > { %5860 = vmatprep.subr.bf16.mxu0 %v8378_v9  ;;  %6434 = vmatprep.subr.bf16.mxu1 %v8380_v10  ;;  %v8398_v22 = vld [vmem:[%s10118_s29 + $0xac] ss:$16 sps:$4 sm:$0xff]   ;;  %v8400_v23 = vld [vmem:[%s10118_s29 + $0xa0] ss:$16 sps:$4 sm:$0xff]   ;;  %v8401_v24 = vld [vmem:[%s10118_s29 + $0xa8] ss:$16 sps:$4 sm:$0xff]  }
  0x77   : > { %v8402_v25 = vld [vmem:[%s10118_s29 + $0xc4] ss:$16 sps:$4 sm:$0xff]   ;;  %v8404_v26 = vld [vmem:[%s10118_s29 + $0xcc] ss:$16 sps:$4 sm:$0xff]   ;;  %v8406_v27 = vld [vmem:[%s10118_s29 + $0xc0] ss:$16 sps:$4 sm:$0xff]  }
  0x78   : > { %v8407_v28 = vld [vmem:[%s10118_s29 + $0xc8] ss:$16 sps:$4 sm:$0xff]   ;;  %v8408_v29 = vld [vmem:[%s10118_s29 + $0xe4] ss:$16 sps:$4 sm:$0xff]   ;;  %v8410_v30 = vld [vmem:[%s10118_s29 + $0xec] ss:$16 sps:$4 sm:$0xff]  }
  0x79   : > { %5861 = vmatpush1.bf16.msra.mxu0 %v8382_v11  ;;  %6435 = vmatpush1.bf16.msra.mxu1 %v8383_v12  ;;  %v8412_v31 = vld [vmem:[%s10118_s29 + $0xe0] ss:$16 sps:$4 sm:$0xff]   ;;  %v8413_v32 = vld [vmem:[%s10118_s29 + $0xe8] ss:$16 sps:$4 sm:$0xff]   ;;  %v8414_v33 = vld [vmem:[%s10118_s29 + $0x104] ss:$16 sps:$4 sm:$0xff]  }
  0x7a   : > { %5862 = vmatprep.subr.bf16.mxu0 %v8384_v13  ;;  %6436 = vmatprep.subr.bf16.mxu1 %v8386_v14  ;;  %v8416_v34 = vld [vmem:[%s10118_s29 + $0x10c] ss:$16 sps:$4 sm:$0xff]   ;;  %v8418_v35 = vld [vmem:[%s10118_s29 + $0x100] ss:$16 sps:$4 sm:$0xff]   ;;  %v8419_v36 = vld [vmem:[%s10118_s29 + $0x108] ss:$16 sps:$4 sm:$0xff]  }
  0x7b   : > { %v9877_v37 = vmov 1966171168   ;;  %v8420_v40 = vld [vmem:[%s10118_s29 + $0x124] ss:$16 sps:$4 sm:$0xff]   ;;  %v8422_v41 = vld [vmem:[%s10118_s29 + $0x12c] ss:$16 sps:$4 sm:$0xff]  }
  0x7c   : > { %v1179_v38 = vunpack.c.l.s4 %v9877_v37  ;;  %v8424_v42 = vld [vmem:[%s10118_s29 + $0x120] ss:$16 sps:$4 sm:$0xff]   ;;  %v10185_v44 = vshrl.u32 %v1181_v39, 7  ;;  %v8425_v45 = vld [vmem:[%s10118_s29 + $0x128] ss:$16 sps:$4 sm:$0xff]   ;;  %p8146_p3 = scmp.ne.s32.totalorder %s9853_s18, 6 }
  0x7d   : > { %5863 = vmatpush1.bf16.msra.mxu0 %v8388_v15  ;;  %6437 = vmatpush1.bf16.msra.mxu1 %v8389_v16  ;;  %v8426_v46 = vld [vmem:[%s10118_s29 + $0x144] ss:$16 sps:$4 sm:$0xff]   ;;  %v8428_v47 = vld [vmem:[%s10118_s29 + $0x14c] ss:$16 sps:$4 sm:$0xff]   ;;  %v8430_v48 = vld [vmem:[%s10118_s29 + $0x140] ss:$16 sps:$4 sm:$0xff]  }
  0x7e   : > { %5864 = vmatprep.subr.bf16.mxu0 %v8390_v17  ;;  %6438 = vmatprep.subr.bf16.mxu1 %v8392_v18  ;;  %v1180_v43 = vunpack.c.0.s8 %v1179_v38  ;;  %v8431_v49 = vld [vmem:[%s10118_s29 + $0x148] ss:$16 sps:$4 sm:$0xff]   ;;  %v8432_v51 = vld [vmem:[%s10118_s29 + $0x164] ss:$16 sps:$4 sm:$0xff]   ;;  %v8434_v52 = vld [vmem:[%s10118_s29 + $0x16c] ss:$16 sps:$4 sm:$0xff]  }
  0x7f   : > { %v10198_v53 = vld [vmem:[%s10143_s1] sm:$0xff]  ;;  %v8436_v54 = vld [vmem:[%s10118_s29 + $0x160] ss:$16 sps:$4 sm:$0xff]   ;;  %v8438_v57 = vld [vmem:[%s10118_s29 + $0x184] ss:$16 sps:$4 sm:$0xff]  }
  0x80   : > { %v10193_v50 = vsub.s32 %v1180_v43, %v10185_v44  ;;  %v8437_v56 = vld [vmem:[%s10118_s29 + $0x168] ss:$16 sps:$4 sm:$0xff]   ;;  %v8440_v58 = vld [vmem:[%s10118_s29 + $0x18c] ss:$16 sps:$4 sm:$0xff]   ;;  %v8442_v60 = vld [vmem:[%s10118_s29 + $0x180] ss:$16 sps:$4 sm:$0xff]  }
  0x81   : > { %5865 = vmatpush1.bf16.msra.mxu0 %v8394_v19  ;;  %6439 = vmatpush1.bf16.msra.mxu1 %v8395_v20  ;;  %v8443_v62 = vld [vmem:[%s10118_s29 + $0x188] ss:$16 sps:$4 sm:$0xff]   ;;  %v8444_v63 = vld [vmem:[%s10118_s29 + $0x1a4] ss:$16 sps:$4 sm:$0xff]   ;;  %v8446_v0 = vld [vmem:[%s10118_s29 + $0x1ac] ss:$16 sps:$4 sm:$0xff]  }
  0x82   : > { %5866 = vmatprep.subr.bf16.mxu0 %v8396_v21  ;;  %6440 = vmatprep.subr.bf16.mxu1 %v8398_v22  ;;  %v1184_v55 = vrot.slane %v10198_v53, %v10193_v50  ;;  %v8448_v1 = vld [vmem:[%s10118_s29 + $0x1a0] ss:$16 sps:$4 sm:$0xff]   ;;  %v8449_v2 = vld [vmem:[%s10118_s29 + $0x1a8] ss:$16 sps:$4 sm:$0xff]   ;;  %v8450_v3 = vld [vmem:[%s10118_s29 + $0x1c4] ss:$16 sps:$4 sm:$0xff]  }
  0x83   : > { %v8452_v4 = vld [vmem:[%s10118_s29 + $0x1cc] ss:$16 sps:$4 sm:$0xff]   ;;  %v8454_v5 = vld [vmem:[%s10118_s29 + $0x1c0] ss:$16 sps:$4 sm:$0xff]   ;;  %v8455_v6 = vld [vmem:[%s10118_s29 + $0x1c8] ss:$16 sps:$4 sm:$0xff]  }
  0x84   : > { %v1192_v59 = vcombine.high %v1184_v55, %v1184_v55  ;;  %v8456_v7 = vld [vmem:[%s10118_s29 + $0x1e4] ss:$16 sps:$4 sm:$0xff]   ;;  %v8458_v8 = vld [vmem:[%s10118_s29 + $0x1ec] ss:$16 sps:$4 sm:$0xff]   ;;  %v8460_v9 = vld [vmem:[%s10118_s29 + $0x1e0] ss:$16 sps:$4 sm:$0xff]   ;;  %v10225_v14 = vrot.slane %v1184_v55, %v10193_v50 }
  0x85   : > { %5867 = vmatpush1.bf16.msra.mxu0 %v8400_v23  ;;  %6441 = vmatpush1.bf16.msra.mxu1 %v8401_v24  ;;  %v8461_v10 = vld [vmem:[%s10118_s29 + $0x1e8] ss:$16 sps:$4 sm:$0xff]   ;;  %v8464_v11 = vld [vmem:[%s10118_s29 + $0x204] ss:$16 sps:$4 sm:$0xff]   ;;  %v8467_v12 = vld [vmem:[%s10118_s29 + $0x20c] ss:$16 sps:$4 sm:$0xff]  }
  0x86   : > { %5868 = vmatprep.subr.bf16.mxu0 %v8402_v25  ;;  %6442 = vmatprep.subr.bf16.mxu1 %v8404_v26  ;;  %v1214_v61 = vrot.slane %v1192_v59, %v10193_v50  ;;  %v8462_v13 = vld [vmem:[%s10118_s29 + $0x200] ss:$16 sps:$4 sm:$0xff]   ;;  %v8465_v15 = vld [vmem:[%s10118_s29 + $0x208] ss:$16 sps:$4 sm:$0xff]   ;;  %v8470_v16 = vld [vmem:[%s10118_s29 + $0x224] ss:$16 sps:$4 sm:$0xff]  }
  0x87   : > { %v8473_v17 = vld [vmem:[%s10118_s29 + $0x22c] ss:$16 sps:$4 sm:$0xff]   ;;  %v8468_v19 = vld [vmem:[%s10118_s29 + $0x220] ss:$16 sps:$4 sm:$0xff]   ;;  %v8471_v20 = vld [vmem:[%s10118_s29 + $0x228] ss:$16 sps:$4 sm:$0xff]  }
  0x88   : > { %5888 = vmatprep.mubr.bf16.mxu0 %v1214_v61  ;;  %6462 = vmatprep.mubr.bf16.mxu1 %v1214_v61  ;;  %v1224_v18 = vcombine.high %v1214_v61, %v1214_v61  ;;  %v8476_v21 = vld [vmem:[%s10118_s29 + $0x244] ss:$16 sps:$4 sm:$0xff]   ;;  %v8479_v22 = vld [vmem:[%s10118_s29 + $0x24c] ss:$16 sps:$4 sm:$0xff]   ;;  %v8474_v23 = vld [vmem:[%s10118_s29 + $0x240] ss:$16 sps:$4 sm:$0xff]  }
  0x89   : > { %5869 = vmatpush1.bf16.msra.mxu0 %v8406_v27  ;;  %6443 = vmatpush1.bf16.msra.mxu1 %v8407_v28  ;;  %v8477_v24 = vld [vmem:[%s10118_s29 + $0x248] ss:$16 sps:$4 sm:$0xff]   ;;  %v8482_v25 = vld [vmem:[%s10118_s29 + $0x264] ss:$16 sps:$4 sm:$0xff]   ;;  %v8485_v26 = vld [vmem:[%s10118_s29 + $0x26c] ss:$16 sps:$4 sm:$0xff]  }
  0x8a   : > { %5870 = vmatprep.subr.bf16.mxu0 %v8408_v29  ;;  %6444 = vmatprep.subr.bf16.mxu1 %v8410_v30  ;;  %v8480_v27 = vld [vmem:[%s10118_s29 + $0x260] ss:$16 sps:$4 sm:$0xff]   ;;  %v8483_v28 = vld [vmem:[%s10118_s29 + $0x268] ss:$16 sps:$4 sm:$0xff]   ;;  %v8488_v29 = vld [vmem:[%s10118_s29 + $0x284] ss:$16 sps:$4 sm:$0xff]  }
  0x8b   : > { %v8491_v30 = vld [vmem:[%s10118_s29 + $0x28c] ss:$16 sps:$4 sm:$0xff]   ;;  %v8500_v37 = vld [vmem:[%s10118_s29 + $0x2c4] ss:$16 sps:$4 sm:$0xff]   ;;  %v8498_v39 = vld [vmem:[%s10118_s29 + $0x2c0] ss:$16 sps:$4 sm:$0xff]  }
  0x8c   : > { %v8503_v38 = vld [vmem:[%s10118_s29 + $0x2cc] ss:$16 sps:$4 sm:$0xff]   ;;  %v8504_v43 = vld [vmem:[%s10118_s29 + $0x2e0] ss:$16 sps:$4 sm:$0xff]   ;;  %v8519_v55 = vld [vmem:[%s10118_s29 + $0x328] ss:$16 sps:$4 sm:$0xff]  }
  0x8d   : > { %5871 = vmatpush1.bf16.msra.mxu0 %v8412_v31  ;;  %6445 = vmatpush1.bf16.msra.mxu1 %v8413_v32  ;;  %v8486_v31 = vld [vmem:[%s10118_s29 + $0x280] ss:$16 sps:$4 sm:$0xff]   ;;  %v8489_v32 = vld [vmem:[%s10118_s29 + $0x288] ss:$16 sps:$4 sm:$0xff]   ;;  %v8533_v61 = vld [vmem:[%s10118_s29 + $0x36c] ss:$16 sps:$4 sm:$0xff]  }
  0x8e   : > { %5872 = vmatprep.subr.bf16.mxu0 %v8414_v33  ;;  %6446 = vmatprep.subr.bf16.mxu1 %v8416_v34  ;;  %v8494_v33 = vld [vmem:[%s10118_s29 + $0x2a4] ss:$16 sps:$4 sm:$0xff]   ;;  %v8497_v34 = vld [vmem:[%s10118_s29 + $0x2ac] ss:$16 sps:$4 sm:$0xff]   ;;  %v8525_v59 = vld [vmem:[%s10118_s29 + $0x348] ss:$16 sps:$4 sm:$0xff]  }
  0x91   : > { %5873 = vmatpush1.bf16.msra.mxu0 %v8418_v35  ;;  %6447 = vmatpush1.bf16.msra.mxu1 %v8419_v36  ;;  %v8492_v35 = vld [vmem:[%s10118_s29 + $0x2a0] ss:$16 sps:$4 sm:$0xff]   ;;  %v8495_v36 = vld [vmem:[%s10118_s29 + $0x2a8] ss:$16 sps:$4 sm:$0xff]  }
  0x92   : > { %5874 = vmatprep.subr.bf16.mxu0 %v8420_v40  ;;  %6448 = vmatprep.subr.bf16.mxu1 %v8422_v41  ;;  %v8501_v40 = vld [vmem:[%s10118_s29 + $0x2c8] ss:$16 sps:$4 sm:$0xff]   ;;  %v8506_v41 = vld [vmem:[%s10118_s29 + $0x2e4] ss:$16 sps:$4 sm:$0xff]  }
  0x95   : > { %5875 = vmatpush1.bf16.msra.mxu0 %v8424_v42  ;;  %6449 = vmatpush1.bf16.msra.mxu1 %v8425_v45  ;;  %v8509_v42 = vld [vmem:[%s10118_s29 + $0x2ec] ss:$16 sps:$4 sm:$0xff]   ;;  %v8507_v45 = vld [vmem:[%s10118_s29 + $0x2e8] ss:$16 sps:$4 sm:$0xff]  }
  0x96   : > { %5876 = vmatprep.subr.bf16.mxu0 %v8426_v46  ;;  %6450 = vmatprep.subr.bf16.mxu1 %v8428_v47  ;;  %v8512_v46 = vld [vmem:[%s10118_s29 + $0x304] ss:$16 sps:$4 sm:$0xff]   ;;  %v8515_v47 = vld [vmem:[%s10118_s29 + $0x30c] ss:$16 sps:$4 sm:$0xff]  }
  0x99   : > { %5877 = vmatpush1.bf16.msra.mxu0 %v8430_v48  ;;  %6451 = vmatpush1.bf16.msra.mxu1 %v8431_v49  ;;  %v8510_v48 = vld [vmem:[%s10118_s29 + $0x300] ss:$16 sps:$4 sm:$0xff]   ;;  %v8513_v49 = vld [vmem:[%s10118_s29 + $0x308] ss:$16 sps:$4 sm:$0xff]  }
  0x9a   : > { %5878 = vmatprep.subr.bf16.mxu0 %v8432_v51  ;;  %6452 = vmatprep.subr.bf16.mxu1 %v8434_v52  ;;  %v8518_v51 = vld [vmem:[%s10118_s29 + $0x324] ss:$16 sps:$4 sm:$0xff]   ;;  %v8521_v52 = vld [vmem:[%s10118_s29 + $0x32c] ss:$16 sps:$4 sm:$0xff]  }
  0x9d   : > { %5879 = vmatpush1.bf16.msra.mxu0 %v8436_v54  ;;  %6453 = vmatpush1.bf16.msra.mxu1 %v8437_v56  ;;  %v8516_v54 = vld [vmem:[%s10118_s29 + $0x320] ss:$16 sps:$4 sm:$0xff]   ;;  %v8524_v56 = vld [vmem:[%s10118_s29 + $0x344] ss:$16 sps:$4 sm:$0xff]  }
  0x9e   : > { %5880 = vmatprep.subr.bf16.mxu0 %v8438_v57  ;;  %6454 = vmatprep.subr.bf16.mxu1 %v8440_v58  ;;  %v8527_v57 = vld [vmem:[%s10118_s29 + $0x34c] ss:$16 sps:$4 sm:$0xff]   ;;  %v8522_v58 = vld [vmem:[%s10118_s29 + $0x340] ss:$16 sps:$4 sm:$0xff]  }
  0xa1   : > { %5881 = vmatpush1.bf16.msra.mxu0 %v8442_v60  ;;  %6455 = vmatpush1.bf16.msra.mxu1 %v8443_v62  ;;  %v8530_v60 = vld [vmem:[%s10118_s29 + $0x364] ss:$16 sps:$4 sm:$0xff]   ;;  %v8528_v62 = vld [vmem:[%s10118_s29 + $0x360] ss:$16 sps:$4 sm:$0xff]  }
  0xa2   : > { %5882 = vmatprep.subr.bf16.mxu0 %v8444_v63  ;;  %6456 = vmatprep.subr.bf16.mxu1 %v8446_v0  ;;  %v8531_v63 = vld [vmem:[%s10118_s29 + $0x368] ss:$16 sps:$4 sm:$0xff]   ;;  %v8536_v0 = vld [vmem:[%s10118_s29 + $0x384] ss:$16 sps:$4 sm:$0xff]  }
  0xa5   : > { %5883 = vmatpush1.bf16.msra.mxu0 %v8448_v1  ;;  %6457 = vmatpush1.bf16.msra.mxu1 %v8449_v2  ;;  %v8539_v1 = vld [vmem:[%s10118_s29 + $0x38c] ss:$16 sps:$4 sm:$0xff]   ;;  %v8534_v2 = vld [vmem:[%s10118_s29 + $0x380] ss:$16 sps:$4 sm:$0xff]  }
  0xa6   : > { %5884 = vmatprep.subr.bf16.mxu0 %v8450_v3  ;;  %6458 = vmatprep.subr.bf16.mxu1 %v8452_v4  ;;  %v8537_v3 = vld [vmem:[%s10118_s29 + $0x388] ss:$16 sps:$4 sm:$0xff]   ;;  %v8542_v4 = vld [vmem:[%s10118_s29 + $0x3a4] ss:$16 sps:$4 sm:$0xff]  }
  0xa9   : > { %5885 = vmatpush1.bf16.msra.mxu0 %v8454_v5  ;;  %6459 = vmatpush1.bf16.msra.mxu1 %v8455_v6  ;;  %v8545_v5 = vld [vmem:[%s10118_s29 + $0x3ac] ss:$16 sps:$4 sm:$0xff]   ;;  %v8540_v6 = vld [vmem:[%s10118_s29 + $0x3a0] ss:$16 sps:$4 sm:$0xff]  }
  0xaa   : > { %5886 = vmatprep.subr.bf16.mxu0 %v8456_v7  ;;  %6460 = vmatprep.subr.bf16.mxu1 %v8458_v8  ;;  %v8543_v7 = vld [vmem:[%s10118_s29 + $0x3a8] ss:$16 sps:$4 sm:$0xff]   ;;  %v8548_v8 = vld [vmem:[%s10118_s29 + $0x3c4] ss:$16 sps:$4 sm:$0xff]  }
  0xad   : > { %5887 = vmatpush1.bf16.msra.mxu0 %v8460_v9  ;;  %6461 = vmatpush1.bf16.msra.mxu1 %v8461_v10  ;;  %v8551_v9 = vld [vmem:[%s10118_s29 + $0x3cc] ss:$16 sps:$4 sm:$0xff]   ;;  %v1177_v10 = vcombine.high %v10198_v53, %v10198_v53  ;;  %v8555_v53 = vld [vmem:[%s10118_s29 + $0x3e8] ss:$16 sps:$4 sm:$0xff]  }
  0xae   : > { %5897 = vmatprep.subr.bf16.mxu0 %v8464_v11  ;;  %6471 = vmatprep.subr.bf16.mxu1 %v8467_v12  ;;  %v8546_v11 = vld [vmem:[%s10118_s29 + $0x3c0] ss:$16 sps:$4 sm:$0xff]   ;;  %v8549_v12 = vld [vmem:[%s10118_s29 + $0x3c8] ss:$16 sps:$4 sm:$0xff]  }
  0xb0   : > { %5889 = vmatmul.mubr.bf16.vlgmr.msra.gmra.mrb[0].mxu0 %v10225_v14  ;;  %6463 = vmatmul.mubr.bf16.vlgmr.msra.gmra.mrb[0].mxu1 %v10225_v14 }
  0xb1   : > { %5898 = vmatpush1.bf16.msra.mxu0 %v8462_v13  ;;  %6472 = vmatpush1.bf16.msra.mxu1 %v8465_v15  ;;  %v8554_v13 = vld [vmem:[%s10118_s29 + $0x3e4] ss:$16 sps:$4 sm:$0xff]   ;;  %v8557_v15 = vld [vmem:[%s10118_s29 + $0x3ec] ss:$16 sps:$4 sm:$0xff]  }
  0xb2   : > { %5899 = vmatprep.subr.bf16.mxu0 %v8470_v16  ;;  %6473 = vmatprep.subr.bf16.mxu1 %v8473_v17  ;;  %v10291_v16 = vrot.slane %v1177_v10, %v10193_v50  ;;  %v8552_v17 = vld [vmem:[%s10118_s29 + $0x3e0] ss:$16 sps:$4 sm:$0xff]   ;;  %v8633_v10 = vld [vmem:[%s10118_s29 + $0x588] ss:$16 sps:$4 sm:$0xff]  }
  0xb3   : > { %5929 = vmatprep.mubr.bf16.mxu0 %v1224_v18  ;;  %6503 = vmatprep.mubr.bf16.mxu1 %v1224_v18  ;;  %v8560_v18 = vld [vmem:[%s10118_s29 + $0x404] ss:$16 sps:$4 sm:$0xff]  }
  0xb5   : > { %5900 = vmatpush1.bf16.msra.mxu0 %v8468_v19  ;;  %6474 = vmatpush1.bf16.msra.mxu1 %v8471_v20  ;;  %v8563_v19 = vld [vmem:[%s10118_s29 + $0x40c] ss:$16 sps:$4 sm:$0xff]   ;;  %v1193_v20 = vcombine.high %v10291_v16, %v10291_v16 }
  0xb6   : > { %5901 = vmatprep.subr.bf16.mxu0 %v8476_v21  ;;  %6475 = vmatprep.subr.bf16.mxu1 %v8479_v22  ;;  %v8558_v21 = vld [vmem:[%s10118_s29 + $0x400] ss:$16 sps:$4 sm:$0xff]   ;;  %v1222_v22 = vcombine.high %v10225_v14, %v10225_v14  ;;  %v8567_v14 = vld [vmem:[%s10118_s29 + $0x428] ss:$16 sps:$4 sm:$0xff]  }
  0xb9   : > { %5902 = vmatpush1.bf16.msra.mxu0 %v8474_v23  ;;  %6476 = vmatpush1.bf16.msra.mxu1 %v8477_v24  ;;  %v8561_v23 = vld [vmem:[%s10118_s29 + $0x408] ss:$16 sps:$4 sm:$0xff]   ;;  %v8566_v24 = vld [vmem:[%s10118_s29 + $0x424] ss:$16 sps:$4 sm:$0xff]  }
  0xba   : > { %5903 = vmatprep.subr.bf16.mxu0 %v8482_v25  ;;  %6477 = vmatprep.subr.bf16.mxu1 %v8485_v26  ;;  %v8569_v25 = vld [vmem:[%s10118_s29 + $0x42c] ss:$16 sps:$4 sm:$0xff]   ;;  %v10306_v26 = vrot.slane %v1193_v20, %v10193_v50  ;;  %v8650_v20 = vld [vmem:[%s10118_s29 + $0x5e4] ss:$16 sps:$4 sm:$0xff]  }
  0xbd   : > { %5904 = vmatpush1.bf16.msra.mxu0 %v8480_v27  ;;  %6478 = vmatpush1.bf16.msra.mxu1 %v8483_v28  ;;  %v8564_v27 = vld [vmem:[%s10118_s29 + $0x420] ss:$16 sps:$4 sm:$0xff]   ;;  %v8572_v28 = vld [vmem:[%s10118_s29 + $0x444] ss:$16 sps:$4 sm:$0xff]  }
  0xbe   : > { %5905 = vmatprep.subr.bf16.mxu0 %v8488_v29  ;;  %6479 = vmatprep.subr.bf16.mxu1 %v8491_v30  ;;  %v8575_v29 = vld [vmem:[%s10118_s29 + $0x44c] ss:$16 sps:$4 sm:$0xff]   ;;  %v8570_v30 = vld [vmem:[%s10118_s29 + $0x440] ss:$16 sps:$4 sm:$0xff]  }
  0xc1   : > { %5906 = vmatpush1.bf16.msra.mxu0 %v8486_v31  ;;  %6480 = vmatpush1.bf16.msra.mxu1 %v8489_v32  ;;  %v8573_v31 = vld [vmem:[%s10118_s29 + $0x448] ss:$16 sps:$4 sm:$0xff]   ;;  %v8578_v32 = vld [vmem:[%s10118_s29 + $0x464] ss:$16 sps:$4 sm:$0xff]  }
  0xc2   : > { %5907 = vmatprep.subr.bf16.mxu0 %v8494_v33  ;;  %6481 = vmatprep.subr.bf16.mxu1 %v8497_v34  ;;  %v8581_v33 = vld [vmem:[%s10118_s29 + $0x46c] ss:$16 sps:$4 sm:$0xff]   ;;  %v8576_v34 = vld [vmem:[%s10118_s29 + $0x460] ss:$16 sps:$4 sm:$0xff]  }
  0xc5   : > { %5908 = vmatpush1.bf16.msra.mxu0 %v8492_v35  ;;  %6482 = vmatpush1.bf16.msra.mxu1 %v8495_v36  ;;  %v8579_v35 = vld [vmem:[%s10118_s29 + $0x468] ss:$16 sps:$4 sm:$0xff]   ;;  %v8584_v36 = vld [vmem:[%s10118_s29 + $0x484] ss:$16 sps:$4 sm:$0xff]  }
  0xc6   : > { %5909 = vmatprep.subr.bf16.mxu0 %v8500_v37  ;;  %6483 = vmatprep.subr.bf16.mxu1 %v8503_v38  ;;  %v8587_v37 = vld [vmem:[%s10118_s29 + $0x48c] ss:$16 sps:$4 sm:$0xff]   ;;  %v8582_v38 = vld [vmem:[%s10118_s29 + $0x480] ss:$16 sps:$4 sm:$0xff]  }
  0xc9   : > { %5910 = vmatpush1.bf16.msra.mxu0 %v8498_v39  ;;  %6484 = vmatpush1.bf16.msra.mxu1 %v8501_v40  ;;  %v8585_v39 = vld [vmem:[%s10118_s29 + $0x488] ss:$16 sps:$4 sm:$0xff]   ;;  %v8590_v40 = vld [vmem:[%s10118_s29 + $0x4a4] ss:$16 sps:$4 sm:$0xff]  }
  0xca   : > { %5911 = vmatprep.subr.bf16.mxu0 %v8506_v41  ;;  %6485 = vmatprep.subr.bf16.mxu1 %v8509_v42  ;;  %v8593_v41 = vld [vmem:[%s10118_s29 + $0x4ac] ss:$16 sps:$4 sm:$0xff]   ;;  %v8588_v42 = vld [vmem:[%s10118_s29 + $0x4a0] ss:$16 sps:$4 sm:$0xff]  }
  0xcd   : > { %5912 = vmatpush1.bf16.msra.mxu0 %v8504_v43  ;;  %6486 = vmatpush1.bf16.msra.mxu1 %v8507_v45  ;;  %v8591_v43 = vld [vmem:[%s10118_s29 + $0x4a8] ss:$16 sps:$4 sm:$0xff]   ;;  %v8596_v45 = vld [vmem:[%s10118_s29 + $0x4c4] ss:$16 sps:$4 sm:$0xff]  }
  0xce   : > { %5913 = vmatprep.subr.bf16.mxu0 %v8512_v46  ;;  %6487 = vmatprep.subr.bf16.mxu1 %v8515_v47  ;;  %v8599_v46 = vld [vmem:[%s10118_s29 + $0x4cc] ss:$16 sps:$4 sm:$0xff]   ;;  %v8594_v47 = vld [vmem:[%s10118_s29 + $0x4c0] ss:$16 sps:$4 sm:$0xff]  }
  0xd1   : > { %5914 = vmatpush1.bf16.msra.mxu0 %v8510_v48  ;;  %6488 = vmatpush1.bf16.msra.mxu1 %v8513_v49  ;;  %v8597_v48 = vld [vmem:[%s10118_s29 + $0x4c8] ss:$16 sps:$4 sm:$0xff]   ;;  %v8602_v49 = vld [vmem:[%s10118_s29 + $0x4e4] ss:$16 sps:$4 sm:$0xff]  }
  0xd2   : > { %5915 = vmatprep.subr.bf16.mxu0 %v8518_v51  ;;  %6489 = vmatprep.subr.bf16.mxu1 %v8521_v52  ;;  %v8605_v51 = vld [vmem:[%s10118_s29 + $0x4ec] ss:$16 sps:$4 sm:$0xff]   ;;  %v8600_v52 = vld [vmem:[%s10118_s29 + $0x4e0] ss:$16 sps:$4 sm:$0xff]  }
  0xd5   : > { %5916 = vmatpush1.bf16.msra.mxu0 %v8516_v54  ;;  %6490 = vmatpush1.bf16.msra.mxu1 %v8519_v55  ;;  %v8603_v54 = vld [vmem:[%s10118_s29 + $0x4e8] ss:$16 sps:$4 sm:$0xff]   ;;  %v8608_v55 = vld [vmem:[%s10118_s29 + $0x504] ss:$16 sps:$4 sm:$0xff]  }
  0xd6   : > { %5917 = vmatprep.subr.bf16.mxu0 %v8524_v56  ;;  %6491 = vmatprep.subr.bf16.mxu1 %v8527_v57  ;;  %v8611_v56 = vld [vmem:[%s10118_s29 + $0x50c] ss:$16 sps:$4 sm:$0xff]   ;;  %v8606_v57 = vld [vmem:[%s10118_s29 + $0x500] ss:$16 sps:$4 sm:$0xff]  }
  0xd9   : > { %5918 = vmatpush1.bf16.msra.mxu0 %v8522_v58  ;;  %6492 = vmatpush1.bf16.msra.mxu1 %v8525_v59  ;;  %v8609_v58 = vld [vmem:[%s10118_s29 + $0x508] ss:$16 sps:$4 sm:$0xff]   ;;  %v8614_v59 = vld [vmem:[%s10118_s29 + $0x524] ss:$16 sps:$4 sm:$0xff]  }
  0xda   : > { %5919 = vmatprep.subr.bf16.mxu0 %v8530_v60  ;;  %6493 = vmatprep.subr.bf16.mxu1 %v8533_v61  ;;  %v8617_v60 = vld [vmem:[%s10118_s29 + $0x52c] ss:$16 sps:$4 sm:$0xff]   ;;  %v8612_v61 = vld [vmem:[%s10118_s29 + $0x520] ss:$16 sps:$4 sm:$0xff]  }
  0xdd   : > { %5920 = vmatpush1.bf16.msra.mxu0 %v8528_v62  ;;  %6494 = vmatpush1.bf16.msra.mxu1 %v8531_v63  ;;  %v8615_v62 = vld [vmem:[%s10118_s29 + $0x528] ss:$16 sps:$4 sm:$0xff]   ;;  %v8620_v63 = vld [vmem:[%s10118_s29 + $0x544] ss:$16 sps:$4 sm:$0xff]  }
  0xde   : > { %5921 = vmatprep.subr.bf16.mxu0 %v8536_v0  ;;  %6495 = vmatprep.subr.bf16.mxu1 %v8539_v1  ;;  %v8623_v0 = vld [vmem:[%s10118_s29 + $0x54c] ss:$16 sps:$4 sm:$0xff]   ;;  %v8618_v1 = vld [vmem:[%s10118_s29 + $0x540] ss:$16 sps:$4 sm:$0xff]  }
  0xe1   : > { %5922 = vmatpush1.bf16.msra.mxu0 %v8534_v2  ;;  %6496 = vmatpush1.bf16.msra.mxu1 %v8537_v3  ;;  %v8621_v2 = vld [vmem:[%s10118_s29 + $0x548] ss:$16 sps:$4 sm:$0xff]   ;;  %v8626_v3 = vld [vmem:[%s10118_s29 + $0x564] ss:$16 sps:$4 sm:$0xff]  }
  0xe2   : > { %5923 = vmatprep.subr.bf16.mxu0 %v8542_v4  ;;  %6497 = vmatprep.subr.bf16.mxu1 %v8545_v5  ;;  %v8629_v4 = vld [vmem:[%s10118_s29 + $0x56c] ss:$16 sps:$4 sm:$0xff]   ;;  %v8624_v5 = vld [vmem:[%s10118_s29 + $0x560] ss:$16 sps:$4 sm:$0xff]  }
  0xe5   : > { %5924 = vmatpush1.bf16.msra.mxu0 %v8540_v6  ;;  %6498 = vmatpush1.bf16.msra.mxu1 %v8543_v7  ;;  %v8627_v6 = vld [vmem:[%s10118_s29 + $0x568] ss:$16 sps:$4 sm:$0xff]   ;;  %v8632_v7 = vld [vmem:[%s10118_s29 + $0x584] ss:$16 sps:$4 sm:$0xff]  }
  0xe6   : > { %5925 = vmatprep.subr.bf16.mxu0 %v8548_v8  ;;  %6499 = vmatprep.subr.bf16.mxu1 %v8551_v9  ;;  %v8635_v8 = vld [vmem:[%s10118_s29 + $0x58c] ss:$16 sps:$4 sm:$0xff]   ;;  %v8630_v9 = vld [vmem:[%s10118_s29 + $0x580] ss:$16 sps:$4 sm:$0xff]  }
  0xe9   : > { %5926 = vmatpush1.bf16.msra.mxu0 %v8546_v11  ;;  %6500 = vmatpush1.bf16.msra.mxu1 %v8549_v12  ;;  %v8638_v11 = vld [vmem:[%s10118_s29 + $0x5a4] ss:$16 sps:$4 sm:$0xff]   ;;  %v8641_v12 = vld [vmem:[%s10118_s29 + $0x5ac] ss:$16 sps:$4 sm:$0xff]  }
  0xea   : > { %5927 = vmatprep.subr.bf16.mxu0 %v8554_v13  ;;  %6501 = vmatprep.subr.bf16.mxu1 %v8557_v15  ;;  %v8636_v13 = vld [vmem:[%s10118_s29 + $0x5a0] ss:$16 sps:$4 sm:$0xff]   ;;  %v8639_v15 = vld [vmem:[%s10118_s29 + $0x5a8] ss:$16 sps:$4 sm:$0xff]  }
  0xed   : > { %5928 = vmatpush1.bf16.msra.mxu0 %v8552_v17  ;;  %6502 = vmatpush1.bf16.msra.mxu1 %v8555_v53  ;;  %v8644_v17 = vld [vmem:[%s10118_s29 + $0x5c4] ss:$16 sps:$4 sm:$0xff]   ;;  %v8647_v53 = vld [vmem:[%s10118_s29 + $0x5cc] ss:$16 sps:$4 sm:$0xff]  }
  0xee   : > { %5938 = vmatprep.subr.bf16.mxu0 %v8560_v18  ;;  %6512 = vmatprep.subr.bf16.mxu1 %v8563_v19  ;;  %v8642_v18 = vld [vmem:[%s10118_s29 + $0x5c0] ss:$16 sps:$4 sm:$0xff]   ;;  %v8645_v19 = vld [vmem:[%s10118_s29 + $0x5c8] ss:$16 sps:$4 sm:$0xff]  }
  0xf0   : > { %5930 = vmatmul.mubr.bf16.vlgmr.msra.gmra.mrb[0].mxu0 %v1222_v22  ;;  %6504 = vmatmul.mubr.bf16.vlgmr.msra.gmra.mrb[0].mxu1 %v1222_v22  ;;  %v8648_v22 = vld [vmem:[%s10118_s29 + $0x5e0] ss:$16 sps:$4 sm:$0xff]  }
  0xf1   : > { %5939 = vmatpush1.bf16.msra.mxu0 %v8558_v21  ;;  %6513 = vmatpush1.bf16.msra.mxu1 %v8561_v23  ;;  %v8653_v21 = vld [vmem:[%s10118_s29 + $0x5ec] ss:$16 sps:$4 sm:$0xff]   ;;  %v8651_v23 = vld [vmem:[%s10118_s29 + $0x5e8] ss:$16 sps:$4 sm:$0xff]  }
  0xf2   : > { %5940 = vmatprep.subr.bf16.mxu0 %v8566_v24  ;;  %6514 = vmatprep.subr.bf16.mxu1 %v8569_v25  ;;  %v8657_v24 = vld [vmem:[%s10118_s29 + $0x604] ss:$16 sps:$4 sm:$0xff]   ;;  %v8660_v25 = vld [vmem:[%s10118_s29 + $0x60c] ss:$16 sps:$4 sm:$0xff]  }
  0xf3   : > { %5970 = vmatprep.mubr.bf16.mxu0 %v10306_v26  ;;  %6544 = vmatprep.mubr.bf16.mxu1 %v10306_v26 }
  0xf5   : > { %5941 = vmatpush1.bf16.msra.mxu0 %v8564_v27  ;;  %6515 = vmatpush1.bf16.msra.mxu1 %v8567_v14  ;;  %v8655_v27 = vld [vmem:[%s10118_s29 + $0x600] ss:$16 sps:$4 sm:$0xff]   ;;  %v10373_v14 = vrot.slane %v10291_v16, %v10193_v50 }
  0xf6   : > { %5942 = vmatprep.subr.bf16.mxu0 %v8572_v28  ;;  %6516 = vmatprep.subr.bf16.mxu1 %v8575_v29  ;;  %v8658_v28 = vld [vmem:[%s10118_s29 + $0x608] ss:$16 sps:$4 sm:$0xff]   ;;  %v8663_v29 = vld [vmem:[%s10118_s29 + $0x624] ss:$16 sps:$4 sm:$0xff]   ;;  %v8661_v16 = vld [vmem:[%s10118_s29 + $0x620] ss:$16 sps:$4 sm:$0xff]  }
  0xf9   : > { %5943 = vmatpush1.bf16.msra.mxu0 %v8570_v30  ;;  %6517 = vmatpush1.bf16.msra.mxu1 %v8573_v31  ;;  %v8666_v30 = vld [vmem:[%s10118_s29 + $0x62c] ss:$16 sps:$4 sm:$0xff]   ;;  %v1225_v31 = vcombine.high %v10306_v26, %v10306_v26  ;;  %v8667_v26 = vld [vmem:[%s10118_s29 + $0x640] ss:$16 sps:$4 sm:$0xff]  }
  0xfa   : > { %5944 = vmatprep.subr.bf16.mxu0 %v8578_v32  ;;  %6518 = vmatprep.subr.bf16.mxu1 %v8581_v33  ;;  %v8664_v32 = vld [vmem:[%s10118_s29 + $0x628] ss:$16 sps:$4 sm:$0xff]   ;;  %v8669_v33 = vld [vmem:[%s10118_s29 + $0x644] ss:$16 sps:$4 sm:$0xff]  }
  0xfd   : > { %5945 = vmatpush1.bf16.msra.mxu0 %v8576_v34  ;;  %6519 = vmatpush1.bf16.msra.mxu1 %v8579_v35  ;;  %v8672_v34 = vld [vmem:[%s10118_s29 + $0x64c] ss:$16 sps:$4 sm:$0xff]   ;;  %v8670_v35 = vld [vmem:[%s10118_s29 + $0x648] ss:$16 sps:$4 sm:$0xff]  }
  0xfe   : > { %5946 = vmatprep.subr.bf16.mxu0 %v8584_v36  ;;  %6520 = vmatprep.subr.bf16.mxu1 %v8587_v37  ;;  %v8675_v36 = vld [vmem:[%s10118_s29 + $0x664] ss:$16 sps:$4 sm:$0xff]   ;;  %v8678_v37 = vld [vmem:[%s10118_s29 + $0x66c] ss:$16 sps:$4 sm:$0xff]  }
 0x101   : > { %5947 = vmatpush1.bf16.msra.mxu0 %v8582_v38  ;;  %6521 = vmatpush1.bf16.msra.mxu1 %v8585_v39  ;;  %v8673_v38 = vld [vmem:[%s10118_s29 + $0x660] ss:$16 sps:$4 sm:$0xff]   ;;  %v8676_v39 = vld [vmem:[%s10118_s29 + $0x668] ss:$16 sps:$4 sm:$0xff]  }
 0x102   : > { %5948 = vmatprep.subr.bf16.mxu0 %v8590_v40  ;;  %6522 = vmatprep.subr.bf16.mxu1 %v8593_v41  ;;  %v8681_v40 = vld [vmem:[%s10118_s29 + $0x684] ss:$16 sps:$4 sm:$0xff]   ;;  %v8684_v41 = vld [vmem:[%s10118_s29 + $0x68c] ss:$16 sps:$4 sm:$0xff]  }
 0x105   : > { %5949 = vmatpush1.bf16.msra.mxu0 %v8588_v42  ;;  %6523 = vmatpush1.bf16.msra.mxu1 %v8591_v43  ;;  %v8679_v42 = vld [vmem:[%s10118_s29 + $0x680] ss:$16 sps:$4 sm:$0xff]   ;;  %v8682_v43 = vld [vmem:[%s10118_s29 + $0x688] ss:$16 sps:$4 sm:$0xff]  }
 0x106   : > { %5950 = vmatprep.subr.bf16.mxu0 %v8596_v45  ;;  %6524 = vmatprep.subr.bf16.mxu1 %v8599_v46  ;;  %v8687_v45 = vld [vmem:[%s10118_s29 + $0x6a4] ss:$16 sps:$4 sm:$0xff]   ;;  %v8690_v46 = vld [vmem:[%s10118_s29 + $0x6ac] ss:$16 sps:$4 sm:$0xff]  }
 0x109   : > { %5951 = vmatpush1.bf16.msra.mxu0 %v8594_v47  ;;  %6525 = vmatpush1.bf16.msra.mxu1 %v8597_v48  ;;  %v8685_v47 = vld [vmem:[%s10118_s29 + $0x6a0] ss:$16 sps:$4 sm:$0xff]   ;;  %v8688_v48 = vld [vmem:[%s10118_s29 + $0x6a8] ss:$16 sps:$4 sm:$0xff]  }
 0x10a   : > { %5952 = vmatprep.subr.bf16.mxu0 %v8602_v49  ;;  %6526 = vmatprep.subr.bf16.mxu1 %v8605_v51  ;;  %v8693_v49 = vld [vmem:[%s10118_s29 + $0x6c4] ss:$16 sps:$4 sm:$0xff]   ;;  %v8696_v51 = vld [vmem:[%s10118_s29 + $0x6cc] ss:$16 sps:$4 sm:$0xff]  }
 0x10d   : > { %5953 = vmatpush1.bf16.msra.mxu0 %v8600_v52  ;;  %6527 = vmatpush1.bf16.msra.mxu1 %v8603_v54  ;;  %v8691_v52 = vld [vmem:[%s10118_s29 + $0x6c0] ss:$16 sps:$4 sm:$0xff]   ;;  %v8694_v54 = vld [vmem:[%s10118_s29 + $0x6c8] ss:$16 sps:$4 sm:$0xff]  }
 0x10e   : > { %5954 = vmatprep.subr.bf16.mxu0 %v8608_v55  ;;  %6528 = vmatprep.subr.bf16.mxu1 %v8611_v56  ;;  %v8699_v55 = vld [vmem:[%s10118_s29 + $0x6e4] ss:$16 sps:$4 sm:$0xff]   ;;  %v8702_v56 = vld [vmem:[%s10118_s29 + $0x6ec] ss:$16 sps:$4 sm:$0xff]  }
 0x111   : > { %5955 = vmatpush1.bf16.msra.mxu0 %v8606_v57  ;;  %6529 = vmatpush1.bf16.msra.mxu1 %v8609_v58  ;;  %v8697_v57 = vld [vmem:[%s10118_s29 + $0x6e0] ss:$16 sps:$4 sm:$0xff]   ;;  %v8700_v58 = vld [vmem:[%s10118_s29 + $0x6e8] ss:$16 sps:$4 sm:$0xff]  }
 0x112   : > { %5956 = vmatprep.subr.bf16.mxu0 %v8614_v59  ;;  %6530 = vmatprep.subr.bf16.mxu1 %v8617_v60  ;;  %v8705_v59 = vld [vmem:[%s10118_s29 + $0x704] ss:$16 sps:$4 sm:$0xff]   ;;  %v8708_v60 = vld [vmem:[%s10118_s29 + $0x70c] ss:$16 sps:$4 sm:$0xff]  }
 0x115   : > { %5957 = vmatpush1.bf16.msra.mxu0 %v8612_v61  ;;  %6531 = vmatpush1.bf16.msra.mxu1 %v8615_v62  ;;  %v8703_v61 = vld [vmem:[%s10118_s29 + $0x700] ss:$16 sps:$4 sm:$0xff]   ;;  %v8706_v62 = vld [vmem:[%s10118_s29 + $0x708] ss:$16 sps:$4 sm:$0xff]  }
 0x116   : > { %5958 = vmatprep.subr.bf16.mxu0 %v8620_v63  ;;  %6532 = vmatprep.subr.bf16.mxu1 %v8623_v0  ;;  %v8711_v63 = vld [vmem:[%s10118_s29 + $0x724] ss:$16 sps:$4 sm:$0xff]   ;;  %v8714_v0 = vld [vmem:[%s10118_s29 + $0x72c] ss:$16 sps:$4 sm:$0xff]  }
 0x119   : > { %5959 = vmatpush1.bf16.msra.mxu0 %v8618_v1  ;;  %6533 = vmatpush1.bf16.msra.mxu1 %v8621_v2  ;;  %v8709_v1 = vld [vmem:[%s10118_s29 + $0x720] ss:$16 sps:$4 sm:$0xff]   ;;  %v8712_v2 = vld [vmem:[%s10118_s29 + $0x728] ss:$16 sps:$4 sm:$0xff]  }
 0x11a   : > { %5960 = vmatprep.subr.bf16.mxu0 %v8626_v3  ;;  %6534 = vmatprep.subr.bf16.mxu1 %v8629_v4  ;;  %v8717_v3 = vld [vmem:[%s10118_s29 + $0x744] ss:$16 sps:$4 sm:$0xff]   ;;  %v8720_v4 = vld [vmem:[%s10118_s29 + $0x74c] ss:$16 sps:$4 sm:$0xff]  }
 0x11d   : > { %5961 = vmatpush1.bf16.msra.mxu0 %v8624_v5  ;;  %6535 = vmatpush1.bf16.msra.mxu1 %v8627_v6  ;;  %v8715_v5 = vld [vmem:[%s10118_s29 + $0x740] ss:$16 sps:$4 sm:$0xff]   ;;  %v8718_v6 = vld [vmem:[%s10118_s29 + $0x748] ss:$16 sps:$4 sm:$0xff]  }
 0x11e   : > { %5962 = vmatprep.subr.bf16.mxu0 %v8632_v7  ;;  %6536 = vmatprep.subr.bf16.mxu1 %v8635_v8  ;;  %v8723_v7 = vld [vmem:[%s10118_s29 + $0x764] ss:$16 sps:$4 sm:$0xff]   ;;  %v8726_v8 = vld [vmem:[%s10118_s29 + $0x76c] ss:$16 sps:$4 sm:$0xff]  }
 0x121   : > { %5963 = vmatpush1.bf16.msra.mxu0 %v8630_v9  ;;  %6537 = vmatpush1.bf16.msra.mxu1 %v8633_v10  ;;  %v8721_v9 = vld [vmem:[%s10118_s29 + $0x760] ss:$16 sps:$4 sm:$0xff]   ;;  %v8724_v10 = vld [vmem:[%s10118_s29 + $0x768] ss:$16 sps:$4 sm:$0xff]  }
 0x122   : > { %5964 = vmatprep.subr.bf16.mxu0 %v8638_v11  ;;  %6538 = vmatprep.subr.bf16.mxu1 %v8641_v12  ;;  %v8729_v11 = vld [vmem:[%s10118_s29 + $0x784] ss:$16 sps:$4 sm:$0xff]   ;;  %v8732_v12 = vld [vmem:[%s10118_s29 + $0x78c] ss:$16 sps:$4 sm:$0xff]  }
 0x125   : > { %5965 = vmatpush1.bf16.msra.mxu0 %v8636_v13  ;;  %6539 = vmatpush1.bf16.msra.mxu1 %v8639_v15  ;;  %v8727_v13 = vld [vmem:[%s10118_s29 + $0x780] ss:$16 sps:$4 sm:$0xff]   ;;  %v8730_v15 = vld [vmem:[%s10118_s29 + $0x788] ss:$16 sps:$4 sm:$0xff]  }
 0x126   : > { %5966 = vmatprep.subr.bf16.mxu0 %v8644_v17  ;;  %6540 = vmatprep.subr.bf16.mxu1 %v8647_v53  ;;  %v8735_v17 = vld [vmem:[%s10118_s29 + $0x7a4] ss:$16 sps:$4 sm:$0xff]   ;;  %v8738_v53 = vld [vmem:[%s10118_s29 + $0x7ac] ss:$16 sps:$4 sm:$0xff]  }
 0x129   : > { %5967 = vmatpush1.bf16.msra.mxu0 %v8642_v18  ;;  %6541 = vmatpush1.bf16.msra.mxu1 %v8645_v19  ;;  %v8733_v18 = vld [vmem:[%s10118_s29 + $0x7a0] ss:$16 sps:$4 sm:$0xff]   ;;  %v8736_v19 = vld [vmem:[%s10118_s29 + $0x7a8] ss:$16 sps:$4 sm:$0xff]  }
 0x12a   : > { %5968 = vmatprep.subr.bf16.mxu0 %v8650_v20  ;;  %6542 = vmatprep.subr.bf16.mxu1 %v8653_v21  ;;  %v8741_v20 = vld [vmem:[%s10118_s29 + $0x7c4] ss:$16 sps:$4 sm:$0xff]   ;;  %v8744_v21 = vld [vmem:[%s10118_s29 + $0x7cc] ss:$16 sps:$4 sm:$0xff]  }
 0x12d   : > { %5969 = vmatpush1.bf16.msra.mxu0 %v8648_v22  ;;  %6543 = vmatpush1.bf16.msra.mxu1 %v8651_v23  ;;  %v10435_v22 = vld.sshfl [vmem:[%s10143_s1 + $0x8] sm:$0xff pattern:$0x75316420] }
 0x12e   : > { %5979 = vmatprep.subr.bf16.mxu0 %v8657_v24  ;;  %6553 = vmatprep.subr.bf16.mxu1 %v8660_v25  ;;  %v8739_v23 = vld [vmem:[%s10118_s29 + $0x7c0] ss:$16 sps:$4 sm:$0xff]   ;;  %v8742_v24 = vld [vmem:[%s10118_s29 + $0x7c8] ss:$16 sps:$4 sm:$0xff]   ;;  %v8747_v25 = vld [vmem:[%s10118_s29 + $0x7e4] ss:$16 sps:$4 sm:$0xff]  }
 0x130   : > { %5971 = vmatmul.mubr.bf16.vlgmr.msra.gmra.mrb[0].mxu0 %v10373_v14  ;;  %6545 = vmatmul.mubr.bf16.vlgmr.msra.gmra.mrb[0].mxu1 %v10373_v14 }
 0x131   : > { %5980 = vmatpush1.bf16.msra.mxu0 %v8655_v27  ;;  %6554 = vmatpush1.bf16.msra.mxu1 %v8658_v28  ;;  %v8750_v27 = vld [vmem:[%s10118_s29 + $0x7ec] ss:$16 sps:$4 sm:$0xff]   ;;  %v8745_v28 = vld [vmem:[%s10118_s29 + $0x7e0] ss:$16 sps:$4 sm:$0xff]  }
 0x132   : > { %5981 = vmatprep.subr.bf16.mxu0 %v8663_v29  ;;  %6555 = vmatprep.subr.bf16.mxu1 %v8666_v30  ;;  %v8748_v29 = vld [vmem:[%s10118_s29 + $0x7e8] ss:$16 sps:$4 sm:$0xff]   ;;  %v8753_v30 = vld [vmem:[%s10118_s29 + $0x804] ss:$16 sps:$4 sm:$0xff]  }
 0x133   : > { %6011 = vmatprep.mubr.bf16.mxu0 %v1225_v31  ;;  %6585 = vmatprep.mubr.bf16.mxu1 %v1225_v31  ;;  %v8756_v31 = vld [vmem:[%s10118_s29 + $0x80c] ss:$16 sps:$4 sm:$0xff]  }
 0x135   : > { %5982 = vmatpush1.bf16.msra.mxu0 %v8661_v16  ;;  %6556 = vmatpush1.bf16.msra.mxu1 %v8664_v32  ;;  %v1241_v16 = vcombine.high %v10435_v22, %v10435_v22  ;;  %v1223_v32 = vcombine.high %v10373_v14, %v10373_v14  ;;  %v8757_v14 = vld [vmem:[%s10118_s29 + $0x820] ss:$16 sps:$4 sm:$0xff]  }
 0x136   : > { %5983 = vmatprep.subr.bf16.mxu0 %v8669_v33  ;;  %6557 = vmatprep.subr.bf16.mxu1 %v8672_v34  ;;  %v8751_v33 = vld [vmem:[%s10118_s29 + $0x800] ss:$16 sps:$4 sm:$0xff]   ;;  %v8754_v34 = vld [vmem:[%s10118_s29 + $0x808] ss:$16 sps:$4 sm:$0xff]  }
 0x139   : > { %5984 = vmatpush1.bf16.msra.mxu0 %v8667_v26  ;;  %6558 = vmatpush1.bf16.msra.mxu1 %v8670_v35  ;;  %v8759_v26 = vld [vmem:[%s10118_s29 + $0x824] ss:$16 sps:$4 sm:$0xff]   ;;  %v8762_v35 = vld [vmem:[%s10118_s29 + $0x82c] ss:$16 sps:$4 sm:$0xff]  }
 0x13a   : > { %5985 = vmatprep.subr.bf16.mxu0 %v8675_v36  ;;  %6559 = vmatprep.subr.bf16.mxu1 %v8678_v37  ;;  %v10454_v36 = vrot.slane %v1241_v16, %v10193_v50  ;;  %v8760_v37 = vld [vmem:[%s10118_s29 + $0x828] ss:$16 sps:$4 sm:$0xff]   ;;  %v8843_v16 = vld [vmem:[%s10118_s29 + $0x9e4] ss:$16 sps:$4 sm:$0xff]  }
 0x13d   : > { %5986 = vmatpush1.bf16.msra.mxu0 %v8673_v38  ;;  %6560 = vmatpush1.bf16.msra.mxu1 %v8676_v39  ;;  %v8765_v38 = vld [vmem:[%s10118_s29 + $0x844] ss:$16 sps:$4 sm:$0xff]   ;;  %v8768_v39 = vld [vmem:[%s10118_s29 + $0x84c] ss:$16 sps:$4 sm:$0xff]  }
 0x13e   : > { %5987 = vmatprep.subr.bf16.mxu0 %v8681_v40  ;;  %6561 = vmatprep.subr.bf16.mxu1 %v8684_v41  ;;  %v8763_v40 = vld [vmem:[%s10118_s29 + $0x840] ss:$16 sps:$4 sm:$0xff]   ;;  %v8766_v41 = vld [vmem:[%s10118_s29 + $0x848] ss:$16 sps:$4 sm:$0xff]  }
 0x141   : > { %5988 = vmatpush1.bf16.msra.mxu0 %v8679_v42  ;;  %6562 = vmatpush1.bf16.msra.mxu1 %v8682_v43  ;;  %v8771_v42 = vld [vmem:[%s10118_s29 + $0x864] ss:$16 sps:$4 sm:$0xff]   ;;  %v8774_v43 = vld [vmem:[%s10118_s29 + $0x86c] ss:$16 sps:$4 sm:$0xff]  }
 0x142   : > { %5989 = vmatprep.subr.bf16.mxu0 %v8687_v45  ;;  %6563 = vmatprep.subr.bf16.mxu1 %v8690_v46  ;;  %v8769_v45 = vld [vmem:[%s10118_s29 + $0x860] ss:$16 sps:$4 sm:$0xff]   ;;  %v8772_v46 = vld [vmem:[%s10118_s29 + $0x868] ss:$16 sps:$4 sm:$0xff]  }
 0x145   : > { %5990 = vmatpush1.bf16.msra.mxu0 %v8685_v47  ;;  %6564 = vmatpush1.bf16.msra.mxu1 %v8688_v48  ;;  %v8777_v47 = vld [vmem:[%s10118_s29 + $0x884] ss:$16 sps:$4 sm:$0xff]   ;;  %v8780_v48 = vld [vmem:[%s10118_s29 + $0x88c] ss:$16 sps:$4 sm:$0xff]  }
 0x146   : > { %5991 = vmatprep.subr.bf16.mxu0 %v8693_v49  ;;  %6565 = vmatprep.subr.bf16.mxu1 %v8696_v51  ;;  %v8775_v49 = vld [vmem:[%s10118_s29 + $0x880] ss:$16 sps:$4 sm:$0xff]   ;;  %v8778_v51 = vld [vmem:[%s10118_s29 + $0x888] ss:$16 sps:$4 sm:$0xff]  }
 0x149   : > { %5992 = vmatpush1.bf16.msra.mxu0 %v8691_v52  ;;  %6566 = vmatpush1.bf16.msra.mxu1 %v8694_v54  ;;  %v8783_v52 = vld [vmem:[%s10118_s29 + $0x8a4] ss:$16 sps:$4 sm:$0xff]   ;;  %v8786_v54 = vld [vmem:[%s10118_s29 + $0x8ac] ss:$16 sps:$4 sm:$0xff]  }
 0x14a   : > { %5993 = vmatprep.subr.bf16.mxu0 %v8699_v55  ;;  %6567 = vmatprep.subr.bf16.mxu1 %v8702_v56  ;;  %v8781_v55 = vld [vmem:[%s10118_s29 + $0x8a0] ss:$16 sps:$4 sm:$0xff]   ;;  %v8784_v56 = vld [vmem:[%s10118_s29 + $0x8a8] ss:$16 sps:$4 sm:$0xff]  }
 0x14d   : > { %5994 = vmatpush1.bf16.msra.mxu0 %v8697_v57  ;;  %6568 = vmatpush1.bf16.msra.mxu1 %v8700_v58  ;;  %v8789_v57 = vld [vmem:[%s10118_s29 + $0x8c4] ss:$16 sps:$4 sm:$0xff]   ;;  %v8792_v58 = vld [vmem:[%s10118_s29 + $0x8cc] ss:$16 sps:$4 sm:$0xff]  }
 0x14e   : > { %5995 = vmatprep.subr.bf16.mxu0 %v8705_v59  ;;  %6569 = vmatprep.subr.bf16.mxu1 %v8708_v60  ;;  %v8787_v59 = vld [vmem:[%s10118_s29 + $0x8c0] ss:$16 sps:$4 sm:$0xff]   ;;  %v8790_v60 = vld [vmem:[%s10118_s29 + $0x8c8] ss:$16 sps:$4 sm:$0xff]  }
 0x151   : > { %5996 = vmatpush1.bf16.msra.mxu0 %v8703_v61  ;;  %6570 = vmatpush1.bf16.msra.mxu1 %v8706_v62  ;;  %v8795_v61 = vld [vmem:[%s10118_s29 + $0x8e4] ss:$16 sps:$4 sm:$0xff]   ;;  %v8798_v62 = vld [vmem:[%s10118_s29 + $0x8ec] ss:$16 sps:$4 sm:$0xff]  }
 0x152   : > { %5997 = vmatprep.subr.bf16.mxu0 %v8711_v63  ;;  %6571 = vmatprep.subr.bf16.mxu1 %v8714_v0  ;;  %v8793_v63 = vld [vmem:[%s10118_s29 + $0x8e0] ss:$16 sps:$4 sm:$0xff]   ;;  %v8796_v0 = vld [vmem:[%s10118_s29 + $0x8e8] ss:$16 sps:$4 sm:$0xff]  }
 0x155   : > { %5998 = vmatpush1.bf16.msra.mxu0 %v8709_v1  ;;  %6572 = vmatpush1.bf16.msra.mxu1 %v8712_v2  ;;  %v8801_v1 = vld [vmem:[%s10118_s29 + $0x904] ss:$16 sps:$4 sm:$0xff]   ;;  %v8804_v2 = vld [vmem:[%s10118_s29 + $0x90c] ss:$16 sps:$4 sm:$0xff]  }
 0x156   : > { %5999 = vmatprep.subr.bf16.mxu0 %v8717_v3  ;;  %6573 = vmatprep.subr.bf16.mxu1 %v8720_v4  ;;  %v8799_v3 = vld [vmem:[%s10118_s29 + $0x900] ss:$16 sps:$4 sm:$0xff]   ;;  %v8802_v4 = vld [vmem:[%s10118_s29 + $0x908] ss:$16 sps:$4 sm:$0xff]  }
 0x159   : > { %6000 = vmatpush1.bf16.msra.mxu0 %v8715_v5  ;;  %6574 = vmatpush1.bf16.msra.mxu1 %v8718_v6  ;;  %v8807_v5 = vld [vmem:[%s10118_s29 + $0x924] ss:$16 sps:$4 sm:$0xff]   ;;  %v8810_v6 = vld [vmem:[%s10118_s29 + $0x92c] ss:$16 sps:$4 sm:$0xff]  }
 0x15a   : > { %6001 = vmatprep.subr.bf16.mxu0 %v8723_v7  ;;  %6575 = vmatprep.subr.bf16.mxu1 %v8726_v8  ;;  %v8805_v7 = vld [vmem:[%s10118_s29 + $0x920] ss:$16 sps:$4 sm:$0xff]   ;;  %v8808_v8 = vld [vmem:[%s10118_s29 + $0x928] ss:$16 sps:$4 sm:$0xff]  }
 0x15d   : > { %6002 = vmatpush1.bf16.msra.mxu0 %v8721_v9  ;;  %6576 = vmatpush1.bf16.msra.mxu1 %v8724_v10  ;;  %v8813_v9 = vld [vmem:[%s10118_s29 + $0x944] ss:$16 sps:$4 sm:$0xff]   ;;  %v8816_v10 = vld [vmem:[%s10118_s29 + $0x94c] ss:$16 sps:$4 sm:$0xff]  }
 0x15e   : > { %6003 = vmatprep.subr.bf16.mxu0 %v8729_v11  ;;  %6577 = vmatprep.subr.bf16.mxu1 %v8732_v12  ;;  %v8811_v11 = vld [vmem:[%s10118_s29 + $0x940] ss:$16 sps:$4 sm:$0xff]   ;;  %v8814_v12 = vld [vmem:[%s10118_s29 + $0x948] ss:$16 sps:$4 sm:$0xff]  }
 0x161   : > { %6004 = vmatpush1.bf16.msra.mxu0 %v8727_v13  ;;  %6578 = vmatpush1.bf16.msra.mxu1 %v8730_v15  ;;  %v8819_v13 = vld [vmem:[%s10118_s29 + $0x964] ss:$16 sps:$4 sm:$0xff]   ;;  %v8822_v15 = vld [vmem:[%s10118_s29 + $0x96c] ss:$16 sps:$4 sm:$0xff]  }
 0x162   : > { %6005 = vmatprep.subr.bf16.mxu0 %v8735_v17  ;;  %6579 = vmatprep.subr.bf16.mxu1 %v8738_v53  ;;  %v8817_v17 = vld [vmem:[%s10118_s29 + $0x960] ss:$16 sps:$4 sm:$0xff]   ;;  %v8820_v53 = vld [vmem:[%s10118_s29 + $0x968] ss:$16 sps:$4 sm:$0xff]  }
 0x165   : > { %6006 = vmatpush1.bf16.msra.mxu0 %v8733_v18  ;;  %6580 = vmatpush1.bf16.msra.mxu1 %v8736_v19  ;;  %v8825_v18 = vld [vmem:[%s10118_s29 + $0x984] ss:$16 sps:$4 sm:$0xff]   ;;  %v8828_v19 = vld [vmem:[%s10118_s29 + $0x98c] ss:$16 sps:$4 sm:$0xff]  }
 0x166   : > { %6007 = vmatprep.subr.bf16.mxu0 %v8741_v20  ;;  %6581 = vmatprep.subr.bf16.mxu1 %v8744_v21  ;;  %v8823_v20 = vld [vmem:[%s10118_s29 + $0x980] ss:$16 sps:$4 sm:$0xff]   ;;  %v8826_v21 = vld [vmem:[%s10118_s29 + $0x988] ss:$16 sps:$4 sm:$0xff]  }
 0x169   : > { %6008 = vmatpush1.bf16.msra.mxu0 %v8739_v23  ;;  %6582 = vmatpush1.bf16.msra.mxu1 %v8742_v24  ;;  %v8831_v23 = vld [vmem:[%s10118_s29 + $0x9a4] ss:$16 sps:$4 sm:$0xff]   ;;  %v8834_v24 = vld [vmem:[%s10118_s29 + $0x9ac] ss:$16 sps:$4 sm:$0xff]  }
 0x16a   : > { %6009 = vmatprep.subr.bf16.mxu0 %v8747_v25  ;;  %6583 = vmatprep.subr.bf16.mxu1 %v8750_v27  ;;  %v8829_v25 = vld [vmem:[%s10118_s29 + $0x9a0] ss:$16 sps:$4 sm:$0xff]   ;;  %v8832_v27 = vld [vmem:[%s10118_s29 + $0x9a8] ss:$16 sps:$4 sm:$0xff]  }
 0x16d   : > { %6010 = vmatpush1.bf16.msra.mxu0 %v8745_v28  ;;  %6584 = vmatpush1.bf16.msra.mxu1 %v8748_v29  ;;  %v8837_v28 = vld [vmem:[%s10118_s29 + $0x9c4] ss:$16 sps:$4 sm:$0xff]   ;;  %v8840_v29 = vld [vmem:[%s10118_s29 + $0x9cc] ss:$16 sps:$4 sm:$0xff]  }
 0x16e   : > { %6020 = vmatprep.subr.bf16.mxu0 %v8753_v30  ;;  %6594 = vmatprep.subr.bf16.mxu1 %v8756_v31  ;;  %v8835_v30 = vld [vmem:[%s10118_s29 + $0x9c0] ss:$16 sps:$4 sm:$0xff]   ;;  %v8838_v31 = vld [vmem:[%s10118_s29 + $0x9c8] ss:$16 sps:$4 sm:$0xff]  }
 0x170   : > { %6012 = vmatmul.mubr.bf16.vlgmr.msra.gmra.mrb[0].mxu0 %v1223_v32  ;;  %6586 = vmatmul.mubr.bf16.vlgmr.msra.gmra.mrb[0].mxu1 %v1223_v32  ;;  %v8846_v32 = vld [vmem:[%s10118_s29 + $0x9ec] ss:$16 sps:$4 sm:$0xff]  }
 0x171   : > { %6021 = vmatpush1.bf16.msra.mxu0 %v8751_v33  ;;  %6595 = vmatpush1.bf16.msra.mxu1 %v8754_v34  ;;  %v8841_v33 = vld [vmem:[%s10118_s29 + $0x9e0] ss:$16 sps:$4 sm:$0xff]   ;;  %v8844_v34 = vld [vmem:[%s10118_s29 + $0x9e8] ss:$16 sps:$4 sm:$0xff]  }
 0x172   : > { %6022 = vmatprep.subr.bf16.mxu0 %v8759_v26  ;;  %6596 = vmatprep.subr.bf16.mxu1 %v8762_v35  ;;  %v8849_v26 = vld [vmem:[%s10118_s29 + $0xa04] ss:$16 sps:$4 sm:$0xff]   ;;  %v8852_v35 = vld [vmem:[%s10118_s29 + $0xa0c] ss:$16 sps:$4 sm:$0xff]  }
 0x173   : > { %6052 = vmatprep.mubr.bf16.mxu0 %v10454_v36  ;;  %6626 = vmatprep.mubr.bf16.mxu1 %v10454_v36 }
 0x175   : > { %6023 = vmatpush1.bf16.msra.mxu0 %v8757_v14  ;;  %6597 = vmatpush1.bf16.msra.mxu1 %v8760_v37  ;;  %v10520_v14 = vrot.slane %v10435_v22, %v10193_v50  ;;  %v8847_v37 = vld [vmem:[%s10118_s29 + $0xa00] ss:$16 sps:$4 sm:$0xff]  }
 0x176   : > { %6024 = vmatprep.subr.bf16.mxu0 %v8765_v38  ;;  %6598 = vmatprep.subr.bf16.mxu1 %v8768_v39  ;;  %v8850_v38 = vld [vmem:[%s10118_s29 + $0xa08] ss:$16 sps:$4 sm:$0xff]   ;;  %v8855_v39 = vld [vmem:[%s10118_s29 + $0xa24] ss:$16 sps:$4 sm:$0xff]   ;;  %v8853_v22 = vld [vmem:[%s10118_s29 + $0xa20] ss:$16 sps:$4 sm:$0xff]  }
 0x179   : > { %6025 = vmatpush1.bf16.msra.mxu0 %v8763_v40  ;;  %6599 = vmatpush1.bf16.msra.mxu1 %v8766_v41  ;;  %v8858_v40 = vld [vmem:[%s10118_s29 + $0xa2c] ss:$16 sps:$4 sm:$0xff]   ;;  %v1273_v41 = vcombine.high %v10454_v36, %v10454_v36  ;;  %v8859_v36 = vld [vmem:[%s10118_s29 + $0xa40] ss:$16 sps:$4 sm:$0xff]  }
 0x17a   : > { %6026 = vmatprep.subr.bf16.mxu0 %v8771_v42  ;;  %6600 = vmatprep.subr.bf16.mxu1 %v8774_v43  ;;  %v8856_v42 = vld [vmem:[%s10118_s29 + $0xa28] ss:$16 sps:$4 sm:$0xff]   ;;  %v8861_v43 = vld [vmem:[%s10118_s29 + $0xa44] ss:$16 sps:$4 sm:$0xff]  }
 0x17d   : > { %6027 = vmatpush1.bf16.msra.mxu0 %v8769_v45  ;;  %6601 = vmatpush1.bf16.msra.mxu1 %v8772_v46  ;;  %v8864_v45 = vld [vmem:[%s10118_s29 + $0xa4c] ss:$16 sps:$4 sm:$0xff]   ;;  %v8862_v46 = vld [vmem:[%s10118_s29 + $0xa48] ss:$16 sps:$4 sm:$0xff]  }
 0x17e   : > { %6028 = vmatprep.subr.bf16.mxu0 %v8777_v47  ;;  %6602 = vmatprep.subr.bf16.mxu1 %v8780_v48  ;;  %v8867_v47 = vld [vmem:[%s10118_s29 + $0xa64] ss:$16 sps:$4 sm:$0xff]   ;;  %v8870_v48 = vld [vmem:[%s10118_s29 + $0xa6c] ss:$16 sps:$4 sm:$0xff]  }
 0x181   : > { %6029 = vmatpush1.bf16.msra.mxu0 %v8775_v49  ;;  %6603 = vmatpush1.bf16.msra.mxu1 %v8778_v51  ;;  %v8865_v49 = vld [vmem:[%s10118_s29 + $0xa60] ss:$16 sps:$4 sm:$0xff]   ;;  %v8868_v51 = vld [vmem:[%s10118_s29 + $0xa68] ss:$16 sps:$4 sm:$0xff]  }
 0x182   : > { %6030 = vmatprep.subr.bf16.mxu0 %v8783_v52  ;;  %6604 = vmatprep.subr.bf16.mxu1 %v8786_v54  ;;  %v8873_v52 = vld [vmem:[%s10118_s29 + $0xa84] ss:$16 sps:$4 sm:$0xff]   ;;  %v8876_v54 = vld [vmem:[%s10118_s29 + $0xa8c] ss:$16 sps:$4 sm:$0xff]  }
 0x185   : > { %6031 = vmatpush1.bf16.msra.mxu0 %v8781_v55  ;;  %6605 = vmatpush1.bf16.msra.mxu1 %v8784_v56  ;;  %v8871_v55 = vld [vmem:[%s10118_s29 + $0xa80] ss:$16 sps:$4 sm:$0xff]   ;;  %v8874_v56 = vld [vmem:[%s10118_s29 + $0xa88] ss:$16 sps:$4 sm:$0xff]  }
 0x186   : > { %6032 = vmatprep.subr.bf16.mxu0 %v8789_v57  ;;  %6606 = vmatprep.subr.bf16.mxu1 %v8792_v58  ;;  %v8879_v57 = vld [vmem:[%s10118_s29 + $0xaa4] ss:$16 sps:$4 sm:$0xff]   ;;  %v8882_v58 = vld [vmem:[%s10118_s29 + $0xaac] ss:$16 sps:$4 sm:$0xff]  }
 0x189   : > { %6033 = vmatpush1.bf16.msra.mxu0 %v8787_v59  ;;  %6607 = vmatpush1.bf16.msra.mxu1 %v8790_v60  ;;  %v8877_v59 = vld [vmem:[%s10118_s29 + $0xaa0] ss:$16 sps:$4 sm:$0xff]   ;;  %v8880_v60 = vld [vmem:[%s10118_s29 + $0xaa8] ss:$16 sps:$4 sm:$0xff]  }
 0x18a   : > { %6034 = vmatprep.subr.bf16.mxu0 %v8795_v61  ;;  %6608 = vmatprep.subr.bf16.mxu1 %v8798_v62  ;;  %v8885_v61 = vld [vmem:[%s10118_s29 + $0xac4] ss:$16 sps:$4 sm:$0xff]   ;;  %v8888_v62 = vld [vmem:[%s10118_s29 + $0xacc] ss:$16 sps:$4 sm:$0xff]  }
 0x18d   : > { %6035 = vmatpush1.bf16.msra.mxu0 %v8793_v63  ;;  %6609 = vmatpush1.bf16.msra.mxu1 %v8796_v0  ;;  %v8883_v63 = vld [vmem:[%s10118_s29 + $0xac0] ss:$16 sps:$4 sm:$0xff]   ;;  %v8886_v0 = vld [vmem:[%s10118_s29 + $0xac8] ss:$16 sps:$4 sm:$0xff]  }
 0x18e   : > { %6036 = vmatprep.subr.bf16.mxu0 %v8801_v1  ;;  %6610 = vmatprep.subr.bf16.mxu1 %v8804_v2  ;;  %v8891_v1 = vld [vmem:[%s10118_s29 + $0xae4] ss:$16 sps:$4 sm:$0xff]   ;;  %v8894_v2 = vld [vmem:[%s10118_s29 + $0xaec] ss:$16 sps:$4 sm:$0xff]  }
 0x191   : > { %6037 = vmatpush1.bf16.msra.mxu0 %v8799_v3  ;;  %6611 = vmatpush1.bf16.msra.mxu1 %v8802_v4  ;;  %v8889_v3 = vld [vmem:[%s10118_s29 + $0xae0] ss:$16 sps:$4 sm:$0xff]   ;;  %v8892_v4 = vld [vmem:[%s10118_s29 + $0xae8] ss:$16 sps:$4 sm:$0xff]  }
 0x192   : > { %6038 = vmatprep.subr.bf16.mxu0 %v8807_v5  ;;  %6612 = vmatprep.subr.bf16.mxu1 %v8810_v6  ;;  %v8897_v5 = vld [vmem:[%s10118_s29 + $0xb04] ss:$16 sps:$4 sm:$0xff]   ;;  %v8900_v6 = vld [vmem:[%s10118_s29 + $0xb0c] ss:$16 sps:$4 sm:$0xff]  }
 0x195   : > { %6039 = vmatpush1.bf16.msra.mxu0 %v8805_v7  ;;  %6613 = vmatpush1.bf16.msra.mxu1 %v8808_v8  ;;  %v8895_v7 = vld [vmem:[%s10118_s29 + $0xb00] ss:$16 sps:$4 sm:$0xff]   ;;  %v8898_v8 = vld [vmem:[%s10118_s29 + $0xb08] ss:$16 sps:$4 sm:$0xff]  }
 0x196   : > { %6040 = vmatprep.subr.bf16.mxu0 %v8813_v9  ;;  %6614 = vmatprep.subr.bf16.mxu1 %v8816_v10  ;;  %v8903_v9 = vld [vmem:[%s10118_s29 + $0xb24] ss:$16 sps:$4 sm:$0xff]   ;;  %v8906_v10 = vld [vmem:[%s10118_s29 + $0xb2c] ss:$16 sps:$4 sm:$0xff]  }
 0x199   : > { %6041 = vmatpush1.bf16.msra.mxu0 %v8811_v11  ;;  %6615 = vmatpush1.bf16.msra.mxu1 %v8814_v12  ;;  %v8901_v11 = vld [vmem:[%s10118_s29 + $0xb20] ss:$16 sps:$4 sm:$0xff]   ;;  %v8904_v12 = vld [vmem:[%s10118_s29 + $0xb28] ss:$16 sps:$4 sm:$0xff]  }
 0x19a   : > { %6042 = vmatprep.subr.bf16.mxu0 %v8819_v13  ;;  %6616 = vmatprep.subr.bf16.mxu1 %v8822_v15  ;;  %v8909_v13 = vld [vmem:[%s10118_s29 + $0xb44] ss:$16 sps:$4 sm:$0xff]   ;;  %v8912_v15 = vld [vmem:[%s10118_s29 + $0xb4c] ss:$16 sps:$4 sm:$0xff]  }
 0x19d   : > { %6043 = vmatpush1.bf16.msra.mxu0 %v8817_v17  ;;  %6617 = vmatpush1.bf16.msra.mxu1 %v8820_v53  ;;  %v8907_v17 = vld [vmem:[%s10118_s29 + $0xb40] ss:$16 sps:$4 sm:$0xff]   ;;  %v8910_v53 = vld [vmem:[%s10118_s29 + $0xb48] ss:$16 sps:$4 sm:$0xff]  }
 0x19e   : > { %6044 = vmatprep.subr.bf16.mxu0 %v8825_v18  ;;  %6618 = vmatprep.subr.bf16.mxu1 %v8828_v19  ;;  %v8915_v18 = vld [vmem:[%s10118_s29 + $0xb64] ss:$16 sps:$4 sm:$0xff]   ;;  %v8918_v19 = vld [vmem:[%s10118_s29 + $0xb6c] ss:$16 sps:$4 sm:$0xff]  }
 0x1a1   : > { %6045 = vmatpush1.bf16.msra.mxu0 %v8823_v20  ;;  %6619 = vmatpush1.bf16.msra.mxu1 %v8826_v21  ;;  %v8913_v20 = vld [vmem:[%s10118_s29 + $0xb60] ss:$16 sps:$4 sm:$0xff]   ;;  %v8916_v21 = vld [vmem:[%s10118_s29 + $0xb68] ss:$16 sps:$4 sm:$0xff]  }
 0x1a2   : > { %6046 = vmatprep.subr.bf16.mxu0 %v8831_v23  ;;  %6620 = vmatprep.subr.bf16.mxu1 %v8834_v24  ;;  %v8921_v23 = vld [vmem:[%s10118_s29 + $0xb84] ss:$16 sps:$4 sm:$0xff]   ;;  %v8924_v24 = vld [vmem:[%s10118_s29 + $0xb8c] ss:$16 sps:$4 sm:$0xff]  }
 0x1a5   : > { %6047 = vmatpush1.bf16.msra.mxu0 %v8829_v25  ;;  %6621 = vmatpush1.bf16.msra.mxu1 %v8832_v27  ;;  %v8919_v25 = vld [vmem:[%s10118_s29 + $0xb80] ss:$16 sps:$4 sm:$0xff]   ;;  %v8922_v27 = vld [vmem:[%s10118_s29 + $0xb88] ss:$16 sps:$4 sm:$0xff]  }
 0x1a6   : > { %6048 = vmatprep.subr.bf16.mxu0 %v8837_v28  ;;  %6622 = vmatprep.subr.bf16.mxu1 %v8840_v29  ;;  %v8927_v28 = vld [vmem:[%s10118_s29 + $0xba4] ss:$16 sps:$4 sm:$0xff]   ;;  %v8930_v29 = vld [vmem:[%s10118_s29 + $0xbac] ss:$16 sps:$4 sm:$0xff]  }
 0x1a9   : > { %6049 = vmatpush1.bf16.msra.mxu0 %v8835_v30  ;;  %6623 = vmatpush1.bf16.msra.mxu1 %v8838_v31  ;;  %v8925_v30 = vld [vmem:[%s10118_s29 + $0xba0] ss:$16 sps:$4 sm:$0xff]   ;;  %v8928_v31 = vld [vmem:[%s10118_s29 + $0xba8] ss:$16 sps:$4 sm:$0xff]  }
 0x1aa   : > { %6050 = vmatprep.subr.bf16.mxu0 %v8843_v16  ;;  %6624 = vmatprep.subr.bf16.mxu1 %v8846_v32  ;;  %v8933_v16 = vld [vmem:[%s10118_s29 + $0xbc4] ss:$16 sps:$4 sm:$0xff]   ;;  %v8936_v32 = vld [vmem:[%s10118_s29 + $0xbcc] ss:$16 sps:$4 sm:$0xff]  }
 0x1ad   : > { %6051 = vmatpush1.bf16.msra.mxu0 %v8841_v33  ;;  %6625 = vmatpush1.bf16.msra.mxu1 %v8844_v34  ;;  %v9713_v33 = vld [vmem:[%s10143_s1 + $0x8] sm:$0xff] }
 0x1ae   : > { %6061 = vmatprep.subr.bf16.mxu0 %v8849_v26  ;;  %6635 = vmatprep.subr.bf16.mxu1 %v8852_v35  ;;  %v1226_v34 = vcombine.high %v9713_v33, %v9713_v33  ;;  %v8931_v26 = vld [vmem:[%s10118_s29 + $0xbc0] ss:$16 sps:$4 sm:$0xff]   ;;  %v8934_v35 = vld [vmem:[%s10118_s29 + $0xbc8] ss:$16 sps:$4 sm:$0xff]  }
 0x1af   : > { %v9015_v33 = vld [vmem:[%s10118_s29 + $0xd80] ss:$16 sps:$4 sm:$0xff]  }
 0x1b0   : > { %6053 = vmatmul.mubr.bf16.vlgmr.msra.gmra.mrb[0].mxu0 %v10520_v14  ;;  %6627 = vmatmul.mubr.bf16.vlgmr.msra.gmra.mrb[0].mxu1 %v10520_v14 }
 0x1b1   : > { %6062 = vmatpush1.bf16.msra.mxu0 %v8847_v37  ;;  %6636 = vmatpush1.bf16.msra.mxu1 %v8850_v38  ;;  %v8939_v37 = vld [vmem:[%s10118_s29 + $0xbe4] ss:$16 sps:$4 sm:$0xff]   ;;  %v8942_v38 = vld [vmem:[%s10118_s29 + $0xbec] ss:$16 sps:$4 sm:$0xff]  }
 0x1b2   : > { %6063 = vmatprep.subr.bf16.mxu0 %v8855_v39  ;;  %6637 = vmatprep.subr.bf16.mxu1 %v8858_v40  ;;  %v10588_v39 = vrot.slane %v1226_v34, %v10193_v50  ;;  %v8937_v40 = vld [vmem:[%s10118_s29 + $0xbe0] ss:$16 sps:$4 sm:$0xff]   ;;  %v9018_v34 = vld [vmem:[%s10118_s29 + $0xd88] ss:$16 sps:$4 sm:$0xff]  }
 0x1b3   : > { %6093 = vmatprep.mubr.bf16.mxu0 %v1273_v41  ;;  %6667 = vmatprep.mubr.bf16.mxu1 %v1273_v41  ;;  %v8940_v41 = vld [vmem:[%s10118_s29 + $0xbe8] ss:$16 sps:$4 sm:$0xff]  }
 0x1b5   : > { %6064 = vmatpush1.bf16.msra.mxu0 %v8853_v22  ;;  %6638 = vmatpush1.bf16.msra.mxu1 %v8856_v42  ;;  %v8945_v22 = vld [vmem:[%s10118_s29 + $0xc04] ss:$16 sps:$4 sm:$0xff]   ;;  %v8948_v42 = vld [vmem:[%s10118_s29 + $0xc0c] ss:$16 sps:$4 sm:$0xff]  }
 0x1b6   : > { %6065 = vmatprep.subr.bf16.mxu0 %v8861_v43  ;;  %6639 = vmatprep.subr.bf16.mxu1 %v8864_v45  ;;  %v1242_v43 = vcombine.high %v10588_v39, %v10588_v39  ;;  %v1271_v45 = vcombine.high %v10520_v14, %v10520_v14  ;;  %v8949_v14 = vld [vmem:[%s10118_s29 + $0xc20] ss:$16 sps:$4 sm:$0xff]  }
 0x1b9   : > { %6066 = vmatpush1.bf16.msra.mxu0 %v8859_v36  ;;  %6640 = vmatpush1.bf16.msra.mxu1 %v8862_v46  ;;  %v8943_v36 = vld [vmem:[%s10118_s29 + $0xc00] ss:$16 sps:$4 sm:$0xff]   ;;  %v8946_v46 = vld [vmem:[%s10118_s29 + $0xc08] ss:$16 sps:$4 sm:$0xff]  }
 0x1ba   : > { %6067 = vmatprep.subr.bf16.mxu0 %v8867_v47  ;;  %6641 = vmatprep.subr.bf16.mxu1 %v8870_v48  ;;  %v8951_v47 = vld [vmem:[%s10118_s29 + $0xc24] ss:$16 sps:$4 sm:$0xff]   ;;  %v8954_v48 = vld [vmem:[%s10118_s29 + $0xc2c] ss:$16 sps:$4 sm:$0xff]  }
 0x1bd   : > { %6068 = vmatpush1.bf16.msra.mxu0 %v8865_v49  ;;  %6642 = vmatpush1.bf16.msra.mxu1 %v8868_v51  ;;  %v10603_v49 = vrot.slane %v1242_v43, %v10193_v50  ;;  %v8952_v51 = vld [vmem:[%s10118_s29 + $0xc28] ss:$16 sps:$4 sm:$0xff]   ;;  %v9035_v43 = vld [vmem:[%s10118_s29 + $0xde4] ss:$16 sps:$4 sm:$0xff]  }
 0x1be   : > { %6069 = vmatprep.subr.bf16.mxu0 %v8873_v52  ;;  %6643 = vmatprep.subr.bf16.mxu1 %v8876_v54  ;;  %v8957_v52 = vld [vmem:[%s10118_s29 + $0xc44] ss:$16 sps:$4 sm:$0xff]   ;;  %v8960_v54 = vld [vmem:[%s10118_s29 + $0xc4c] ss:$16 sps:$4 sm:$0xff]  }
 0x1c1   : > { %6070 = vmatpush1.bf16.msra.mxu0 %v8871_v55  ;;  %6644 = vmatpush1.bf16.msra.mxu1 %v8874_v56  ;;  %v8955_v55 = vld [vmem:[%s10118_s29 + $0xc40] ss:$16 sps:$4 sm:$0xff]   ;;  %v8958_v56 = vld [vmem:[%s10118_s29 + $0xc48] ss:$16 sps:$4 sm:$0xff]  }
 0x1c2   : > { %6071 = vmatprep.subr.bf16.mxu0 %v8879_v57  ;;  %6645 = vmatprep.subr.bf16.mxu1 %v8882_v58  ;;  %v8963_v57 = vld [vmem:[%s10118_s29 + $0xc64] ss:$16 sps:$4 sm:$0xff]   ;;  %v8966_v58 = vld [vmem:[%s10118_s29 + $0xc6c] ss:$16 sps:$4 sm:$0xff]  }
 0x1c5   : > { %6072 = vmatpush1.bf16.msra.mxu0 %v8877_v59  ;;  %6646 = vmatpush1.bf16.msra.mxu1 %v8880_v60  ;;  %v8961_v59 = vld [vmem:[%s10118_s29 + $0xc60] ss:$16 sps:$4 sm:$0xff]   ;;  %v8964_v60 = vld [vmem:[%s10118_s29 + $0xc68] ss:$16 sps:$4 sm:$0xff]  }
 0x1c6   : > { %6073 = vmatprep.subr.bf16.mxu0 %v8885_v61  ;;  %6647 = vmatprep.subr.bf16.mxu1 %v8888_v62  ;;  %v8969_v61 = vld [vmem:[%s10118_s29 + $0xc84] ss:$16 sps:$4 sm:$0xff]   ;;  %v8972_v62 = vld [vmem:[%s10118_s29 + $0xc8c] ss:$16 sps:$4 sm:$0xff]  }
 0x1c9   : > { %6074 = vmatpush1.bf16.msra.mxu0 %v8883_v63  ;;  %6648 = vmatpush1.bf16.msra.mxu1 %v8886_v0  ;;  %v8967_v63 = vld [vmem:[%s10118_s29 + $0xc80] ss:$16 sps:$4 sm:$0xff]   ;;  %v8970_v0 = vld [vmem:[%s10118_s29 + $0xc88] ss:$16 sps:$4 sm:$0xff]  }
 0x1ca   : > { %6075 = vmatprep.subr.bf16.mxu0 %v8891_v1  ;;  %6649 = vmatprep.subr.bf16.mxu1 %v8894_v2  ;;  %v8975_v1 = vld [vmem:[%s10118_s29 + $0xca4] ss:$16 sps:$4 sm:$0xff]   ;;  %v8978_v2 = vld [vmem:[%s10118_s29 + $0xcac] ss:$16 sps:$4 sm:$0xff]  }
 0x1cd   : > { %6076 = vmatpush1.bf16.msra.mxu0 %v8889_v3  ;;  %6650 = vmatpush1.bf16.msra.mxu1 %v8892_v4  ;;  %v8973_v3 = vld [vmem:[%s10118_s29 + $0xca0] ss:$16 sps:$4 sm:$0xff]   ;;  %v8976_v4 = vld [vmem:[%s10118_s29 + $0xca8] ss:$16 sps:$4 sm:$0xff]  }
 0x1ce   : > { %6077 = vmatprep.subr.bf16.mxu0 %v8897_v5  ;;  %6651 = vmatprep.subr.bf16.mxu1 %v8900_v6  ;;  %v8981_v5 = vld [vmem:[%s10118_s29 + $0xcc4] ss:$16 sps:$4 sm:$0xff]   ;;  %v8984_v6 = vld [vmem:[%s10118_s29 + $0xccc] ss:$16 sps:$4 sm:$0xff]  }
 0x1d1   : > { %6078 = vmatpush1.bf16.msra.mxu0 %v8895_v7  ;;  %6652 = vmatpush1.bf16.msra.mxu1 %v8898_v8  ;;  %v8979_v7 = vld [vmem:[%s10118_s29 + $0xcc0] ss:$16 sps:$4 sm:$0xff]   ;;  %v8982_v8 = vld [vmem:[%s10118_s29 + $0xcc8] ss:$16 sps:$4 sm:$0xff]  }
 0x1d2   : > { %6079 = vmatprep.subr.bf16.mxu0 %v8903_v9  ;;  %6653 = vmatprep.subr.bf16.mxu1 %v8906_v10  ;;  %v8987_v9 = vld [vmem:[%s10118_s29 + $0xce4] ss:$16 sps:$4 sm:$0xff]   ;;  %v8990_v10 = vld [vmem:[%s10118_s29 + $0xcec] ss:$16 sps:$4 sm:$0xff]  }
 0x1d5   : > { %6080 = vmatpush1.bf16.msra.mxu0 %v8901_v11  ;;  %6654 = vmatpush1.bf16.msra.mxu1 %v8904_v12  ;;  %v8985_v11 = vld [vmem:[%s10118_s29 + $0xce0] ss:$16 sps:$4 sm:$0xff]   ;;  %v8988_v12 = vld [vmem:[%s10118_s29 + $0xce8] ss:$16 sps:$4 sm:$0xff]  }
 0x1d6   : > { %6081 = vmatprep.subr.bf16.mxu0 %v8909_v13  ;;  %6655 = vmatprep.subr.bf16.mxu1 %v8912_v15  ;;  %v8993_v13 = vld [vmem:[%s10118_s29 + $0xd04] ss:$16 sps:$4 sm:$0xff]   ;;  %v8996_v15 = vld [vmem:[%s10118_s29 + $0xd0c] ss:$16 sps:$4 sm:$0xff]  }
 0x1d9   : > { %6082 = vmatpush1.bf16.msra.mxu0 %v8907_v17  ;;  %6656 = vmatpush1.bf16.msra.mxu1 %v8910_v53  ;;  %v8991_v17 = vld [vmem:[%s10118_s29 + $0xd00] ss:$16 sps:$4 sm:$0xff]   ;;  %v8994_v53 = vld [vmem:[%s10118_s29 + $0xd08] ss:$16 sps:$4 sm:$0xff]  }
 0x1da   : > { %6083 = vmatprep.subr.bf16.mxu0 %v8915_v18  ;;  %6657 = vmatprep.subr.bf16.mxu1 %v8918_v19  ;;  %v8999_v18 = vld [vmem:[%s10118_s29 + $0xd24] ss:$16 sps:$4 sm:$0xff]   ;;  %v9002_v19 = vld [vmem:[%s10118_s29 + $0xd2c] ss:$16 sps:$4 sm:$0xff]  }
 0x1dd   : > { %6084 = vmatpush1.bf16.msra.mxu0 %v8913_v20  ;;  %6658 = vmatpush1.bf16.msra.mxu1 %v8916_v21  ;;  %v8997_v20 = vld [vmem:[%s10118_s29 + $0xd20] ss:$16 sps:$4 sm:$0xff]   ;;  %v9000_v21 = vld [vmem:[%s10118_s29 + $0xd28] ss:$16 sps:$4 sm:$0xff]  }
 0x1de   : > { %6085 = vmatprep.subr.bf16.mxu0 %v8921_v23  ;;  %6659 = vmatprep.subr.bf16.mxu1 %v8924_v24  ;;  %v9005_v23 = vld [vmem:[%s10118_s29 + $0xd44] ss:$16 sps:$4 sm:$0xff]   ;;  %v9008_v24 = vld [vmem:[%s10118_s29 + $0xd4c] ss:$16 sps:$4 sm:$0xff]  }
 0x1e1   : > { %6086 = vmatpush1.bf16.msra.mxu0 %v8919_v25  ;;  %6660 = vmatpush1.bf16.msra.mxu1 %v8922_v27  ;;  %v9003_v25 = vld [vmem:[%s10118_s29 + $0xd40] ss:$16 sps:$4 sm:$0xff]   ;;  %v9006_v27 = vld [vmem:[%s10118_s29 + $0xd48] ss:$16 sps:$4 sm:$0xff]  }
 0x1e2   : > { %6087 = vmatprep.subr.bf16.mxu0 %v8927_v28  ;;  %6661 = vmatprep.subr.bf16.mxu1 %v8930_v29  ;;  %v9011_v28 = vld [vmem:[%s10118_s29 + $0xd64] ss:$16 sps:$4 sm:$0xff]   ;;  %v9014_v29 = vld [vmem:[%s10118_s29 + $0xd6c] ss:$16 sps:$4 sm:$0xff]  }
 0x1e5   : > { %6088 = vmatpush1.bf16.msra.mxu0 %v8925_v30  ;;  %6662 = vmatpush1.bf16.msra.mxu1 %v8928_v31  ;;  %v9009_v30 = vld [vmem:[%s10118_s29 + $0xd60] ss:$16 sps:$4 sm:$0xff]   ;;  %v9012_v31 = vld [vmem:[%s10118_s29 + $0xd68] ss:$16 sps:$4 sm:$0xff]  }
 0x1e6   : > { %6089 = vmatprep.subr.bf16.mxu0 %v8933_v16  ;;  %6663 = vmatprep.subr.bf16.mxu1 %v8936_v32  ;;  %v9017_v16 = vld [vmem:[%s10118_s29 + $0xd84] ss:$16 sps:$4 sm:$0xff]   ;;  %v9020_v32 = vld [vmem:[%s10118_s29 + $0xd8c] ss:$16 sps:$4 sm:$0xff]  }
 0x1e9   : > { %6090 = vmatpush1.bf16.msra.mxu0 %v8931_v26  ;;  %6664 = vmatpush1.bf16.msra.mxu1 %v8934_v35  ;;  %v9023_v26 = vld [vmem:[%s10118_s29 + $0xda4] ss:$16 sps:$4 sm:$0xff]   ;;  %v9026_v35 = vld [vmem:[%s10118_s29 + $0xdac] ss:$16 sps:$4 sm:$0xff]  }
 0x1ea   : > { %6091 = vmatprep.subr.bf16.mxu0 %v8939_v37  ;;  %6665 = vmatprep.subr.bf16.mxu1 %v8942_v38  ;;  %v9021_v37 = vld [vmem:[%s10118_s29 + $0xda0] ss:$16 sps:$4 sm:$0xff]   ;;  %v9024_v38 = vld [vmem:[%s10118_s29 + $0xda8] ss:$16 sps:$4 sm:$0xff]  }
 0x1ed   : > { %6092 = vmatpush1.bf16.msra.mxu0 %v8937_v40  ;;  %6666 = vmatpush1.bf16.msra.mxu1 %v8940_v41  ;;  %v9029_v40 = vld [vmem:[%s10118_s29 + $0xdc4] ss:$16 sps:$4 sm:$0xff]   ;;  %v9032_v41 = vld [vmem:[%s10118_s29 + $0xdcc] ss:$16 sps:$4 sm:$0xff]  }
 0x1ee   : > { %6102 = vmatprep.subr.bf16.mxu0 %v8945_v22  ;;  %6676 = vmatprep.subr.bf16.mxu1 %v8948_v42  ;;  %v9027_v22 = vld [vmem:[%s10118_s29 + $0xdc0] ss:$16 sps:$4 sm:$0xff]   ;;  %v9030_v42 = vld [vmem:[%s10118_s29 + $0xdc8] ss:$16 sps:$4 sm:$0xff]  }
 0x1f0   : > { %6094 = vmatmul.mubr.bf16.vlgmr.msra.gmra.mrb[0].mxu0 %v1271_v45  ;;  %6668 = vmatmul.mubr.bf16.vlgmr.msra.gmra.mrb[0].mxu1 %v1271_v45  ;;  %v9038_v45 = vld [vmem:[%s10118_s29 + $0xdec] ss:$16 sps:$4 sm:$0xff]  }
 0x1f1   : > { %6103 = vmatpush1.bf16.msra.mxu0 %v8943_v36  ;;  %6677 = vmatpush1.bf16.msra.mxu1 %v8946_v46  ;;  %v9033_v36 = vld [vmem:[%s10118_s29 + $0xde0] ss:$16 sps:$4 sm:$0xff]   ;;  %v9036_v46 = vld [vmem:[%s10118_s29 + $0xde8] ss:$16 sps:$4 sm:$0xff]  }
 0x1f2   : > { %6104 = vmatprep.subr.bf16.mxu0 %v8951_v47  ;;  %6678 = vmatprep.subr.bf16.mxu1 %v8954_v48  ;;  %v9042_v47 = vld [vmem:[%s10118_s29 + $0xe04] ss:$16 sps:$4 sm:$0xff]   ;;  %v9045_v48 = vld [vmem:[%s10118_s29 + $0xe0c] ss:$16 sps:$4 sm:$0xff]  }
 0x1f3   : > { %6134 = vmatprep.mubr.bf16.mxu0 %v10603_v49  ;;  %6708 = vmatprep.mubr.bf16.mxu1 %v10603_v49 }
 0x1f5   : > { %6105 = vmatpush1.bf16.msra.mxu0 %v8949_v14  ;;  %6679 = vmatpush1.bf16.msra.mxu1 %v8952_v51  ;;  %v10669_v14 = vrot.slane %v10588_v39, %v10193_v50  ;;  %v9040_v51 = vld [vmem:[%s10118_s29 + $0xe00] ss:$16 sps:$4 sm:$0xff]  }
 0x1f6   : > { %6106 = vmatprep.subr.bf16.mxu0 %v8957_v52  ;;  %6680 = vmatprep.subr.bf16.mxu1 %v8960_v54  ;;  %v9043_v52 = vld [vmem:[%s10118_s29 + $0xe08] ss:$16 sps:$4 sm:$0xff]   ;;  %v9048_v54 = vld [vmem:[%s10118_s29 + $0xe24] ss:$16 sps:$4 sm:$0xff]   ;;  %v9046_v39 = vld [vmem:[%s10118_s29 + $0xe20] ss:$16 sps:$4 sm:$0xff]  }
 0x1f9   : > { %6107 = vmatpush1.bf16.msra.mxu0 %v8955_v55  ;;  %6681 = vmatpush1.bf16.msra.mxu1 %v8958_v56  ;;  %v9051_v55 = vld [vmem:[%s10118_s29 + $0xe2c] ss:$16 sps:$4 sm:$0xff]   ;;  %v1274_v56 = vcombine.high %v10603_v49, %v10603_v49  ;;  %v9052_v49 = vld [vmem:[%s10118_s29 + $0xe40] ss:$16 sps:$4 sm:$0xff]  }
 0x1fa   : > { %6108 = vmatprep.subr.bf16.mxu0 %v8963_v57  ;;  %6682 = vmatprep.subr.bf16.mxu1 %v8966_v58  ;;  %v9049_v57 = vld [vmem:[%s10118_s29 + $0xe28] ss:$16 sps:$4 sm:$0xff]   ;;  %v9054_v58 = vld [vmem:[%s10118_s29 + $0xe44] ss:$16 sps:$4 sm:$0xff]  }
 0x1fd   : > { %6109 = vmatpush1.bf16.msra.mxu0 %v8961_v59  ;;  %6683 = vmatpush1.bf16.msra.mxu1 %v8964_v60  ;;  %v9057_v59 = vld [vmem:[%s10118_s29 + $0xe4c] ss:$16 sps:$4 sm:$0xff]   ;;  %v9055_v60 = vld [vmem:[%s10118_s29 + $0xe48] ss:$16 sps:$4 sm:$0xff]  }
 0x1fe   : > { %6110 = vmatprep.subr.bf16.mxu0 %v8969_v61  ;;  %6684 = vmatprep.subr.bf16.mxu1 %v8972_v62  ;;  %v9060_v61 = vld [vmem:[%s10118_s29 + $0xe64] ss:$16 sps:$4 sm:$0xff]   ;;  %v9063_v62 = vld [vmem:[%s10118_s29 + $0xe6c] ss:$16 sps:$4 sm:$0xff]  }
 0x201   : > { %6111 = vmatpush1.bf16.msra.mxu0 %v8967_v63  ;;  %6685 = vmatpush1.bf16.msra.mxu1 %v8970_v0  ;;  %v9058_v63 = vld [vmem:[%s10118_s29 + $0xe60] ss:$16 sps:$4 sm:$0xff]   ;;  %v9061_v0 = vld [vmem:[%s10118_s29 + $0xe68] ss:$16 sps:$4 sm:$0xff]  }
 0x202   : > { %6112 = vmatprep.subr.bf16.mxu0 %v8975_v1  ;;  %6686 = vmatprep.subr.bf16.mxu1 %v8978_v2  ;;  %v9066_v1 = vld [vmem:[%s10118_s29 + $0xe84] ss:$16 sps:$4 sm:$0xff]   ;;  %v9069_v2 = vld [vmem:[%s10118_s29 + $0xe8c] ss:$16 sps:$4 sm:$0xff]  }
 0x205   : > { %6113 = vmatpush1.bf16.msra.mxu0 %v8973_v3  ;;  %6687 = vmatpush1.bf16.msra.mxu1 %v8976_v4  ;;  %v9064_v3 = vld [vmem:[%s10118_s29 + $0xe80] ss:$16 sps:$4 sm:$0xff]   ;;  %v9067_v4 = vld [vmem:[%s10118_s29 + $0xe88] ss:$16 sps:$4 sm:$0xff]  }
 0x206   : > { %6114 = vmatprep.subr.bf16.mxu0 %v8981_v5  ;;  %6688 = vmatprep.subr.bf16.mxu1 %v8984_v6  ;;  %v9072_v5 = vld [vmem:[%s10118_s29 + $0xea4] ss:$16 sps:$4 sm:$0xff]   ;;  %v9075_v6 = vld [vmem:[%s10118_s29 + $0xeac] ss:$16 sps:$4 sm:$0xff]  }
 0x209   : > { %6115 = vmatpush1.bf16.msra.mxu0 %v8979_v7  ;;  %6689 = vmatpush1.bf16.msra.mxu1 %v8982_v8  ;;  %v9070_v7 = vld [vmem:[%s10118_s29 + $0xea0] ss:$16 sps:$4 sm:$0xff]   ;;  %v9073_v8 = vld [vmem:[%s10118_s29 + $0xea8] ss:$16 sps:$4 sm:$0xff]  }
 0x20a   : > { %6116 = vmatprep.subr.bf16.mxu0 %v8987_v9  ;;  %6690 = vmatprep.subr.bf16.mxu1 %v8990_v10  ;;  %v9078_v9 = vld [vmem:[%s10118_s29 + $0xec4] ss:$16 sps:$4 sm:$0xff]   ;;  %v9081_v10 = vld [vmem:[%s10118_s29 + $0xecc] ss:$16 sps:$4 sm:$0xff]  }
 0x20d   : > { %6117 = vmatpush1.bf16.msra.mxu0 %v8985_v11  ;;  %6691 = vmatpush1.bf16.msra.mxu1 %v8988_v12  ;;  %v9076_v11 = vld [vmem:[%s10118_s29 + $0xec0] ss:$16 sps:$4 sm:$0xff]   ;;  %v9079_v12 = vld [vmem:[%s10118_s29 + $0xec8] ss:$16 sps:$4 sm:$0xff]  }
 0x20e   : > { %6118 = vmatprep.subr.bf16.mxu0 %v8993_v13  ;;  %6692 = vmatprep.subr.bf16.mxu1 %v8996_v15  ;;  %v9084_v13 = vld [vmem:[%s10118_s29 + $0xee4] ss:$16 sps:$4 sm:$0xff]   ;;  %v9087_v15 = vld [vmem:[%s10118_s29 + $0xeec] ss:$16 sps:$4 sm:$0xff]  }
 0x211   : > { %6119 = vmatpush1.bf16.msra.mxu0 %v8991_v17  ;;  %6693 = vmatpush1.bf16.msra.mxu1 %v8994_v53  ;;  %v9082_v17 = vld [vmem:[%s10118_s29 + $0xee0] ss:$16 sps:$4 sm:$0xff]   ;;  %v9085_v53 = vld [vmem:[%s10118_s29 + $0xee8] ss:$16 sps:$4 sm:$0xff]  }
 0x212   : > { %6120 = vmatprep.subr.bf16.mxu0 %v8999_v18  ;;  %6694 = vmatprep.subr.bf16.mxu1 %v9002_v19  ;;  %v9090_v18 = vld [vmem:[%s10118_s29 + $0xf04] ss:$16 sps:$4 sm:$0xff]   ;;  %v9093_v19 = vld [vmem:[%s10118_s29 + $0xf0c] ss:$16 sps:$4 sm:$0xff]  }
 0x215   : > { %6121 = vmatpush1.bf16.msra.mxu0 %v8997_v20  ;;  %6695 = vmatpush1.bf16.msra.mxu1 %v9000_v21  ;;  %v9088_v20 = vld [vmem:[%s10118_s29 + $0xf00] ss:$16 sps:$4 sm:$0xff]   ;;  %v9091_v21 = vld [vmem:[%s10118_s29 + $0xf08] ss:$16 sps:$4 sm:$0xff]  }
 0x216   : > { %6122 = vmatprep.subr.bf16.mxu0 %v9005_v23  ;;  %6696 = vmatprep.subr.bf16.mxu1 %v9008_v24  ;;  %v9096_v23 = vld [vmem:[%s10118_s29 + $0xf24] ss:$16 sps:$4 sm:$0xff]   ;;  %v9099_v24 = vld [vmem:[%s10118_s29 + $0xf2c] ss:$16 sps:$4 sm:$0xff]  }
 0x219   : > { %6123 = vmatpush1.bf16.msra.mxu0 %v9003_v25  ;;  %6697 = vmatpush1.bf16.msra.mxu1 %v9006_v27  ;;  %v9094_v25 = vld [vmem:[%s10118_s29 + $0xf20] ss:$16 sps:$4 sm:$0xff]   ;;  %v9097_v27 = vld [vmem:[%s10118_s29 + $0xf28] ss:$16 sps:$4 sm:$0xff]  }
 0x21a   : > { %6124 = vmatprep.subr.bf16.mxu0 %v9011_v28  ;;  %6698 = vmatprep.subr.bf16.mxu1 %v9014_v29  ;;  %v9102_v28 = vld [vmem:[%s10118_s29 + $0xf44] ss:$16 sps:$4 sm:$0xff]   ;;  %v9105_v29 = vld [vmem:[%s10118_s29 + $0xf4c] ss:$16 sps:$4 sm:$0xff]  }
 0x21d   : > { %6125 = vmatpush1.bf16.msra.mxu0 %v9009_v30  ;;  %6699 = vmatpush1.bf16.msra.mxu1 %v9012_v31  ;;  %v9100_v30 = vld [vmem:[%s10118_s29 + $0xf40] ss:$16 sps:$4 sm:$0xff]   ;;  %v9103_v31 = vld [vmem:[%s10118_s29 + $0xf48] ss:$16 sps:$4 sm:$0xff]  }
 0x21e   : > { %6126 = vmatprep.subr.bf16.mxu0 %v9017_v16  ;;  %6700 = vmatprep.subr.bf16.mxu1 %v9020_v32  ;;  %v9108_v16 = vld [vmem:[%s10118_s29 + $0xf64] ss:$16 sps:$4 sm:$0xff]   ;;  %v9111_v32 = vld [vmem:[%s10118_s29 + $0xf6c] ss:$16 sps:$4 sm:$0xff]  }
 0x221   : > { %6127 = vmatpush1.bf16.msra.mxu0 %v9015_v33  ;;  %6701 = vmatpush1.bf16.msra.mxu1 %v9018_v34  ;;  %v9106_v33 = vld [vmem:[%s10118_s29 + $0xf60] ss:$16 sps:$4 sm:$0xff]   ;;  %v9109_v34 = vld [vmem:[%s10118_s29 + $0xf68] ss:$16 sps:$4 sm:$0xff]  }
 0x222   : > { %6128 = vmatprep.subr.bf16.mxu0 %v9023_v26  ;;  %6702 = vmatprep.subr.bf16.mxu1 %v9026_v35  ;;  %v9114_v26 = vld [vmem:[%s10118_s29 + $0xf84] ss:$16 sps:$4 sm:$0xff]   ;;  %v9117_v35 = vld [vmem:[%s10118_s29 + $0xf8c] ss:$16 sps:$4 sm:$0xff]  }
 0x225   : > { %6129 = vmatpush1.bf16.msra.mxu0 %v9021_v37  ;;  %6703 = vmatpush1.bf16.msra.mxu1 %v9024_v38  ;;  %v9112_v37 = vld [vmem:[%s10118_s29 + $0xf80] ss:$16 sps:$4 sm:$0xff]   ;;  %v9115_v38 = vld [vmem:[%s10118_s29 + $0xf88] ss:$16 sps:$4 sm:$0xff]  }
 0x226   : > { %6130 = vmatprep.subr.bf16.mxu0 %v9029_v40  ;;  %6704 = vmatprep.subr.bf16.mxu1 %v9032_v41  ;;  %v9120_v40 = vld [vmem:[%s10118_s29 + $0xfa4] ss:$16 sps:$4 sm:$0xff]   ;;  %v9123_v41 = vld [vmem:[%s10118_s29 + $0xfac] ss:$16 sps:$4 sm:$0xff]  }
 0x229   : > { %6131 = vmatpush1.bf16.msra.mxu0 %v9027_v22  ;;  %6705 = vmatpush1.bf16.msra.mxu1 %v9030_v42  ;;  %v9118_v22 = vld [vmem:[%s10118_s29 + $0xfa0] ss:$16 sps:$4 sm:$0xff]   ;;  %v9121_v42 = vld [vmem:[%s10118_s29 + $0xfa8] ss:$16 sps:$4 sm:$0xff]  }
 0x22a   : > { %6132 = vmatprep.subr.bf16.mxu0 %v9035_v43  ;;  %6706 = vmatprep.subr.bf16.mxu1 %v9038_v45  ;;  %v9126_v43 = vld [vmem:[%s10118_s29 + $0xfc4] ss:$16 sps:$4 sm:$0xff]   ;;  %v9129_v45 = vld [vmem:[%s10118_s29 + $0xfcc] ss:$16 sps:$4 sm:$0xff]  }
 0x22d   : > { %6133 = vmatpush1.bf16.msra.mxu0 %v9033_v36  ;;  %6707 = vmatpush1.bf16.msra.mxu1 %v9036_v46  ;;  %v10732_v36 = vld [vmem:[%s10143_s1 + $0x10] sm:$0xff]  ;;  %v9124_v46 = vld [vmem:[%s10118_s29 + $0xfc0] ss:$16 sps:$4 sm:$0xff]  }
 0x22e   : > { %6143 = vmatprep.subr.bf16.mxu0 %v9042_v47  ;;  %6717 = vmatprep.subr.bf16.mxu1 %v9045_v48  ;;  %v9127_v47 = vld [vmem:[%s10118_s29 + $0xfc8] ss:$16 sps:$4 sm:$0xff]   ;;  %v9132_v48 = vld [vmem:[%s10118_s29 + $0xfe4] ss:$16 sps:$4 sm:$0xff]  }
 0x230   : > { %6135 = vmatmul.mubr.bf16.vlgmr.msra.gmra.mrb[0].mxu0 %v10669_v14  ;;  %6709 = vmatmul.mubr.bf16.vlgmr.msra.gmra.mrb[0].mxu1 %v10669_v14 }
 0x231   : > { %6144 = vmatpush1.bf16.msra.mxu0 %v9040_v51  ;;  %6718 = vmatpush1.bf16.msra.mxu1 %v9043_v52  ;;  %v9135_v51 = vld [vmem:[%s10118_s29 + $0xfec] ss:$16 sps:$4 sm:$0xff]   ;;  %v10740_v52 = vrot.slane %v10732_v36, %v10193_v50 }
 0x232   : > { %6145 = vmatprep.subr.bf16.mxu0 %v9048_v54  ;;  %6719 = vmatprep.subr.bf16.mxu1 %v9051_v55  ;;  %v9130_v54 = vld [vmem:[%s10118_s29 + $0xfe0] ss:$16 sps:$4 sm:$0xff]   ;;  %v9133_v55 = vld [vmem:[%s10118_s29 + $0xfe8] ss:$16 sps:$4 sm:$0xff]  }
 0x233   : > { %6175 = vmatprep.mubr.bf16.mxu0 %v1274_v56  ;;  %6749 = vmatprep.mubr.bf16.mxu1 %v1274_v56  ;;  %v9138_v56 = vld [vmem:[%s10118_s29 + $0x1004] ss:$16 sps:$4 sm:$0xff]  }
 0x235   : > { %6146 = vmatpush1.bf16.msra.mxu0 %v9046_v39  ;;  %6720 = vmatpush1.bf16.msra.mxu1 %v9049_v57  ;;  %v9141_v39 = vld [vmem:[%s10118_s29 + $0x100c] ss:$16 sps:$4 sm:$0xff]   ;;  %v1290_v57 = vcombine.high %v10740_v52, %v10740_v52 }
 0x236   : > { %6147 = vmatprep.subr.bf16.mxu0 %v9054_v58  ;;  %6721 = vmatprep.subr.bf16.mxu1 %v9057_v59  ;;  %v1272_v58 = vcombine.high %v10669_v14, %v10669_v14  ;;  %v9136_v59 = vld [vmem:[%s10118_s29 + $0x1000] ss:$16 sps:$4 sm:$0xff]  }
 0x237   : > { %v9142_v14 = vld [vmem:[%s10118_s29 + $0x1020] ss:$16 sps:$4 sm:$0xff]  }
 0x239   : > { %6148 = vmatpush1.bf16.msra.mxu0 %v9052_v49  ;;  %6722 = vmatpush1.bf16.msra.mxu1 %v9055_v60  ;;  %v9139_v49 = vld [vmem:[%s10118_s29 + $0x1008] ss:$16 sps:$4 sm:$0xff]   ;;  %v9144_v60 = vld [vmem:[%s10118_s29 + $0x1024] ss:$16 sps:$4 sm:$0xff]  }
 0x23a   : > { %6149 = vmatprep.subr.bf16.mxu0 %v9060_v61  ;;  %6723 = vmatprep.subr.bf16.mxu1 %v9063_v62  ;;  %v9147_v61 = vld [vmem:[%s10118_s29 + $0x102c] ss:$16 sps:$4 sm:$0xff]   ;;  %v10755_v62 = vrot.slane %v1290_v57, %v10193_v50  ;;  %v9223_v57 = vld [vmem:[%s10118_s29 + $0x11c8] ss:$16 sps:$4 sm:$0xff]  }
 0x23d   : > { %6150 = vmatpush1.bf16.msra.mxu0 %v9058_v63  ;;  %6724 = vmatpush1.bf16.msra.mxu1 %v9061_v0  ;;  %v9145_v63 = vld [vmem:[%s10118_s29 + $0x1028] ss:$16 sps:$4 sm:$0xff]   ;;  %v9150_v0 = vld [vmem:[%s10118_s29 + $0x1044] ss:$16 sps:$4 sm:$0xff]  }
 0x23e   : > { %6151 = vmatprep.subr.bf16.mxu0 %v9066_v1  ;;  %6725 = vmatprep.subr.bf16.mxu1 %v9069_v2  ;;  %v9153_v1 = vld [vmem:[%s10118_s29 + $0x104c] ss:$16 sps:$4 sm:$0xff]   ;;  %v9148_v2 = vld [vmem:[%s10118_s29 + $0x1040] ss:$16 sps:$4 sm:$0xff]  }
 0x241   : > { %6152 = vmatpush1.bf16.msra.mxu0 %v9064_v3  ;;  %6726 = vmatpush1.bf16.msra.mxu1 %v9067_v4  ;;  %v9151_v3 = vld [vmem:[%s10118_s29 + $0x1048] ss:$16 sps:$4 sm:$0xff]   ;;  %v9156_v4 = vld [vmem:[%s10118_s29 + $0x1064] ss:$16 sps:$4 sm:$0xff]  }
 0x242   : > { %6153 = vmatprep.subr.bf16.mxu0 %v9072_v5  ;;  %6727 = vmatprep.subr.bf16.mxu1 %v9075_v6  ;;  %v9159_v5 = vld [vmem:[%s10118_s29 + $0x106c] ss:$16 sps:$4 sm:$0xff]   ;;  %v9154_v6 = vld [vmem:[%s10118_s29 + $0x1060] ss:$16 sps:$4 sm:$0xff]  }
 0x245   : > { %6154 = vmatpush1.bf16.msra.mxu0 %v9070_v7  ;;  %6728 = vmatpush1.bf16.msra.mxu1 %v9073_v8  ;;  %v9157_v7 = vld [vmem:[%s10118_s29 + $0x1068] ss:$16 sps:$4 sm:$0xff]   ;;  %v9162_v8 = vld [vmem:[%s10118_s29 + $0x1084] ss:$16 sps:$4 sm:$0xff]  }
 0x246   : > { %6155 = vmatprep.subr.bf16.mxu0 %v9078_v9  ;;  %6729 = vmatprep.subr.bf16.mxu1 %v9081_v10  ;;  %v9165_v9 = vld [vmem:[%s10118_s29 + $0x108c] ss:$16 sps:$4 sm:$0xff]   ;;  %v9160_v10 = vld [vmem:[%s10118_s29 + $0x1080] ss:$16 sps:$4 sm:$0xff]  }
 0x249   : > { %6156 = vmatpush1.bf16.msra.mxu0 %v9076_v11  ;;  %6730 = vmatpush1.bf16.msra.mxu1 %v9079_v12  ;;  %v9163_v11 = vld [vmem:[%s10118_s29 + $0x1088] ss:$16 sps:$4 sm:$0xff]   ;;  %v9168_v12 = vld [vmem:[%s10118_s29 + $0x10a4] ss:$16 sps:$4 sm:$0xff]  }
 0x24a   : > { %6157 = vmatprep.subr.bf16.mxu0 %v9084_v13  ;;  %6731 = vmatprep.subr.bf16.mxu1 %v9087_v15  ;;  %v9171_v13 = vld [vmem:[%s10118_s29 + $0x10ac] ss:$16 sps:$4 sm:$0xff]   ;;  %v9166_v15 = vld [vmem:[%s10118_s29 + $0x10a0] ss:$16 sps:$4 sm:$0xff]  }
 0x24d   : > { %6158 = vmatpush1.bf16.msra.mxu0 %v9082_v17  ;;  %6732 = vmatpush1.bf16.msra.mxu1 %v9085_v53  ;;  %v9169_v17 = vld [vmem:[%s10118_s29 + $0x10a8] ss:$16 sps:$4 sm:$0xff]   ;;  %v9174_v53 = vld [vmem:[%s10118_s29 + $0x10c4] ss:$16 sps:$4 sm:$0xff]  }
 0x24e   : > { %6159 = vmatprep.subr.bf16.mxu0 %v9090_v18  ;;  %6733 = vmatprep.subr.bf16.mxu1 %v9093_v19  ;;  %v9177_v18 = vld [vmem:[%s10118_s29 + $0x10cc] ss:$16 sps:$4 sm:$0xff]   ;;  %v9172_v19 = vld [vmem:[%s10118_s29 + $0x10c0] ss:$16 sps:$4 sm:$0xff]  }
 0x251   : > { %6160 = vmatpush1.bf16.msra.mxu0 %v9088_v20  ;;  %6734 = vmatpush1.bf16.msra.mxu1 %v9091_v21  ;;  %v9175_v20 = vld [vmem:[%s10118_s29 + $0x10c8] ss:$16 sps:$4 sm:$0xff]   ;;  %v9180_v21 = vld [vmem:[%s10118_s29 + $0x10e4] ss:$16 sps:$4 sm:$0xff]  }
 0x252   : > { %6161 = vmatprep.subr.bf16.mxu0 %v9096_v23  ;;  %6735 = vmatprep.subr.bf16.mxu1 %v9099_v24  ;;  %v9183_v23 = vld [vmem:[%s10118_s29 + $0x10ec] ss:$16 sps:$4 sm:$0xff]   ;;  %v9178_v24 = vld [vmem:[%s10118_s29 + $0x10e0] ss:$16 sps:$4 sm:$0xff]  }
 0x255   : > { %6162 = vmatpush1.bf16.msra.mxu0 %v9094_v25  ;;  %6736 = vmatpush1.bf16.msra.mxu1 %v9097_v27  ;;  %v9181_v25 = vld [vmem:[%s10118_s29 + $0x10e8] ss:$16 sps:$4 sm:$0xff]   ;;  %v9186_v27 = vld [vmem:[%s10118_s29 + $0x1104] ss:$16 sps:$4 sm:$0xff]  }
 0x256   : > { %6163 = vmatprep.subr.bf16.mxu0 %v9102_v28  ;;  %6737 = vmatprep.subr.bf16.mxu1 %v9105_v29  ;;  %v9189_v28 = vld [vmem:[%s10118_s29 + $0x110c] ss:$16 sps:$4 sm:$0xff]   ;;  %v9184_v29 = vld [vmem:[%s10118_s29 + $0x1100] ss:$16 sps:$4 sm:$0xff]  }
 0x259   : > { %6164 = vmatpush1.bf16.msra.mxu0 %v9100_v30  ;;  %6738 = vmatpush1.bf16.msra.mxu1 %v9103_v31  ;;  %v9187_v30 = vld [vmem:[%s10118_s29 + $0x1108] ss:$16 sps:$4 sm:$0xff]   ;;  %v9192_v31 = vld [vmem:[%s10118_s29 + $0x1124] ss:$16 sps:$4 sm:$0xff]  }
 0x25a   : > { %6165 = vmatprep.subr.bf16.mxu0 %v9108_v16  ;;  %6739 = vmatprep.subr.bf16.mxu1 %v9111_v32  ;;  %v9195_v16 = vld [vmem:[%s10118_s29 + $0x112c] ss:$16 sps:$4 sm:$0xff]   ;;  %v9190_v32 = vld [vmem:[%s10118_s29 + $0x1120] ss:$16 sps:$4 sm:$0xff]  }
 0x25d   : > { %6166 = vmatpush1.bf16.msra.mxu0 %v9106_v33  ;;  %6740 = vmatpush1.bf16.msra.mxu1 %v9109_v34  ;;  %v9193_v33 = vld [vmem:[%s10118_s29 + $0x1128] ss:$16 sps:$4 sm:$0xff]   ;;  %v9198_v34 = vld [vmem:[%s10118_s29 + $0x1144] ss:$16 sps:$4 sm:$0xff]  }
 0x25e   : > { %6167 = vmatprep.subr.bf16.mxu0 %v9114_v26  ;;  %6741 = vmatprep.subr.bf16.mxu1 %v9117_v35  ;;  %v9201_v26 = vld [vmem:[%s10118_s29 + $0x114c] ss:$16 sps:$4 sm:$0xff]   ;;  %v9196_v35 = vld [vmem:[%s10118_s29 + $0x1140] ss:$16 sps:$4 sm:$0xff]  }
 0x261   : > { %6168 = vmatpush1.bf16.msra.mxu0 %v9112_v37  ;;  %6742 = vmatpush1.bf16.msra.mxu1 %v9115_v38  ;;  %v9199_v37 = vld [vmem:[%s10118_s29 + $0x1148] ss:$16 sps:$4 sm:$0xff]   ;;  %v9204_v38 = vld [vmem:[%s10118_s29 + $0x1164] ss:$16 sps:$4 sm:$0xff]  }
 0x262   : > { %6169 = vmatprep.subr.bf16.mxu0 %v9120_v40  ;;  %6743 = vmatprep.subr.bf16.mxu1 %v9123_v41  ;;  %v9207_v40 = vld [vmem:[%s10118_s29 + $0x116c] ss:$16 sps:$4 sm:$0xff]   ;;  %v9202_v41 = vld [vmem:[%s10118_s29 + $0x1160] ss:$16 sps:$4 sm:$0xff]  }
 0x265   : > { %6170 = vmatpush1.bf16.msra.mxu0 %v9118_v22  ;;  %6744 = vmatpush1.bf16.msra.mxu1 %v9121_v42  ;;  %v9205_v22 = vld [vmem:[%s10118_s29 + $0x1168] ss:$16 sps:$4 sm:$0xff]   ;;  %v9210_v42 = vld [vmem:[%s10118_s29 + $0x1184] ss:$16 sps:$4 sm:$0xff]  }
 0x266   : > { %6171 = vmatprep.subr.bf16.mxu0 %v9126_v43  ;;  %6745 = vmatprep.subr.bf16.mxu1 %v9129_v45  ;;  %v9213_v43 = vld [vmem:[%s10118_s29 + $0x118c] ss:$16 sps:$4 sm:$0xff]   ;;  %v9208_v45 = vld [vmem:[%s10118_s29 + $0x1180] ss:$16 sps:$4 sm:$0xff]  }
 0x269   : > { %6172 = vmatpush1.bf16.msra.mxu0 %v9124_v46  ;;  %6746 = vmatpush1.bf16.msra.mxu1 %v9127_v47  ;;  %v9211_v46 = vld [vmem:[%s10118_s29 + $0x1188] ss:$16 sps:$4 sm:$0xff]   ;;  %v9216_v47 = vld [vmem:[%s10118_s29 + $0x11a4] ss:$16 sps:$4 sm:$0xff]  }
 0x26a   : > { %6173 = vmatprep.subr.bf16.mxu0 %v9132_v48  ;;  %6747 = vmatprep.subr.bf16.mxu1 %v9135_v51  ;;  %v9219_v48 = vld [vmem:[%s10118_s29 + $0x11ac] ss:$16 sps:$4 sm:$0xff]   ;;  %v9214_v51 = vld [vmem:[%s10118_s29 + $0x11a0] ss:$16 sps:$4 sm:$0xff]  }
 0x26d   : > { %6174 = vmatpush1.bf16.msra.mxu0 %v9130_v54  ;;  %6748 = vmatpush1.bf16.msra.mxu1 %v9133_v55  ;;  %v9217_v54 = vld [vmem:[%s10118_s29 + $0x11a8] ss:$16 sps:$4 sm:$0xff]   ;;  %v9222_v55 = vld [vmem:[%s10118_s29 + $0x11c4] ss:$16 sps:$4 sm:$0xff]  }
 0x26e   : > { %6184 = vmatprep.subr.bf16.mxu0 %v9138_v56  ;;  %6758 = vmatprep.subr.bf16.mxu1 %v9141_v39  ;;  %v9225_v56 = vld [vmem:[%s10118_s29 + $0x11cc] ss:$16 sps:$4 sm:$0xff]   ;;  %v9220_v39 = vld [vmem:[%s10118_s29 + $0x11c0] ss:$16 sps:$4 sm:$0xff]  }
 0x270   : > { %6176 = vmatmul.mubr.bf16.vlgmr.msra.gmra.mrb[0].mxu0 %v1272_v58  ;;  %6750 = vmatmul.mubr.bf16.vlgmr.msra.gmra.mrb[0].mxu1 %v1272_v58  ;;  %v9228_v58 = vld [vmem:[%s10118_s29 + $0x11e4] ss:$16 sps:$4 sm:$0xff]  }
 0x271   : > { %6185 = vmatpush1.bf16.msra.mxu0 %v9136_v59  ;;  %6759 = vmatpush1.bf16.msra.mxu1 %v9139_v49  ;;  %v9231_v59 = vld [vmem:[%s10118_s29 + $0x11ec] ss:$16 sps:$4 sm:$0xff]   ;;  %v9226_v49 = vld [vmem:[%s10118_s29 + $0x11e0] ss:$16 sps:$4 sm:$0xff]  }
 0x272   : > { %6186 = vmatprep.subr.bf16.mxu0 %v9144_v60  ;;  %6760 = vmatprep.subr.bf16.mxu1 %v9147_v61  ;;  %v9229_v60 = vld [vmem:[%s10118_s29 + $0x11e8] ss:$16 sps:$4 sm:$0xff]   ;;  %v9234_v61 = vld [vmem:[%s10118_s29 + $0x1204] ss:$16 sps:$4 sm:$0xff]  }
 0x273   : > { %6216 = vmatprep.mubr.bf16.mxu0 %v10755_v62  ;;  %6790 = vmatprep.mubr.bf16.mxu1 %v10755_v62 }
 0x275   : > { %6187 = vmatpush1.bf16.msra.mxu0 %v9142_v14  ;;  %6761 = vmatpush1.bf16.msra.mxu1 %v9145_v63  ;;  %v9237_v14 = vld [vmem:[%s10118_s29 + $0x120c] ss:$16 sps:$4 sm:$0xff]   ;;  %v10821_v63 = vrot.slane %v10740_v52, %v10193_v50  ;;  %v9238_v52 = vld [vmem:[%s10118_s29 + $0x1220] ss:$16 sps:$4 sm:$0xff]  }
 0x276   : > { %6188 = vmatprep.subr.bf16.mxu0 %v9150_v0  ;;  %6762 = vmatprep.subr.bf16.mxu1 %v9153_v1  ;;  %v9232_v0 = vld [vmem:[%s10118_s29 + $0x1200] ss:$16 sps:$4 sm:$0xff]   ;;  %v9235_v1 = vld [vmem:[%s10118_s29 + $0x1208] ss:$16 sps:$4 sm:$0xff]  }
 0x279   : > { %6189 = vmatpush1.bf16.msra.mxu0 %v9148_v2  ;;  %6763 = vmatpush1.bf16.msra.mxu1 %v9151_v3  ;;  %v9240_v2 = vld [vmem:[%s10118_s29 + $0x1224] ss:$16 sps:$4 sm:$0xff]   ;;  %v9243_v3 = vld [vmem:[%s10118_s29 + $0x122c] ss:$16 sps:$4 sm:$0xff]  }
 0x27a   : > { %6190 = vmatprep.subr.bf16.mxu0 %v9156_v4  ;;  %6764 = vmatprep.subr.bf16.mxu1 %v9159_v5  ;;  %v1322_v4 = vcombine.high %v10755_v62, %v10755_v62  ;;  %v9241_v5 = vld [vmem:[%s10118_s29 + $0x1228] ss:$16 sps:$4 sm:$0xff]   ;;  %v9244_v62 = vld [vmem:[%s10118_s29 + $0x1240] ss:$16 sps:$4 sm:$0xff]  }
 0x27d   : > { %6191 = vmatpush1.bf16.msra.mxu0 %v9154_v6  ;;  %6765 = vmatpush1.bf16.msra.mxu1 %v9157_v7  ;;  %v9246_v6 = vld [vmem:[%s10118_s29 + $0x1244] ss:$16 sps:$4 sm:$0xff]   ;;  %v9249_v7 = vld [vmem:[%s10118_s29 + $0x124c] ss:$16 sps:$4 sm:$0xff]  }
 0x27e   : > { %6192 = vmatprep.subr.bf16.mxu0 %v9162_v8  ;;  %6766 = vmatprep.subr.bf16.mxu1 %v9165_v9  ;;  %v9247_v8 = vld [vmem:[%s10118_s29 + $0x1248] ss:$16 sps:$4 sm:$0xff]   ;;  %v9252_v9 = vld [vmem:[%s10118_s29 + $0x1264] ss:$16 sps:$4 sm:$0xff]  }
 0x281   : > { %6193 = vmatpush1.bf16.msra.mxu0 %v9160_v10  ;;  %6767 = vmatpush1.bf16.msra.mxu1 %v9163_v11  ;;  %v9255_v10 = vld [vmem:[%s10118_s29 + $0x126c] ss:$16 sps:$4 sm:$0xff]   ;;  %v9250_v11 = vld [vmem:[%s10118_s29 + $0x1260] ss:$16 sps:$4 sm:$0xff]  }
 0x282   : > { %6194 = vmatprep.subr.bf16.mxu0 %v9168_v12  ;;  %6768 = vmatprep.subr.bf16.mxu1 %v9171_v13  ;;  %v9253_v12 = vld [vmem:[%s10118_s29 + $0x1268] ss:$16 sps:$4 sm:$0xff]   ;;  %v9258_v13 = vld [vmem:[%s10118_s29 + $0x1284] ss:$16 sps:$4 sm:$0xff]  }
 0x285   : > { %6195 = vmatpush1.bf16.msra.mxu0 %v9166_v15  ;;  %6769 = vmatpush1.bf16.msra.mxu1 %v9169_v17  ;;  %v9261_v15 = vld [vmem:[%s10118_s29 + $0x128c] ss:$16 sps:$4 sm:$0xff]   ;;  %v9256_v17 = vld [vmem:[%s10118_s29 + $0x1280] ss:$16 sps:$4 sm:$0xff]  }
 0x286   : > { %6196 = vmatprep.subr.bf16.mxu0 %v9174_v53  ;;  %6770 = vmatprep.subr.bf16.mxu1 %v9177_v18  ;;  %v9259_v53 = vld [vmem:[%s10118_s29 + $0x1288] ss:$16 sps:$4 sm:$0xff]   ;;  %v9264_v18 = vld [vmem:[%s10118_s29 + $0x12a4] ss:$16 sps:$4 sm:$0xff]  }
 0x289   : > { %6197 = vmatpush1.bf16.msra.mxu0 %v9172_v19  ;;  %6771 = vmatpush1.bf16.msra.mxu1 %v9175_v20  ;;  %v9267_v19 = vld [vmem:[%s10118_s29 + $0x12ac] ss:$16 sps:$4 sm:$0xff]   ;;  %v9262_v20 = vld [vmem:[%s10118_s29 + $0x12a0] ss:$16 sps:$4 sm:$0xff]  }
 0x28a   : > { %6198 = vmatprep.subr.bf16.mxu0 %v9180_v21  ;;  %6772 = vmatprep.subr.bf16.mxu1 %v9183_v23  ;;  %v9265_v21 = vld [vmem:[%s10118_s29 + $0x12a8] ss:$16 sps:$4 sm:$0xff]   ;;  %v9270_v23 = vld [vmem:[%s10118_s29 + $0x12c4] ss:$16 sps:$4 sm:$0xff]  }
 0x28d   : > { %6199 = vmatpush1.bf16.msra.mxu0 %v9178_v24  ;;  %6773 = vmatpush1.bf16.msra.mxu1 %v9181_v25  ;;  %v9273_v24 = vld [vmem:[%s10118_s29 + $0x12cc] ss:$16 sps:$4 sm:$0xff]   ;;  %v9268_v25 = vld [vmem:[%s10118_s29 + $0x12c0] ss:$16 sps:$4 sm:$0xff]  }
 0x28e   : > { %6200 = vmatprep.subr.bf16.mxu0 %v9186_v27  ;;  %6774 = vmatprep.subr.bf16.mxu1 %v9189_v28  ;;  %v9271_v27 = vld [vmem:[%s10118_s29 + $0x12c8] ss:$16 sps:$4 sm:$0xff]   ;;  %v9276_v28 = vld [vmem:[%s10118_s29 + $0x12e4] ss:$16 sps:$4 sm:$0xff]  }
 0x291   : > { %6201 = vmatpush1.bf16.msra.mxu0 %v9184_v29  ;;  %6775 = vmatpush1.bf16.msra.mxu1 %v9187_v30  ;;  %v9279_v29 = vld [vmem:[%s10118_s29 + $0x12ec] ss:$16 sps:$4 sm:$0xff]   ;;  %v9274_v30 = vld [vmem:[%s10118_s29 + $0x12e0] ss:$16 sps:$4 sm:$0xff]  }
 0x292   : > { %6202 = vmatprep.subr.bf16.mxu0 %v9192_v31  ;;  %6776 = vmatprep.subr.bf16.mxu1 %v9195_v16  ;;  %v9277_v31 = vld [vmem:[%s10118_s29 + $0x12e8] ss:$16 sps:$4 sm:$0xff]   ;;  %v9282_v16 = vld [vmem:[%s10118_s29 + $0x1304] ss:$16 sps:$4 sm:$0xff]  }
 0x295   : > { %6203 = vmatpush1.bf16.msra.mxu0 %v9190_v32  ;;  %6777 = vmatpush1.bf16.msra.mxu1 %v9193_v33  ;;  %v9285_v32 = vld [vmem:[%s10118_s29 + $0x130c] ss:$16 sps:$4 sm:$0xff]   ;;  %v9280_v33 = vld [vmem:[%s10118_s29 + $0x1300] ss:$16 sps:$4 sm:$0xff]  }
 0x296   : > { %6204 = vmatprep.subr.bf16.mxu0 %v9198_v34  ;;  %6778 = vmatprep.subr.bf16.mxu1 %v9201_v26  ;;  %v9283_v34 = vld [vmem:[%s10118_s29 + $0x1308] ss:$16 sps:$4 sm:$0xff]   ;;  %v9288_v26 = vld [vmem:[%s10118_s29 + $0x1324] ss:$16 sps:$4 sm:$0xff]  }
 0x299   : > { %6205 = vmatpush1.bf16.msra.mxu0 %v9196_v35  ;;  %6779 = vmatpush1.bf16.msra.mxu1 %v9199_v37  ;;  %v9291_v35 = vld [vmem:[%s10118_s29 + $0x132c] ss:$16 sps:$4 sm:$0xff]   ;;  %v9286_v37 = vld [vmem:[%s10118_s29 + $0x1320] ss:$16 sps:$4 sm:$0xff]  }
 0x29a   : > { %6206 = vmatprep.subr.bf16.mxu0 %v9204_v38  ;;  %6780 = vmatprep.subr.bf16.mxu1 %v9207_v40  ;;  %v9289_v38 = vld [vmem:[%s10118_s29 + $0x1328] ss:$16 sps:$4 sm:$0xff]   ;;  %v9294_v40 = vld [vmem:[%s10118_s29 + $0x1344] ss:$16 sps:$4 sm:$0xff]  }
 0x29d   : > { %6207 = vmatpush1.bf16.msra.mxu0 %v9202_v41  ;;  %6781 = vmatpush1.bf16.msra.mxu1 %v9205_v22  ;;  %v9297_v41 = vld [vmem:[%s10118_s29 + $0x134c] ss:$16 sps:$4 sm:$0xff]   ;;  %v9292_v22 = vld [vmem:[%s10118_s29 + $0x1340] ss:$16 sps:$4 sm:$0xff]  }
 0x29e   : > { %6208 = vmatprep.subr.bf16.mxu0 %v9210_v42  ;;  %6782 = vmatprep.subr.bf16.mxu1 %v9213_v43  ;;  %v9295_v42 = vld [vmem:[%s10118_s29 + $0x1348] ss:$16 sps:$4 sm:$0xff]   ;;  %v9300_v43 = vld [vmem:[%s10118_s29 + $0x1364] ss:$16 sps:$4 sm:$0xff]  }
 0x2a1   : > { %6209 = vmatpush1.bf16.msra.mxu0 %v9208_v45  ;;  %6783 = vmatpush1.bf16.msra.mxu1 %v9211_v46  ;;  %v9303_v45 = vld [vmem:[%s10118_s29 + $0x136c] ss:$16 sps:$4 sm:$0xff]   ;;  %v9298_v46 = vld [vmem:[%s10118_s29 + $0x1360] ss:$16 sps:$4 sm:$0xff]  }
 0x2a2   : > { %6210 = vmatprep.subr.bf16.mxu0 %v9216_v47  ;;  %6784 = vmatprep.subr.bf16.mxu1 %v9219_v48  ;;  %v9301_v47 = vld [vmem:[%s10118_s29 + $0x1368] ss:$16 sps:$4 sm:$0xff]   ;;  %v9306_v48 = vld [vmem:[%s10118_s29 + $0x1384] ss:$16 sps:$4 sm:$0xff]  }
 0x2a5   : > { %6211 = vmatpush1.bf16.msra.mxu0 %v9214_v51  ;;  %6785 = vmatpush1.bf16.msra.mxu1 %v9217_v54  ;;  %v9309_v51 = vld [vmem:[%s10118_s29 + $0x138c] ss:$16 sps:$4 sm:$0xff]   ;;  %v9304_v54 = vld [vmem:[%s10118_s29 + $0x1380] ss:$16 sps:$4 sm:$0xff]  }
 0x2a6   : > { %6212 = vmatprep.subr.bf16.mxu0 %v9222_v55  ;;  %6786 = vmatprep.subr.bf16.mxu1 %v9225_v56  ;;  %v9307_v55 = vld [vmem:[%s10118_s29 + $0x1388] ss:$16 sps:$4 sm:$0xff]   ;;  %v9312_v56 = vld [vmem:[%s10118_s29 + $0x13a4] ss:$16 sps:$4 sm:$0xff]  }
 0x2a9   : > { %6213 = vmatpush1.bf16.msra.mxu0 %v9220_v39  ;;  %6787 = vmatpush1.bf16.msra.mxu1 %v9223_v57  ;;  %v9315_v39 = vld [vmem:[%s10118_s29 + $0x13ac] ss:$16 sps:$4 sm:$0xff]   ;;  %v9310_v57 = vld [vmem:[%s10118_s29 + $0x13a0] ss:$16 sps:$4 sm:$0xff]  }
 0x2aa   : > { %6214 = vmatprep.subr.bf16.mxu0 %v9228_v58  ;;  %6788 = vmatprep.subr.bf16.mxu1 %v9231_v59  ;;  %v9313_v58 = vld [vmem:[%s10118_s29 + $0x13a8] ss:$16 sps:$4 sm:$0xff]   ;;  %v9318_v59 = vld [vmem:[%s10118_s29 + $0x13c4] ss:$16 sps:$4 sm:$0xff]  }
 0x2ad   : > { %6215 = vmatpush1.bf16.msra.mxu0 %v9226_v49  ;;  %6789 = vmatpush1.bf16.msra.mxu1 %v9229_v60  ;;  %v9321_v49 = vld [vmem:[%s10118_s29 + $0x13cc] ss:$16 sps:$4 sm:$0xff]   ;;  %v1275_v60 = vcombine.high %v10732_v36, %v10732_v36  ;;  %v9322_v36 = vld [vmem:[%s10118_s29 + $0x13e0] ss:$16 sps:$4 sm:$0xff]  }
 0x2ae   : > { %6225 = vmatprep.subr.bf16.mxu0 %v9234_v61  ;;  %6799 = vmatprep.subr.bf16.mxu1 %v9237_v14  ;;  %v9316_v61 = vld [vmem:[%s10118_s29 + $0x13c0] ss:$16 sps:$4 sm:$0xff]   ;;  %v9319_v14 = vld [vmem:[%s10118_s29 + $0x13c8] ss:$16 sps:$4 sm:$0xff]  }
 0x2b0   : > { %6217 = vmatmul.mubr.bf16.vlgmr.msra.gmra.mrb[0].mxu0 %v10821_v63  ;;  %6791 = vmatmul.mubr.bf16.vlgmr.msra.gmra.mrb[0].mxu1 %v10821_v63 }
 0x2b1   : > { %6226 = vmatpush1.bf16.msra.mxu0 %v9232_v0  ;;  %6800 = vmatpush1.bf16.msra.mxu1 %v9235_v1  ;;  %v9324_v0 = vld [vmem:[%s10118_s29 + $0x13e4] ss:$16 sps:$4 sm:$0xff]   ;;  %v9327_v1 = vld [vmem:[%s10118_s29 + $0x13ec] ss:$16 sps:$4 sm:$0xff]  }
 0x2b2   : > { %6227 = vmatprep.subr.bf16.mxu0 %v9240_v2  ;;  %6801 = vmatprep.subr.bf16.mxu1 %v9243_v3  ;;  %v10890_v2 = vrot.slane %v1275_v60, %v10193_v50  ;;  %v9325_v3 = vld [vmem:[%s10118_s29 + $0x13e8] ss:$16 sps:$4 sm:$0xff]  }
 0x2b3   : > { %6257 = vmatprep.mubr.bf16.mxu0 %v1322_v4  ;;  %6831 = vmatprep.mubr.bf16.mxu1 %v1322_v4  ;;  %v9330_v4 = vld [vmem:[%s10118_s29 + $0x1404] ss:$16 sps:$4 sm:$0xff]   ;;  %v9403_v60 = vld [vmem:[%s10118_s29 + $0x1588] ss:$16 sps:$4 sm:$0xff]  }
 0x2b5   : > { %6228 = vmatpush1.bf16.msra.mxu0 %v9238_v52  ;;  %6802 = vmatpush1.bf16.msra.mxu1 %v9241_v5  ;;  %v9333_v52 = vld [vmem:[%s10118_s29 + $0x140c] ss:$16 sps:$4 sm:$0xff]   ;;  %v1291_v5 = vcombine.high %v10890_v2, %v10890_v2 }
 0x2b6   : > { %6229 = vmatprep.subr.bf16.mxu0 %v9246_v6  ;;  %6803 = vmatprep.subr.bf16.mxu1 %v9249_v7  ;;  %v1320_v6 = vcombine.high %v10821_v63, %v10821_v63  ;;  %v9328_v7 = vld [vmem:[%s10118_s29 + $0x1400] ss:$16 sps:$4 sm:$0xff]  }
 0x2b7   : > { %v9334_v63 = vld [vmem:[%s10118_s29 + $0x1420] ss:$16 sps:$4 sm:$0xff]  }
 0x2b9   : > { %6230 = vmatpush1.bf16.msra.mxu0 %v9244_v62  ;;  %6804 = vmatpush1.bf16.msra.mxu1 %v9247_v8  ;;  %v9331_v62 = vld [vmem:[%s10118_s29 + $0x1408] ss:$16 sps:$4 sm:$0xff]   ;;  %v9336_v8 = vld [vmem:[%s10118_s29 + $0x1424] ss:$16 sps:$4 sm:$0xff]  }
 0x2ba   : > { %6231 = vmatprep.subr.bf16.mxu0 %v9252_v9  ;;  %6805 = vmatprep.subr.bf16.mxu1 %v9255_v10  ;;  %v9339_v9 = vld [vmem:[%s10118_s29 + $0x142c] ss:$16 sps:$4 sm:$0xff]   ;;  %v10905_v10 = vrot.slane %v1291_v5, %v10193_v50  ;;  %v9420_v5 = vld [vmem:[%s10118_s29 + $0x15e4] ss:$16 sps:$4 sm:$0xff]  }
 0x2bd   : > { %6232 = vmatpush1.bf16.msra.mxu0 %v9250_v11  ;;  %6806 = vmatpush1.bf16.msra.mxu1 %v9253_v12  ;;  %v9337_v11 = vld [vmem:[%s10118_s29 + $0x1428] ss:$16 sps:$4 sm:$0xff]   ;;  %v9342_v12 = vld [vmem:[%s10118_s29 + $0x1444] ss:$16 sps:$4 sm:$0xff]  }
 0x2be   : > { %6233 = vmatprep.subr.bf16.mxu0 %v9258_v13  ;;  %6807 = vmatprep.subr.bf16.mxu1 %v9261_v15  ;;  %v9345_v13 = vld [vmem:[%s10118_s29 + $0x144c] ss:$16 sps:$4 sm:$0xff]   ;;  %v9340_v15 = vld [vmem:[%s10118_s29 + $0x1440] ss:$16 sps:$4 sm:$0xff]  }
 0x2c1   : > { %6234 = vmatpush1.bf16.msra.mxu0 %v9256_v17  ;;  %6808 = vmatpush1.bf16.msra.mxu1 %v9259_v53  ;;  %v9343_v17 = vld [vmem:[%s10118_s29 + $0x1448] ss:$16 sps:$4 sm:$0xff]   ;;  %v9348_v53 = vld [vmem:[%s10118_s29 + $0x1464] ss:$16 sps:$4 sm:$0xff]  }
 0x2c2   : > { %6235 = vmatprep.subr.bf16.mxu0 %v9264_v18  ;;  %6809 = vmatprep.subr.bf16.mxu1 %v9267_v19  ;;  %v9351_v18 = vld [vmem:[%s10118_s29 + $0x146c] ss:$16 sps:$4 sm:$0xff]   ;;  %v9346_v19 = vld [vmem:[%s10118_s29 + $0x1460] ss:$16 sps:$4 sm:$0xff]  }
 0x2c5   : > { %6236 = vmatpush1.bf16.msra.mxu0 %v9262_v20  ;;  %6810 = vmatpush1.bf16.msra.mxu1 %v9265_v21  ;;  %v9349_v20 = vld [vmem:[%s10118_s29 + $0x1468] ss:$16 sps:$4 sm:$0xff]   ;;  %v9354_v21 = vld [vmem:[%s10118_s29 + $0x1484] ss:$16 sps:$4 sm:$0xff]  }
 0x2c6   : > { %6237 = vmatprep.subr.bf16.mxu0 %v9270_v23  ;;  %6811 = vmatprep.subr.bf16.mxu1 %v9273_v24  ;;  %v9357_v23 = vld [vmem:[%s10118_s29 + $0x148c] ss:$16 sps:$4 sm:$0xff]   ;;  %v9352_v24 = vld [vmem:[%s10118_s29 + $0x1480] ss:$16 sps:$4 sm:$0xff]  }
 0x2c9   : > { %6238 = vmatpush1.bf16.msra.mxu0 %v9268_v25  ;;  %6812 = vmatpush1.bf16.msra.mxu1 %v9271_v27  ;;  %v9355_v25 = vld [vmem:[%s10118_s29 + $0x1488] ss:$16 sps:$4 sm:$0xff]   ;;  %v9360_v27 = vld [vmem:[%s10118_s29 + $0x14a4] ss:$16 sps:$4 sm:$0xff]  }
 0x2ca   : > { %6239 = vmatprep.subr.bf16.mxu0 %v9276_v28  ;;  %6813 = vmatprep.subr.bf16.mxu1 %v9279_v29  ;;  %v9363_v28 = vld [vmem:[%s10118_s29 + $0x14ac] ss:$16 sps:$4 sm:$0xff]   ;;  %v9358_v29 = vld [vmem:[%s10118_s29 + $0x14a0] ss:$16 sps:$4 sm:$0xff]  }
 0x2cd   : > { %6240 = vmatpush1.bf16.msra.mxu0 %v9274_v30  ;;  %6814 = vmatpush1.bf16.msra.mxu1 %v9277_v31  ;;  %v9361_v30 = vld [vmem:[%s10118_s29 + $0x14a8] ss:$16 sps:$4 sm:$0xff]   ;;  %v9366_v31 = vld [vmem:[%s10118_s29 + $0x14c4] ss:$16 sps:$4 sm:$0xff]  }
 0x2ce   : > { %6241 = vmatprep.subr.bf16.mxu0 %v9282_v16  ;;  %6815 = vmatprep.subr.bf16.mxu1 %v9285_v32  ;;  %v9369_v16 = vld [vmem:[%s10118_s29 + $0x14cc] ss:$16 sps:$4 sm:$0xff]   ;;  %v9364_v32 = vld [vmem:[%s10118_s29 + $0x14c0] ss:$16 sps:$4 sm:$0xff]  }
 0x2d1   : > { %6242 = vmatpush1.bf16.msra.mxu0 %v9280_v33  ;;  %6816 = vmatpush1.bf16.msra.mxu1 %v9283_v34  ;;  %v9367_v33 = vld [vmem:[%s10118_s29 + $0x14c8] ss:$16 sps:$4 sm:$0xff]   ;;  %v9372_v34 = vld [vmem:[%s10118_s29 + $0x14e4] ss:$16 sps:$4 sm:$0xff]  }
 0x2d2   : > { %6243 = vmatprep.subr.bf16.mxu0 %v9288_v26  ;;  %6817 = vmatprep.subr.bf16.mxu1 %v9291_v35  ;;  %v9375_v26 = vld [vmem:[%s10118_s29 + $0x14ec] ss:$16 sps:$4 sm:$0xff]   ;;  %v9370_v35 = vld [vmem:[%s10118_s29 + $0x14e0] ss:$16 sps:$4 sm:$0xff]  }
 0x2d5   : > { %6244 = vmatpush1.bf16.msra.mxu0 %v9286_v37  ;;  %6818 = vmatpush1.bf16.msra.mxu1 %v9289_v38  ;;  %v9373_v37 = vld [vmem:[%s10118_s29 + $0x14e8] ss:$16 sps:$4 sm:$0xff]   ;;  %v9378_v38 = vld [vmem:[%s10118_s29 + $0x1504] ss:$16 sps:$4 sm:$0xff]  }
 0x2d6   : > { %6245 = vmatprep.subr.bf16.mxu0 %v9294_v40  ;;  %6819 = vmatprep.subr.bf16.mxu1 %v9297_v41  ;;  %v9381_v40 = vld [vmem:[%s10118_s29 + $0x150c] ss:$16 sps:$4 sm:$0xff]   ;;  %v9376_v41 = vld [vmem:[%s10118_s29 + $0x1500] ss:$16 sps:$4 sm:$0xff]  }
 0x2d9   : > { %6246 = vmatpush1.bf16.msra.mxu0 %v9292_v22  ;;  %6820 = vmatpush1.bf16.msra.mxu1 %v9295_v42  ;;  %v9379_v22 = vld [vmem:[%s10118_s29 + $0x1508] ss:$16 sps:$4 sm:$0xff]   ;;  %v9384_v42 = vld [vmem:[%s10118_s29 + $0x1524] ss:$16 sps:$4 sm:$0xff]  }
 0x2da   : > { %6247 = vmatprep.subr.bf16.mxu0 %v9300_v43  ;;  %6821 = vmatprep.subr.bf16.mxu1 %v9303_v45  ;;  %v9387_v43 = vld [vmem:[%s10118_s29 + $0x152c] ss:$16 sps:$4 sm:$0xff]   ;;  %v9382_v45 = vld [vmem:[%s10118_s29 + $0x1520] ss:$16 sps:$4 sm:$0xff]  }
 0x2dd   : > { %6248 = vmatpush1.bf16.msra.mxu0 %v9298_v46  ;;  %6822 = vmatpush1.bf16.msra.mxu1 %v9301_v47  ;;  %v9385_v46 = vld [vmem:[%s10118_s29 + $0x1528] ss:$16 sps:$4 sm:$0xff]   ;;  %v9390_v47 = vld [vmem:[%s10118_s29 + $0x1544] ss:$16 sps:$4 sm:$0xff]  }
 0x2de   : > { %6249 = vmatprep.subr.bf16.mxu0 %v9306_v48  ;;  %6823 = vmatprep.subr.bf16.mxu1 %v9309_v51  ;;  %v9393_v48 = vld [vmem:[%s10118_s29 + $0x154c] ss:$16 sps:$4 sm:$0xff]   ;;  %v9388_v51 = vld [vmem:[%s10118_s29 + $0x1540] ss:$16 sps:$4 sm:$0xff]  }
 0x2e1   : > { %6250 = vmatpush1.bf16.msra.mxu0 %v9304_v54  ;;  %6824 = vmatpush1.bf16.msra.mxu1 %v9307_v55  ;;  %v9391_v54 = vld [vmem:[%s10118_s29 + $0x1548] ss:$16 sps:$4 sm:$0xff]   ;;  %v9396_v55 = vld [vmem:[%s10118_s29 + $0x1564] ss:$16 sps:$4 sm:$0xff]  }
 0x2e2   : > { %6251 = vmatprep.subr.bf16.mxu0 %v9312_v56  ;;  %6825 = vmatprep.subr.bf16.mxu1 %v9315_v39  ;;  %v9399_v56 = vld [vmem:[%s10118_s29 + $0x156c] ss:$16 sps:$4 sm:$0xff]   ;;  %v9394_v39 = vld [vmem:[%s10118_s29 + $0x1560] ss:$16 sps:$4 sm:$0xff]  }
 0x2e5   : > { %6252 = vmatpush1.bf16.msra.mxu0 %v9310_v57  ;;  %6826 = vmatpush1.bf16.msra.mxu1 %v9313_v58  ;;  %v9397_v57 = vld [vmem:[%s10118_s29 + $0x1568] ss:$16 sps:$4 sm:$0xff]   ;;  %v9402_v58 = vld [vmem:[%s10118_s29 + $0x1584] ss:$16 sps:$4 sm:$0xff]  }
 0x2e6   : > { %6253 = vmatprep.subr.bf16.mxu0 %v9318_v59  ;;  %6827 = vmatprep.subr.bf16.mxu1 %v9321_v49  ;;  %v9405_v59 = vld [vmem:[%s10118_s29 + $0x158c] ss:$16 sps:$4 sm:$0xff]   ;;  %v9400_v49 = vld [vmem:[%s10118_s29 + $0x1580] ss:$16 sps:$4 sm:$0xff]  }
 0x2e9   : > { %6254 = vmatpush1.bf16.msra.mxu0 %v9316_v61  ;;  %6828 = vmatpush1.bf16.msra.mxu1 %v9319_v14  ;;  %v9408_v61 = vld [vmem:[%s10118_s29 + $0x15a4] ss:$16 sps:$4 sm:$0xff]   ;;  %v9411_v14 = vld [vmem:[%s10118_s29 + $0x15ac] ss:$16 sps:$4 sm:$0xff]  }
 0x2ea   : > { %6255 = vmatprep.subr.bf16.mxu0 %v9324_v0  ;;  %6829 = vmatprep.subr.bf16.mxu1 %v9327_v1  ;;  %v9406_v0 = vld [vmem:[%s10118_s29 + $0x15a0] ss:$16 sps:$4 sm:$0xff]   ;;  %v9409_v1 = vld [vmem:[%s10118_s29 + $0x15a8] ss:$16 sps:$4 sm:$0xff]  }
 0x2ed   : > { %6256 = vmatpush1.bf16.msra.mxu0 %v9322_v36  ;;  %6830 = vmatpush1.bf16.msra.mxu1 %v9325_v3  ;;  %v9414_v36 = vld [vmem:[%s10118_s29 + $0x15c4] ss:$16 sps:$4 sm:$0xff]   ;;  %v9417_v3 = vld [vmem:[%s10118_s29 + $0x15cc] ss:$16 sps:$4 sm:$0xff]  }
 0x2ee   : > { %6266 = vmatprep.subr.bf16.mxu0 %v9330_v4  ;;  %6840 = vmatprep.subr.bf16.mxu1 %v9333_v52  ;;  %v9412_v4 = vld [vmem:[%s10118_s29 + $0x15c0] ss:$16 sps:$4 sm:$0xff]   ;;  %v9415_v52 = vld [vmem:[%s10118_s29 + $0x15c8] ss:$16 sps:$4 sm:$0xff]  }
 0x2f0   : > { %6258 = vmatmul.mubr.bf16.vlgmr.msra.gmra.mrb[0].mxu0 %v1320_v6  ;;  %6832 = vmatmul.mubr.bf16.vlgmr.msra.gmra.mrb[0].mxu1 %v1320_v6  ;;  %v9423_v6 = vld [vmem:[%s10118_s29 + $0x15ec] ss:$16 sps:$4 sm:$0xff]  }
 0x2f1   : > { %6267 = vmatpush1.bf16.msra.mxu0 %v9328_v7  ;;  %6841 = vmatpush1.bf16.msra.mxu1 %v9331_v62  ;;  %v9418_v7 = vld [vmem:[%s10118_s29 + $0x15e0] ss:$16 sps:$4 sm:$0xff]   ;;  %v9421_v62 = vld [vmem:[%s10118_s29 + $0x15e8] ss:$16 sps:$4 sm:$0xff]  }
 0x2f2   : > { %6268 = vmatprep.subr.bf16.mxu0 %v9336_v8  ;;  %6842 = vmatprep.subr.bf16.mxu1 %v9339_v9  ;;  %v9427_v8 = vld [vmem:[%s10118_s29 + $0x1604] ss:$16 sps:$4 sm:$0xff]   ;;  %v9430_v9 = vld [vmem:[%s10118_s29 + $0x160c] ss:$16 sps:$4 sm:$0xff]  }
 0x2f3   : > { %6298 = vmatprep.mubr.bf16.mxu0 %v10905_v10  ;;  %6872 = vmatprep.mubr.bf16.mxu1 %v10905_v10 }
 0x2f5   : > { %6269 = vmatpush1.bf16.msra.mxu0 %v9334_v63  ;;  %6843 = vmatpush1.bf16.msra.mxu1 %v9337_v11  ;;  %v10971_v63 = vrot.slane %v10890_v2, %v10193_v50  ;;  %v9425_v11 = vld [vmem:[%s10118_s29 + $0x1600] ss:$16 sps:$4 sm:$0xff]  }
 0x2f6   : > { %6270 = vmatprep.subr.bf16.mxu0 %v9342_v12  ;;  %6844 = vmatprep.subr.bf16.mxu1 %v9345_v13  ;;  %v9428_v12 = vld [vmem:[%s10118_s29 + $0x1608] ss:$16 sps:$4 sm:$0xff]   ;;  %v9433_v13 = vld [vmem:[%s10118_s29 + $0x1624] ss:$16 sps:$4 sm:$0xff]   ;;  %v9431_v2 = vld [vmem:[%s10118_s29 + $0x1620] ss:$16 sps:$4 sm:$0xff]  }
 0x2f9   : > { %6271 = vmatpush1.bf16.msra.mxu0 %v9340_v15  ;;  %6845 = vmatpush1.bf16.msra.mxu1 %v9343_v17  ;;  %v9436_v15 = vld [vmem:[%s10118_s29 + $0x162c] ss:$16 sps:$4 sm:$0xff]   ;;  %v1323_v17 = vcombine.high %v10905_v10, %v10905_v10  ;;  %v9437_v10 = vld [vmem:[%s10118_s29 + $0x1640] ss:$16 sps:$4 sm:$0xff]  }
 0x2fa   : > { %6272 = vmatprep.subr.bf16.mxu0 %v9348_v53  ;;  %6846 = vmatprep.subr.bf16.mxu1 %v9351_v18  ;;  %v9434_v53 = vld [vmem:[%s10118_s29 + $0x1628] ss:$16 sps:$4 sm:$0xff]   ;;  %v9439_v18 = vld [vmem:[%s10118_s29 + $0x1644] ss:$16 sps:$4 sm:$0xff]  }
 0x2fd   : > { %6273 = vmatpush1.bf16.msra.mxu0 %v9346_v19  ;;  %6847 = vmatpush1.bf16.msra.mxu1 %v9349_v20  ;;  %v9442_v19 = vld [vmem:[%s10118_s29 + $0x164c] ss:$16 sps:$4 sm:$0xff]   ;;  %v9440_v20 = vld [vmem:[%s10118_s29 + $0x1648] ss:$16 sps:$4 sm:$0xff]  }
 0x2fe   : > { %6274 = vmatprep.subr.bf16.mxu0 %v9354_v21  ;;  %6848 = vmatprep.subr.bf16.mxu1 %v9357_v23  ;;  %v9445_v21 = vld [vmem:[%s10118_s29 + $0x1664] ss:$16 sps:$4 sm:$0xff]   ;;  %v9448_v23 = vld [vmem:[%s10118_s29 + $0x166c] ss:$16 sps:$4 sm:$0xff]  }
 0x301   : > { %6275 = vmatpush1.bf16.msra.mxu0 %v9352_v24  ;;  %6849 = vmatpush1.bf16.msra.mxu1 %v9355_v25  ;;  %v9443_v24 = vld [vmem:[%s10118_s29 + $0x1660] ss:$16 sps:$4 sm:$0xff]   ;;  %v9446_v25 = vld [vmem:[%s10118_s29 + $0x1668] ss:$16 sps:$4 sm:$0xff]  }
 0x302   : > { %6276 = vmatprep.subr.bf16.mxu0 %v9360_v27  ;;  %6850 = vmatprep.subr.bf16.mxu1 %v9363_v28  ;;  %v9451_v27 = vld [vmem:[%s10118_s29 + $0x1684] ss:$16 sps:$4 sm:$0xff]   ;;  %v9454_v28 = vld [vmem:[%s10118_s29 + $0x168c] ss:$16 sps:$4 sm:$0xff]  }
 0x305   : > { %6277 = vmatpush1.bf16.msra.mxu0 %v9358_v29  ;;  %6851 = vmatpush1.bf16.msra.mxu1 %v9361_v30  ;;  %v9449_v29 = vld [vmem:[%s10118_s29 + $0x1680] ss:$16 sps:$4 sm:$0xff]   ;;  %v9452_v30 = vld [vmem:[%s10118_s29 + $0x1688] ss:$16 sps:$4 sm:$0xff]  }
 0x306   : > { %6278 = vmatprep.subr.bf16.mxu0 %v9366_v31  ;;  %6852 = vmatprep.subr.bf16.mxu1 %v9369_v16  ;;  %v9457_v31 = vld [vmem:[%s10118_s29 + $0x16a4] ss:$16 sps:$4 sm:$0xff]   ;;  %v9460_v16 = vld [vmem:[%s10118_s29 + $0x16ac] ss:$16 sps:$4 sm:$0xff]  }
 0x309   : > { %6279 = vmatpush1.bf16.msra.mxu0 %v9364_v32  ;;  %6853 = vmatpush1.bf16.msra.mxu1 %v9367_v33  ;;  %v9455_v32 = vld [vmem:[%s10118_s29 + $0x16a0] ss:$16 sps:$4 sm:$0xff]   ;;  %v9458_v33 = vld [vmem:[%s10118_s29 + $0x16a8] ss:$16 sps:$4 sm:$0xff]  }
 0x30a   : > { %6280 = vmatprep.subr.bf16.mxu0 %v9372_v34  ;;  %6854 = vmatprep.subr.bf16.mxu1 %v9375_v26  ;;  %v9463_v34 = vld [vmem:[%s10118_s29 + $0x16c4] ss:$16 sps:$4 sm:$0xff]   ;;  %v9466_v26 = vld [vmem:[%s10118_s29 + $0x16cc] ss:$16 sps:$4 sm:$0xff]  }
 0x30d   : > { %6281 = vmatpush1.bf16.msra.mxu0 %v9370_v35  ;;  %6855 = vmatpush1.bf16.msra.mxu1 %v9373_v37  ;;  %v9461_v35 = vld [vmem:[%s10118_s29 + $0x16c0] ss:$16 sps:$4 sm:$0xff]   ;;  %v9464_v37 = vld [vmem:[%s10118_s29 + $0x16c8] ss:$16 sps:$4 sm:$0xff]  }
 0x30e   : > { %6282 = vmatprep.subr.bf16.mxu0 %v9378_v38  ;;  %6856 = vmatprep.subr.bf16.mxu1 %v9381_v40  ;;  %v9469_v38 = vld [vmem:[%s10118_s29 + $0x16e4] ss:$16 sps:$4 sm:$0xff]   ;;  %v9472_v40 = vld [vmem:[%s10118_s29 + $0x16ec] ss:$16 sps:$4 sm:$0xff]  }
 0x311   : > { %6283 = vmatpush1.bf16.msra.mxu0 %v9376_v41  ;;  %6857 = vmatpush1.bf16.msra.mxu1 %v9379_v22  ;;  %v9467_v41 = vld [vmem:[%s10118_s29 + $0x16e0] ss:$16 sps:$4 sm:$0xff]   ;;  %v9470_v22 = vld [vmem:[%s10118_s29 + $0x16e8] ss:$16 sps:$4 sm:$0xff]  }
 0x312   : > { %6284 = vmatprep.subr.bf16.mxu0 %v9384_v42  ;;  %6858 = vmatprep.subr.bf16.mxu1 %v9387_v43  ;;  %v9475_v42 = vld [vmem:[%s10118_s29 + $0x1704] ss:$16 sps:$4 sm:$0xff]   ;;  %v9478_v43 = vld [vmem:[%s10118_s29 + $0x170c] ss:$16 sps:$4 sm:$0xff]  }
 0x315   : > { %6285 = vmatpush1.bf16.msra.mxu0 %v9382_v45  ;;  %6859 = vmatpush1.bf16.msra.mxu1 %v9385_v46  ;;  %v9473_v45 = vld [vmem:[%s10118_s29 + $0x1700] ss:$16 sps:$4 sm:$0xff]   ;;  %v9476_v46 = vld [vmem:[%s10118_s29 + $0x1708] ss:$16 sps:$4 sm:$0xff]  }
 0x316   : > { %6286 = vmatprep.subr.bf16.mxu0 %v9390_v47  ;;  %6860 = vmatprep.subr.bf16.mxu1 %v9393_v48  ;;  %v9481_v47 = vld [vmem:[%s10118_s29 + $0x1724] ss:$16 sps:$4 sm:$0xff]   ;;  %v9484_v48 = vld [vmem:[%s10118_s29 + $0x172c] ss:$16 sps:$4 sm:$0xff]  }
 0x319   : > { %6287 = vmatpush1.bf16.msra.mxu0 %v9388_v51  ;;  %6861 = vmatpush1.bf16.msra.mxu1 %v9391_v54  ;;  %v9479_v51 = vld [vmem:[%s10118_s29 + $0x1720] ss:$16 sps:$4 sm:$0xff]   ;;  %v9482_v54 = vld [vmem:[%s10118_s29 + $0x1728] ss:$16 sps:$4 sm:$0xff]  }
 0x31a   : > { %6288 = vmatprep.subr.bf16.mxu0 %v9396_v55  ;;  %6862 = vmatprep.subr.bf16.mxu1 %v9399_v56  ;;  %v9487_v55 = vld [vmem:[%s10118_s29 + $0x1744] ss:$16 sps:$4 sm:$0xff]   ;;  %v9490_v56 = vld [vmem:[%s10118_s29 + $0x174c] ss:$16 sps:$4 sm:$0xff]  }
 0x31d   : > { %6289 = vmatpush1.bf16.msra.mxu0 %v9394_v39  ;;  %6863 = vmatpush1.bf16.msra.mxu1 %v9397_v57  ;;  %v9485_v39 = vld [vmem:[%s10118_s29 + $0x1740] ss:$16 sps:$4 sm:$0xff]   ;;  %v9488_v57 = vld [vmem:[%s10118_s29 + $0x1748] ss:$16 sps:$4 sm:$0xff]  }
 0x31e   : > { %6290 = vmatprep.subr.bf16.mxu0 %v9402_v58  ;;  %6864 = vmatprep.subr.bf16.mxu1 %v9405_v59  ;;  %v9493_v58 = vld [vmem:[%s10118_s29 + $0x1764] ss:$16 sps:$4 sm:$0xff]   ;;  %v9496_v59 = vld [vmem:[%s10118_s29 + $0x176c] ss:$16 sps:$4 sm:$0xff]  }
 0x321   : > { %6291 = vmatpush1.bf16.msra.mxu0 %v9400_v49  ;;  %6865 = vmatpush1.bf16.msra.mxu1 %v9403_v60  ;;  %v9491_v49 = vld [vmem:[%s10118_s29 + $0x1760] ss:$16 sps:$4 sm:$0xff]   ;;  %v9494_v60 = vld [vmem:[%s10118_s29 + $0x1768] ss:$16 sps:$4 sm:$0xff]  }
 0x322   : > { %6292 = vmatprep.subr.bf16.mxu0 %v9408_v61  ;;  %6866 = vmatprep.subr.bf16.mxu1 %v9411_v14  ;;  %v9499_v61 = vld [vmem:[%s10118_s29 + $0x1784] ss:$16 sps:$4 sm:$0xff]   ;;  %v9502_v14 = vld [vmem:[%s10118_s29 + $0x178c] ss:$16 sps:$4 sm:$0xff]  }
 0x325   : > { %6293 = vmatpush1.bf16.msra.mxu0 %v9406_v0  ;;  %6867 = vmatpush1.bf16.msra.mxu1 %v9409_v1  ;;  %v9497_v0 = vld [vmem:[%s10118_s29 + $0x1780] ss:$16 sps:$4 sm:$0xff]   ;;  %v9500_v1 = vld [vmem:[%s10118_s29 + $0x1788] ss:$16 sps:$4 sm:$0xff]  }
 0x326   : > { %6294 = vmatprep.subr.bf16.mxu0 %v9414_v36  ;;  %6868 = vmatprep.subr.bf16.mxu1 %v9417_v3  ;;  %v9505_v36 = vld [vmem:[%s10118_s29 + $0x17a4] ss:$16 sps:$4 sm:$0xff]   ;;  %v9508_v3 = vld [vmem:[%s10118_s29 + $0x17ac] ss:$16 sps:$4 sm:$0xff]  }
 0x329   : > { %6295 = vmatpush1.bf16.msra.mxu0 %v9412_v4  ;;  %6869 = vmatpush1.bf16.msra.mxu1 %v9415_v52  ;;  %v9503_v4 = vld [vmem:[%s10118_s29 + $0x17a0] ss:$16 sps:$4 sm:$0xff]   ;;  %v9506_v52 = vld [vmem:[%s10118_s29 + $0x17a8] ss:$16 sps:$4 sm:$0xff]  }
 0x32a   : > { %6296 = vmatprep.subr.bf16.mxu0 %v9420_v5  ;;  %6870 = vmatprep.subr.bf16.mxu1 %v9423_v6  ;;  %v9511_v5 = vld [vmem:[%s10118_s29 + $0x17c4] ss:$16 sps:$4 sm:$0xff]   ;;  %v9514_v6 = vld [vmem:[%s10118_s29 + $0x17cc] ss:$16 sps:$4 sm:$0xff]  }
 0x32d   : > { %6297 = vmatpush1.bf16.msra.mxu0 %v9418_v7  ;;  %6871 = vmatpush1.bf16.msra.mxu1 %v9421_v62  ;;  %v9509_v7 = vld [vmem:[%s10118_s29 + $0x17c0] ss:$16 sps:$4 sm:$0xff]   ;;  %v9512_v62 = vld [vmem:[%s10118_s29 + $0x17c8] ss:$16 sps:$4 sm:$0xff]  }
 0x32e   : > { %6307 = vmatprep.subr.bf16.mxu0 %v9427_v8  ;;  %6881 = vmatprep.subr.bf16.mxu1 %v9430_v9  ;;  %v9517_v8 = vld [vmem:[%s10118_s29 + $0x17e4] ss:$16 sps:$4 sm:$0xff]   ;;  %v9520_v9 = vld [vmem:[%s10118_s29 + $0x17ec] ss:$16 sps:$4 sm:$0xff]  }
 0x330   : > { %6299 = vmatmul.mubr.bf16.vlgmr.msra.gmra.mrb[0].mxu0 %v10971_v63  ;;  %6873 = vmatmul.mubr.bf16.vlgmr.msra.gmra.mrb[0].mxu1 %v10971_v63 }
 0x331   : > { %6308 = vmatpush1.bf16.msra.mxu0 %v9425_v11  ;;  %6882 = vmatpush1.bf16.msra.mxu1 %v9428_v12  ;;  %v11038_v11 = vld.sshfl [vmem:[%s10143_s1 + $0x18] sm:$0x33 pattern:$0x75316420] }
 0x332   : > { %6309 = vmatprep.subr.bf16.mxu0 %v9433_v13  ;;  %6883 = vmatprep.subr.bf16.mxu1 %v9436_v15  ;;  %v9515_v12 = vld [vmem:[%s10118_s29 + $0x17e0] ss:$16 sps:$4 sm:$0xff]   ;;  %v9518_v13 = vld [vmem:[%s10118_s29 + $0x17e8] ss:$16 sps:$4 sm:$0xff]   ;;  %v9523_v15 = vld [vmem:[%s10118_s29 + $0x1804] ss:$16 sps:$4 sm:$0xff]  }
 0x333   : > { %6339 = vmatprep.mubr.bf16.mxu0 %v1323_v17  ;;  %6913 = vmatprep.mubr.bf16.mxu1 %v1323_v17  ;;  %v9526_v17 = vld [vmem:[%s10118_s29 + $0x180c] ss:$16 sps:$4 sm:$0xff]  }
 0x335   : > { %6310 = vmatpush1.bf16.msra.mxu0 %v9431_v2  ;;  %6884 = vmatpush1.bf16.msra.mxu1 %v9434_v53  ;;  %v1331_v2 = vcombine.high %v11038_v11, %v11038_v11  ;;  %v1321_v53 = vcombine.high %v10971_v63, %v10971_v63  ;;  %v9527_v63 = vld [vmem:[%s10118_s29 + $0x1820] ss:$16 sps:$4 sm:$0xff]  }
 0x336   : > { %6311 = vmatprep.subr.bf16.mxu0 %v9439_v18  ;;  %6885 = vmatprep.subr.bf16.mxu1 %v9442_v19  ;;  %v9521_v18 = vld [vmem:[%s10118_s29 + $0x1800] ss:$16 sps:$4 sm:$0xff]   ;;  %v9524_v19 = vld [vmem:[%s10118_s29 + $0x1808] ss:$16 sps:$4 sm:$0xff]  }
 0x339   : > { %6312 = vmatpush1.bf16.msra.mxu0 %v9437_v10  ;;  %6886 = vmatpush1.bf16.msra.mxu1 %v9440_v20  ;;  %v9529_v10 = vld [vmem:[%s10118_s29 + $0x1824] ss:$16 sps:$4 sm:$0xff]   ;;  %v9532_v20 = vld [vmem:[%s10118_s29 + $0x182c] ss:$16 sps:$4 sm:$0xff]  }
 0x33a   : > { %6313 = vmatprep.subr.bf16.mxu0 %v9445_v21  ;;  %6887 = vmatprep.subr.bf16.mxu1 %v9448_v23  ;;  %v11053_v21 = vrot.slane %v1331_v2, %v10193_v50  ;;  %v9530_v23 = vld [vmem:[%s10118_s29 + $0x1828] ss:$16 sps:$4 sm:$0xff]   ;;  %v9613_v2 = vld [vmem:[%s10118_s29 + $0x19e4] ss:$16 sps:$4 sm:$0xff]  }
 0x33d   : > { %6314 = vmatpush1.bf16.msra.mxu0 %v9443_v24  ;;  %6888 = vmatpush1.bf16.msra.mxu1 %v9446_v25  ;;  %v9535_v24 = vld [vmem:[%s10118_s29 + $0x1844] ss:$16 sps:$4 sm:$0xff]   ;;  %v9538_v25 = vld [vmem:[%s10118_s29 + $0x184c] ss:$16 sps:$4 sm:$0xff]  }
 0x33e   : > { %6315 = vmatprep.subr.bf16.mxu0 %v9451_v27  ;;  %6889 = vmatprep.subr.bf16.mxu1 %v9454_v28  ;;  %v9533_v27 = vld [vmem:[%s10118_s29 + $0x1840] ss:$16 sps:$4 sm:$0xff]   ;;  %v9536_v28 = vld [vmem:[%s10118_s29 + $0x1848] ss:$16 sps:$4 sm:$0xff]  }
 0x341   : > { %6316 = vmatpush1.bf16.msra.mxu0 %v9449_v29  ;;  %6890 = vmatpush1.bf16.msra.mxu1 %v9452_v30  ;;  %v9541_v29 = vld [vmem:[%s10118_s29 + $0x1864] ss:$16 sps:$4 sm:$0xff]   ;;  %v9544_v30 = vld [vmem:[%s10118_s29 + $0x186c] ss:$16 sps:$4 sm:$0xff]  }
 0x342   : > { %6317 = vmatprep.subr.bf16.mxu0 %v9457_v31  ;;  %6891 = vmatprep.subr.bf16.mxu1 %v9460_v16  ;;  %v9539_v31 = vld [vmem:[%s10118_s29 + $0x1860] ss:$16 sps:$4 sm:$0xff]   ;;  %v9542_v16 = vld [vmem:[%s10118_s29 + $0x1868] ss:$16 sps:$4 sm:$0xff]  }
 0x345   : > { %6318 = vmatpush1.bf16.msra.mxu0 %v9455_v32  ;;  %6892 = vmatpush1.bf16.msra.mxu1 %v9458_v33  ;;  %v9547_v32 = vld [vmem:[%s10118_s29 + $0x1884] ss:$16 sps:$4 sm:$0xff]   ;;  %v9550_v33 = vld [vmem:[%s10118_s29 + $0x188c] ss:$16 sps:$4 sm:$0xff]  }
 0x346   : > { %6319 = vmatprep.subr.bf16.mxu0 %v9463_v34  ;;  %6893 = vmatprep.subr.bf16.mxu1 %v9466_v26  ;;  %v9545_v34 = vld [vmem:[%s10118_s29 + $0x1880] ss:$16 sps:$4 sm:$0xff]   ;;  %v9548_v26 = vld [vmem:[%s10118_s29 + $0x1888] ss:$16 sps:$4 sm:$0xff]  }
 0x349   : > { %6320 = vmatpush1.bf16.msra.mxu0 %v9461_v35  ;;  %6894 = vmatpush1.bf16.msra.mxu1 %v9464_v37  ;;  %v9553_v35 = vld [vmem:[%s10118_s29 + $0x18a4] ss:$16 sps:$4 sm:$0xff]   ;;  %v9556_v37 = vld [vmem:[%s10118_s29 + $0x18ac] ss:$16 sps:$4 sm:$0xff]  }
 0x34a   : > { %6321 = vmatprep.subr.bf16.mxu0 %v9469_v38  ;;  %6895 = vmatprep.subr.bf16.mxu1 %v9472_v40  ;;  %v9551_v38 = vld [vmem:[%s10118_s29 + $0x18a0] ss:$16 sps:$4 sm:$0xff]   ;;  %v9554_v40 = vld [vmem:[%s10118_s29 + $0x18a8] ss:$16 sps:$4 sm:$0xff]  }
 0x34d   : > { %6322 = vmatpush1.bf16.msra.mxu0 %v9467_v41  ;;  %6896 = vmatpush1.bf16.msra.mxu1 %v9470_v22  ;;  %v9559_v41 = vld [vmem:[%s10118_s29 + $0x18c4] ss:$16 sps:$4 sm:$0xff]   ;;  %v9562_v22 = vld [vmem:[%s10118_s29 + $0x18cc] ss:$16 sps:$4 sm:$0xff]  }
 0x34e   : > { %6323 = vmatprep.subr.bf16.mxu0 %v9475_v42  ;;  %6897 = vmatprep.subr.bf16.mxu1 %v9478_v43  ;;  %v9557_v42 = vld [vmem:[%s10118_s29 + $0x18c0] ss:$16 sps:$4 sm:$0xff]   ;;  %v9560_v43 = vld [vmem:[%s10118_s29 + $0x18c8] ss:$16 sps:$4 sm:$0xff]  }
 0x351   : > { %6324 = vmatpush1.bf16.msra.mxu0 %v9473_v45  ;;  %6898 = vmatpush1.bf16.msra.mxu1 %v9476_v46  ;;  %v9565_v45 = vld [vmem:[%s10118_s29 + $0x18e4] ss:$16 sps:$4 sm:$0xff]   ;;  %v9568_v46 = vld [vmem:[%s10118_s29 + $0x18ec] ss:$16 sps:$4 sm:$0xff]  }
 0x352   : > { %6325 = vmatprep.subr.bf16.mxu0 %v9481_v47  ;;  %6899 = vmatprep.subr.bf16.mxu1 %v9484_v48  ;;  %v9563_v47 = vld [vmem:[%s10118_s29 + $0x18e0] ss:$16 sps:$4 sm:$0xff]   ;;  %v9566_v48 = vld [vmem:[%s10118_s29 + $0x18e8] ss:$16 sps:$4 sm:$0xff]  }
 0x355   : > { %6326 = vmatpush1.bf16.msra.mxu0 %v9479_v51  ;;  %6900 = vmatpush1.bf16.msra.mxu1 %v9482_v54  ;;  %v9571_v51 = vld [vmem:[%s10118_s29 + $0x1904] ss:$16 sps:$4 sm:$0xff]   ;;  %v9574_v54 = vld [vmem:[%s10118_s29 + $0x190c] ss:$16 sps:$4 sm:$0xff]  }
 0x356   : > { %6327 = vmatprep.subr.bf16.mxu0 %v9487_v55  ;;  %6901 = vmatprep.subr.bf16.mxu1 %v9490_v56  ;;  %v9569_v55 = vld [vmem:[%s10118_s29 + $0x1900] ss:$16 sps:$4 sm:$0xff]   ;;  %v9572_v56 = vld [vmem:[%s10118_s29 + $0x1908] ss:$16 sps:$4 sm:$0xff]  }
 0x359   : > { %6328 = vmatpush1.bf16.msra.mxu0 %v9485_v39  ;;  %6902 = vmatpush1.bf16.msra.mxu1 %v9488_v57  ;;  %v9577_v39 = vld [vmem:[%s10118_s29 + $0x1924] ss:$16 sps:$4 sm:$0xff]   ;;  %v9580_v57 = vld [vmem:[%s10118_s29 + $0x192c] ss:$16 sps:$4 sm:$0xff]  }
 0x35a   : > { %6329 = vmatprep.subr.bf16.mxu0 %v9493_v58  ;;  %6903 = vmatprep.subr.bf16.mxu1 %v9496_v59  ;;  %v9575_v58 = vld [vmem:[%s10118_s29 + $0x1920] ss:$16 sps:$4 sm:$0xff]   ;;  %v9578_v59 = vld [vmem:[%s10118_s29 + $0x1928] ss:$16 sps:$4 sm:$0xff]  }
 0x35d   : > { %6330 = vmatpush1.bf16.msra.mxu0 %v9491_v49  ;;  %6904 = vmatpush1.bf16.msra.mxu1 %v9494_v60  ;;  %v9583_v49 = vld [vmem:[%s10118_s29 + $0x1944] ss:$16 sps:$4 sm:$0xff]   ;;  %v9586_v60 = vld [vmem:[%s10118_s29 + $0x194c] ss:$16 sps:$4 sm:$0xff]  }
 0x35e   : > { %6331 = vmatprep.subr.bf16.mxu0 %v9499_v61  ;;  %6905 = vmatprep.subr.bf16.mxu1 %v9502_v14  ;;  %v9581_v61 = vld [vmem:[%s10118_s29 + $0x1940] ss:$16 sps:$4 sm:$0xff]   ;;  %v9584_v14 = vld [vmem:[%s10118_s29 + $0x1948] ss:$16 sps:$4 sm:$0xff]  }
 0x361   : > { %6332 = vmatpush1.bf16.msra.mxu0 %v9497_v0  ;;  %6906 = vmatpush1.bf16.msra.mxu1 %v9500_v1  ;;  %v9589_v0 = vld [vmem:[%s10118_s29 + $0x1964] ss:$16 sps:$4 sm:$0xff]   ;;  %v9592_v1 = vld [vmem:[%s10118_s29 + $0x196c] ss:$16 sps:$4 sm:$0xff]  }
 0x362   : > { %6333 = vmatprep.subr.bf16.mxu0 %v9505_v36  ;;  %6907 = vmatprep.subr.bf16.mxu1 %v9508_v3  ;;  %v9587_v36 = vld [vmem:[%s10118_s29 + $0x1960] ss:$16 sps:$4 sm:$0xff]   ;;  %v9590_v3 = vld [vmem:[%s10118_s29 + $0x1968] ss:$16 sps:$4 sm:$0xff]  }
 0x365   : > { %6334 = vmatpush1.bf16.msra.mxu0 %v9503_v4  ;;  %6908 = vmatpush1.bf16.msra.mxu1 %v9506_v52  ;;  %v9595_v4 = vld [vmem:[%s10118_s29 + $0x1984] ss:$16 sps:$4 sm:$0xff]   ;;  %v9598_v52 = vld [vmem:[%s10118_s29 + $0x198c] ss:$16 sps:$4 sm:$0xff]  }
 0x366   : > { %6335 = vmatprep.subr.bf16.mxu0 %v9511_v5  ;;  %6909 = vmatprep.subr.bf16.mxu1 %v9514_v6  ;;  %v9593_v5 = vld [vmem:[%s10118_s29 + $0x1980] ss:$16 sps:$4 sm:$0xff]   ;;  %v9596_v6 = vld [vmem:[%s10118_s29 + $0x1988] ss:$16 sps:$4 sm:$0xff]  }
 0x369   : > { %6336 = vmatpush1.bf16.msra.mxu0 %v9509_v7  ;;  %6910 = vmatpush1.bf16.msra.mxu1 %v9512_v62  ;;  %v9601_v7 = vld [vmem:[%s10118_s29 + $0x19a4] ss:$16 sps:$4 sm:$0xff]   ;;  %v9604_v62 = vld [vmem:[%s10118_s29 + $0x19ac] ss:$16 sps:$4 sm:$0xff]  }
 0x36a   : > { %6337 = vmatprep.subr.bf16.mxu0 %v9517_v8  ;;  %6911 = vmatprep.subr.bf16.mxu1 %v9520_v9  ;;  %v9599_v8 = vld [vmem:[%s10118_s29 + $0x19a0] ss:$16 sps:$4 sm:$0xff]   ;;  %v9602_v9 = vld [vmem:[%s10118_s29 + $0x19a8] ss:$16 sps:$4 sm:$0xff]  }
 0x36d   : > { %6338 = vmatpush1.bf16.msra.mxu0 %v9515_v12  ;;  %6912 = vmatpush1.bf16.msra.mxu1 %v9518_v13  ;;  %v9607_v12 = vld [vmem:[%s10118_s29 + $0x19c4] ss:$16 sps:$4 sm:$0xff]   ;;  %v9610_v13 = vld [vmem:[%s10118_s29 + $0x19cc] ss:$16 sps:$4 sm:$0xff]  }
 0x36e   : > { %6348 = vmatprep.subr.bf16.mxu0 %v9523_v15  ;;  %6922 = vmatprep.subr.bf16.mxu1 %v9526_v17  ;;  %v9605_v15 = vld [vmem:[%s10118_s29 + $0x19c0] ss:$16 sps:$4 sm:$0xff]   ;;  %v9608_v17 = vld [vmem:[%s10118_s29 + $0x19c8] ss:$16 sps:$4 sm:$0xff]  }
 0x370   : > { %6340 = vmatmul.mubr.bf16.vlgmr.msra.gmra.mrb[0].mxu0 %v1321_v53  ;;  %6914 = vmatmul.mubr.bf16.vlgmr.msra.gmra.mrb[0].mxu1 %v1321_v53  ;;  %v9616_v53 = vld [vmem:[%s10118_s29 + $0x19ec] ss:$16 sps:$4 sm:$0xff]  }
 0x371   : > { %6349 = vmatpush1.bf16.msra.mxu0 %v9521_v18  ;;  %6923 = vmatpush1.bf16.msra.mxu1 %v9524_v19  ;;  %v9611_v18 = vld [vmem:[%s10118_s29 + $0x19e0] ss:$16 sps:$4 sm:$0xff]   ;;  %v9614_v19 = vld [vmem:[%s10118_s29 + $0x19e8] ss:$16 sps:$4 sm:$0xff]  }
 0x372   : > { %6350 = vmatprep.subr.bf16.mxu0 %v9529_v10  ;;  %6924 = vmatprep.subr.bf16.mxu1 %v9532_v20  ;;  %v9619_v10 = vld [vmem:[%s10118_s29 + $0x1a04] ss:$16 sps:$4 sm:$0xff]   ;;  %v9622_v20 = vld [vmem:[%s10118_s29 + $0x1a0c] ss:$16 sps:$4 sm:$0xff]  }
 0x373   : > { %6380 = vmatprep.mubr.bf16.mxu0 %v11053_v21  ;;  %6954 = vmatprep.mubr.bf16.mxu1 %v11053_v21 }
 0x375   : > { %6351 = vmatpush1.bf16.msra.mxu0 %v9527_v63  ;;  %6925 = vmatpush1.bf16.msra.mxu1 %v9530_v23  ;;  %v11119_v63 = vrot.slane %v11038_v11, %v10193_v50  ;;  %v9617_v23 = vld [vmem:[%s10118_s29 + $0x1a00] ss:$16 sps:$4 sm:$0xff]  }
 0x376   : > { %6352 = vmatprep.subr.bf16.mxu0 %v9535_v24  ;;  %6926 = vmatprep.subr.bf16.mxu1 %v9538_v25  ;;  %v9620_v24 = vld [vmem:[%s10118_s29 + $0x1a08] ss:$16 sps:$4 sm:$0xff]   ;;  %v9625_v25 = vld [vmem:[%s10118_s29 + $0x1a24] ss:$16 sps:$4 sm:$0xff]   ;;  %v9623_v11 = vld [vmem:[%s10118_s29 + $0x1a20] ss:$16 sps:$4 sm:$0xff]  }
 0x379   : > { %6353 = vmatpush1.bf16.msra.mxu0 %v9533_v27  ;;  %6927 = vmatpush1.bf16.msra.mxu1 %v9536_v28  ;;  %v9628_v27 = vld [vmem:[%s10118_s29 + $0x1a2c] ss:$16 sps:$4 sm:$0xff]   ;;  %v1347_v28 = vcombine.high %v11053_v21, %v11053_v21  ;;  %v9629_v21 = vld [vmem:[%s10118_s29 + $0x1a40] ss:$16 sps:$4 sm:$0xff]  }
 0x37a   : > { %6354 = vmatprep.subr.bf16.mxu0 %v9541_v29  ;;  %6928 = vmatprep.subr.bf16.mxu1 %v9544_v30  ;;  %v9626_v29 = vld [vmem:[%s10118_s29 + $0x1a28] ss:$16 sps:$4 sm:$0xff]   ;;  %v9631_v30 = vld [vmem:[%s10118_s29 + $0x1a44] ss:$16 sps:$4 sm:$0xff]  }
 0x37d   : > { %6355 = vmatpush1.bf16.msra.mxu0 %v9539_v31  ;;  %6929 = vmatpush1.bf16.msra.mxu1 %v9542_v16  ;;  %v9634_v31 = vld [vmem:[%s10118_s29 + $0x1a4c] ss:$16 sps:$4 sm:$0xff]   ;;  %v9632_v16 = vld [vmem:[%s10118_s29 + $0x1a48] ss:$16 sps:$4 sm:$0xff]  }
 0x37e   : > { %6356 = vmatprep.subr.bf16.mxu0 %v9547_v32  ;;  %6930 = vmatprep.subr.bf16.mxu1 %v9550_v33  ;;  %v9637_v32 = vld [vmem:[%s10118_s29 + $0x1a64] ss:$16 sps:$4 sm:$0xff]   ;;  %v9640_v33 = vld [vmem:[%s10118_s29 + $0x1a6c] ss:$16 sps:$4 sm:$0xff]  }
 0x381   : > { %6357 = vmatpush1.bf16.msra.mxu0 %v9545_v34  ;;  %6931 = vmatpush1.bf16.msra.mxu1 %v9548_v26  ;;  %v9635_v34 = vld [vmem:[%s10118_s29 + $0x1a60] ss:$16 sps:$4 sm:$0xff]   ;;  %v9638_v26 = vld [vmem:[%s10118_s29 + $0x1a68] ss:$16 sps:$4 sm:$0xff]  }
 0x382   : > { %6358 = vmatprep.subr.bf16.mxu0 %v9553_v35  ;;  %6932 = vmatprep.subr.bf16.mxu1 %v9556_v37  ;;  %v9643_v35 = vld [vmem:[%s10118_s29 + $0x1a84] ss:$16 sps:$4 sm:$0xff]   ;;  %v9646_v37 = vld [vmem:[%s10118_s29 + $0x1a8c] ss:$16 sps:$4 sm:$0xff]  }
 0x385   : > { %6359 = vmatpush1.bf16.msra.mxu0 %v9551_v38  ;;  %6933 = vmatpush1.bf16.msra.mxu1 %v9554_v40  ;;  %v9641_v38 = vld [vmem:[%s10118_s29 + $0x1a80] ss:$16 sps:$4 sm:$0xff]   ;;  %v9644_v40 = vld [vmem:[%s10118_s29 + $0x1a88] ss:$16 sps:$4 sm:$0xff]  }
 0x386   : > { %6360 = vmatprep.subr.bf16.mxu0 %v9559_v41  ;;  %6934 = vmatprep.subr.bf16.mxu1 %v9562_v22  ;;  %v9649_v41 = vld [vmem:[%s10118_s29 + $0x1aa4] ss:$16 sps:$4 sm:$0xff]   ;;  %v9652_v22 = vld [vmem:[%s10118_s29 + $0x1aac] ss:$16 sps:$4 sm:$0xff]  }
 0x389   : > { %6361 = vmatpush1.bf16.msra.mxu0 %v9557_v42  ;;  %6935 = vmatpush1.bf16.msra.mxu1 %v9560_v43  ;;  %v9647_v42 = vld [vmem:[%s10118_s29 + $0x1aa0] ss:$16 sps:$4 sm:$0xff]   ;;  %v9650_v43 = vld [vmem:[%s10118_s29 + $0x1aa8] ss:$16 sps:$4 sm:$0xff]  }
 0x38a   : > { %6362 = vmatprep.subr.bf16.mxu0 %v9565_v45  ;;  %6936 = vmatprep.subr.bf16.mxu1 %v9568_v46  ;;  %v9655_v45 = vld [vmem:[%s10118_s29 + $0x1ac4] ss:$16 sps:$4 sm:$0xff]   ;;  %v9658_v46 = vld [vmem:[%s10118_s29 + $0x1acc] ss:$16 sps:$4 sm:$0xff]  }
 0x38d   : > { %6363 = vmatpush1.bf16.msra.mxu0 %v9563_v47  ;;  %6937 = vmatpush1.bf16.msra.mxu1 %v9566_v48  ;;  %v9653_v47 = vld [vmem:[%s10118_s29 + $0x1ac0] ss:$16 sps:$4 sm:$0xff]   ;;  %v9656_v48 = vld [vmem:[%s10118_s29 + $0x1ac8] ss:$16 sps:$4 sm:$0xff]  }
 0x38e   : > { %6364 = vmatprep.subr.bf16.mxu0 %v9571_v51  ;;  %6938 = vmatprep.subr.bf16.mxu1 %v9574_v54  ;;  %v9661_v51 = vld [vmem:[%s10118_s29 + $0x1ae4] ss:$16 sps:$4 sm:$0xff]   ;;  %v9664_v54 = vld [vmem:[%s10118_s29 + $0x1aec] ss:$16 sps:$4 sm:$0xff]  }
 0x391   : > { %6365 = vmatpush1.bf16.msra.mxu0 %v9569_v55  ;;  %6939 = vmatpush1.bf16.msra.mxu1 %v9572_v56  ;;  %v9659_v55 = vld [vmem:[%s10118_s29 + $0x1ae0] ss:$16 sps:$4 sm:$0xff]   ;;  %v9662_v56 = vld [vmem:[%s10118_s29 + $0x1ae8] ss:$16 sps:$4 sm:$0xff]  }
 0x392   : > { %6366 = vmatprep.subr.bf16.mxu0 %v9577_v39  ;;  %6940 = vmatprep.subr.bf16.mxu1 %v9580_v57  ;;  %v9667_v39 = vld [vmem:[%s10118_s29 + $0x1b04] ss:$16 sps:$4 sm:$0xff]   ;;  %v9670_v57 = vld [vmem:[%s10118_s29 + $0x1b0c] ss:$16 sps:$4 sm:$0xff]  }
 0x395   : > { %6367 = vmatpush1.bf16.msra.mxu0 %v9575_v58  ;;  %6941 = vmatpush1.bf16.msra.mxu1 %v9578_v59  ;;  %v9665_v58 = vld [vmem:[%s10118_s29 + $0x1b00] ss:$16 sps:$4 sm:$0xff]   ;;  %v9668_v59 = vld [vmem:[%s10118_s29 + $0x1b08] ss:$16 sps:$4 sm:$0xff]  }
 0x396   : > { %6368 = vmatprep.subr.bf16.mxu0 %v9583_v49  ;;  %6942 = vmatprep.subr.bf16.mxu1 %v9586_v60  ;;  %v9673_v49 = vld [vmem:[%s10118_s29 + $0x1b24] ss:$16 sps:$4 sm:$0xff]   ;;  %v9676_v60 = vld [vmem:[%s10118_s29 + $0x1b2c] ss:$16 sps:$4 sm:$0xff]  }
 0x399   : > { %6369 = vmatpush1.bf16.msra.mxu0 %v9581_v61  ;;  %6943 = vmatpush1.bf16.msra.mxu1 %v9584_v14  ;;  %v9671_v61 = vld [vmem:[%s10118_s29 + $0x1b20] ss:$16 sps:$4 sm:$0xff]   ;;  %v9674_v14 = vld [vmem:[%s10118_s29 + $0x1b28] ss:$16 sps:$4 sm:$0xff]  }
 0x39a   : > { %6370 = vmatprep.subr.bf16.mxu0 %v9589_v0  ;;  %6944 = vmatprep.subr.bf16.mxu1 %v9592_v1  ;;  %v9679_v0 = vld [vmem:[%s10118_s29 + $0x1b44] ss:$16 sps:$4 sm:$0xff]   ;;  %v9682_v1 = vld [vmem:[%s10118_s29 + $0x1b4c] ss:$16 sps:$4 sm:$0xff]  }
 0x39d   : > { %6371 = vmatpush1.bf16.msra.mxu0 %v9587_v36  ;;  %6945 = vmatpush1.bf16.msra.mxu1 %v9590_v3  ;;  %v9677_v36 = vld [vmem:[%s10118_s29 + $0x1b40] ss:$16 sps:$4 sm:$0xff]   ;;  %v9680_v3 = vld [vmem:[%s10118_s29 + $0x1b48] ss:$16 sps:$4 sm:$0xff]  }
 0x39e   : > { %6372 = vmatprep.subr.bf16.mxu0 %v9595_v4  ;;  %6946 = vmatprep.subr.bf16.mxu1 %v9598_v52  ;;  %v9685_v4 = vld [vmem:[%s10118_s29 + $0x1b64] ss:$16 sps:$4 sm:$0xff]   ;;  %v9688_v52 = vld [vmem:[%s10118_s29 + $0x1b6c] ss:$16 sps:$4 sm:$0xff]  }
 0x3a1   : > { %6373 = vmatpush1.bf16.msra.mxu0 %v9593_v5  ;;  %6947 = vmatpush1.bf16.msra.mxu1 %v9596_v6  ;;  %v9683_v5 = vld [vmem:[%s10118_s29 + $0x1b60] ss:$16 sps:$4 sm:$0xff]   ;;  %v9686_v6 = vld [vmem:[%s10118_s29 + $0x1b68] ss:$16 sps:$4 sm:$0xff]  }
 0x3a2   : > { %6374 = vmatprep.subr.bf16.mxu0 %v9601_v7  ;;  %6948 = vmatprep.subr.bf16.mxu1 %v9604_v62  ;;  %v9691_v7 = vld [vmem:[%s10118_s29 + $0x1b84] ss:$16 sps:$4 sm:$0xff]   ;;  %v9694_v62 = vld [vmem:[%s10118_s29 + $0x1b8c] ss:$16 sps:$4 sm:$0xff]  }
 0x3a5   : > { %6375 = vmatpush1.bf16.msra.mxu0 %v9599_v8  ;;  %6949 = vmatpush1.bf16.msra.mxu1 %v9602_v9  ;;  %v9689_v8 = vld [vmem:[%s10118_s29 + $0x1b80] ss:$16 sps:$4 sm:$0xff]   ;;  %v9692_v9 = vld [vmem:[%s10118_s29 + $0x1b88] ss:$16 sps:$4 sm:$0xff]  }
 0x3a6   : > { %6376 = vmatprep.subr.bf16.mxu0 %v9607_v12  ;;  %6950 = vmatprep.subr.bf16.mxu1 %v9610_v13  ;;  %v9697_v12 = vld [vmem:[%s10118_s29 + $0x1ba4] ss:$16 sps:$4 sm:$0xff]   ;;  %v9700_v13 = vld [vmem:[%s10118_s29 + $0x1bac] ss:$16 sps:$4 sm:$0xff]  }
 0x3a9   : > { %6377 = vmatpush1.bf16.msra.mxu0 %v9605_v15  ;;  %6951 = vmatpush1.bf16.msra.mxu1 %v9608_v17  ;;  %v9695_v15 = vld [vmem:[%s10118_s29 + $0x1ba0] ss:$16 sps:$4 sm:$0xff]   ;;  %v9698_v17 = vld [vmem:[%s10118_s29 + $0x1ba8] ss:$16 sps:$4 sm:$0xff]  }
 0x3aa   : > { %6378 = vmatprep.subr.bf16.mxu0 %v9613_v2  ;;  %6952 = vmatprep.subr.bf16.mxu1 %v9616_v53  ;;  %v9703_v2 = vld [vmem:[%s10118_s29 + $0x1bc4] ss:$16 sps:$4 sm:$0xff]   ;;  %v9706_v53 = vld [vmem:[%s10118_s29 + $0x1bcc] ss:$16 sps:$4 sm:$0xff]  }
 0x3ad   : > { %6379 = vmatpush1.bf16.msra.mxu0 %v9611_v18  ;;  %6953 = vmatpush1.bf16.msra.mxu1 %v9614_v19  ;;  %v9701_v18 = vld [vmem:[%s10118_s29 + $0x1bc0] ss:$16 sps:$4 sm:$0xff]   ;;  %v9704_v19 = vld [vmem:[%s10118_s29 + $0x1bc8] ss:$16 sps:$4 sm:$0xff]  }
 0x3ae   : > { %6389 = vmatprep.subr.bf16.mxu0 %v9619_v10  ;;  %6963 = vmatprep.subr.bf16.mxu1 %v9622_v20  ;;  %v9709_v10 = vld [vmem:[%s10118_s29 + $0x1be4] ss:$16 sps:$4 sm:$0xff]   ;;  %v9712_v20 = vld [vmem:[%s10118_s29 + $0x1bec] ss:$16 sps:$4 sm:$0xff]  }
 0x3b0   : > { %6381 = vmatmul.mubr.bf16.vlgmr.msra.gmra.mrb[0].mxu0 %v11119_v63  ;;  %6955 = vmatmul.mubr.bf16.vlgmr.msra.gmra.mrb[0].mxu1 %v11119_v63 }
 0x3b1   : > { %6390 = vmatpush1.bf16.msra.mxu0 %v9617_v23  ;;  %6964 = vmatpush1.bf16.msra.mxu1 %v9620_v24  ;;  %v9707_v23 = vld [vmem:[%s10118_s29 + $0x1be0] ss:$16 sps:$4 sm:$0xff]   ;;  %v9710_v24 = vld [vmem:[%s10118_s29 + $0x1be8] ss:$16 sps:$4 sm:$0xff]  }
 0x3b2   : > { %6391 = vmatprep.subr.bf16.mxu0 %v9625_v25  ;;  %6965 = vmatprep.subr.bf16.mxu1 %v9628_v27  ;;  %v1346_v25 = vcombine.high %v11119_v63, %v11119_v63  ;;  %v9878_v27 = vmov 1983009808  }
 0x3b3   : > { %6421 = vmatprep.mubr.bf16.mxu0 %v1347_v28  ;;  %6995 = vmatprep.mubr.bf16.mxu1 %v1347_v28  ;;  %v7011_v28 = vunpack.c.l.s4 %v9878_v27 }
 0x3b5   : > { %6392 = vmatpush1.bf16.msra.mxu0 %v9623_v11  ;;  %6966 = vmatpush1.bf16.msra.mxu1 %v9626_v29  ;;  %v7012_v11 = vunpack.c.0.s8 %v7011_v28 }
 0x3b6   : > { %6393 = vmatprep.subr.bf16.mxu0 %v9631_v30  ;;  %6967 = vmatprep.subr.bf16.mxu1 %v9634_v31 }
 0x3b7   : > { %v7015_v31 = vsub.s32 %v7012_v11, %v10185_v44 }
 0x3b9   : > { %6394 = vmatpush1.bf16.msra.mxu0 %v9629_v21  ;;  %6968 = vmatpush1.bf16.msra.mxu1 %v9632_v16 }
 0x3ba   : > { %6395 = vmatprep.subr.bf16.mxu0 %v9637_v32  ;;  %6969 = vmatprep.subr.bf16.mxu1 %v9640_v33 }
 0x3bd   : > { %6396 = vmatpush1.bf16.msra.mxu0 %v9635_v34  ;;  %6970 = vmatpush1.bf16.msra.mxu1 %v9638_v26 }
 0x3be   : > { %6397 = vmatprep.subr.bf16.mxu0 %v9643_v35  ;;  %6971 = vmatprep.subr.bf16.mxu1 %v9646_v37 }
 0x3c1   : > { %6398 = vmatpush1.bf16.msra.mxu0 %v9641_v38  ;;  %6972 = vmatpush1.bf16.msra.mxu1 %v9644_v40  ;;  %v272_v40 = vld [vmem:[#allocation2] sm:$0xff] }
 0x3c2   : > { %6399 = vmatprep.subr.bf16.mxu0 %v9649_v41  ;;  %6973 = vmatprep.subr.bf16.mxu1 %v9652_v22 }
 0x3c5   : > { %6400 = vmatpush1.bf16.msra.mxu0 %v9647_v42  ;;  %6974 = vmatpush1.bf16.msra.mxu1 %v9650_v43  ;;  %v7033_v42 = vld [vmem:[%s223_s6] sm:$0xf] (!%p8146_p3)  ;;  %v7037_v43 = vsub.s32 (!%p8146_p3), 0, %v10185_v44 }
 0x3c6   : > { %6401 = vmatprep.subr.bf16.mxu0 %v9655_v45  ;;  %6975 = vmatprep.subr.bf16.mxu1 %v9658_v46  ;;  %v7041_v45 = vsub.s32 (!%p8146_p3), 1, %v10185_v44  ;;  %v7045_v46 = vsub.s32 (!%p8146_p3), 2, %v10185_v44 }
 0x3c9   : > { %6402 = vmatpush1.bf16.msra.mxu0 %v9653_v47  ;;  %6976 = vmatpush1.bf16.msra.mxu1 %v9656_v48  ;;  %v7049_v47 = vsub.s32 (!%p8146_p3), 3, %v10185_v44  ;;  %v7038_v48 = vrot.slane (!%p8146_p3), %v7033_v42, %v7037_v43 }
 0x3ca   : > { %6403 = vmatprep.subr.bf16.mxu0 %v9661_v51  ;;  %6977 = vmatprep.subr.bf16.mxu1 %v9664_v54  ;;  %v7042_v51 = vrot.slane (!%p8146_p3), %v7033_v42, %v7041_v45  ;;  %v7046_v54 = vrot.slane (!%p8146_p3), %v7033_v42, %v7045_v46 }
 0x3cd   : > { %6404 = vmatpush1.bf16.msra.mxu0 %v9659_v55  ;;  %6978 = vmatpush1.bf16.msra.mxu1 %v9662_v56  ;;  %v7050_v55 = vrot.slane (!%p8146_p3), %v7033_v42, %v7049_v47  ;;  %v7051_v56 = vcombine.low (!%p8146_p3), %v7038_v48, %v7042_v51 }
 0x3ce   : > { %6405 = vmatprep.subr.bf16.mxu0 %v9667_v39  ;;  %6979 = vmatprep.subr.bf16.mxu1 %v9670_v57 }
 0x3cf   : > { %v7052_v39 = vcombine.low (!%p8146_p3), %v7046_v54, %v7050_v55  ;;  %v7059_v57 = vrot.slane (!%p8146_p3), %v7051_v56, %v7015_v31 }
 0x3d1   : > { %6406 = vmatpush1.bf16.msra.mxu0 %v9665_v58  ;;  %6980 = vmatpush1.bf16.msra.mxu1 %v9668_v59  ;;  %v7066_v58 = vrot.slane (!%p8146_p3), %v7052_v39, %v7015_v31 }
 0x3d2   : > { %6407 = vmatprep.subr.bf16.mxu0 %v9673_v49  ;;  %6981 = vmatprep.subr.bf16.mxu1 %v9676_v60 }
 0x3d3   : > { %v7067_v49 = vcombine.low (!%p8146_p3), %v7059_v57, %v7066_v58 }
 0x3d5   : > { %6408 = vmatpush1.bf16.msra.mxu0 %v9671_v61  ;;  %6982 = vmatpush1.bf16.msra.mxu1 %v9674_v14 }
 0x3d6   : > { %6409 = vmatprep.subr.bf16.mxu0 %v9679_v0  ;;  %6983 = vmatprep.subr.bf16.mxu1 %v9682_v1 }
 0x3d9   : > { %6410 = vmatpush1.bf16.msra.mxu0 %v9677_v36  ;;  %6984 = vmatpush1.bf16.msra.mxu1 %v9680_v3 }
 0x3da   : > { %6411 = vmatprep.subr.bf16.mxu0 %v9685_v4  ;;  %6985 = vmatprep.subr.bf16.mxu1 %v9688_v52 }
 0x3dd   : > { %6412 = vmatpush1.bf16.msra.mxu0 %v9683_v5  ;;  %6986 = vmatpush1.bf16.msra.mxu1 %v9686_v6 }
 0x3de   : > { %6413 = vmatprep.subr.bf16.mxu0 %v9691_v7  ;;  %6987 = vmatprep.subr.bf16.mxu1 %v9694_v62 }
 0x3e1   : > { %6414 = vmatpush1.bf16.msra.mxu0 %v9689_v8  ;;  %6988 = vmatpush1.bf16.msra.mxu1 %v9692_v9 }
 0x3e2   : > { %6415 = vmatprep.subr.bf16.mxu0 %v9697_v12  ;;  %6989 = vmatprep.subr.bf16.mxu1 %v9700_v13 }
 0x3e5   : > { %6416 = vmatpush1.bf16.msra.mxu0 %v9695_v15  ;;  %6990 = vmatpush1.bf16.msra.mxu1 %v9698_v17 }
 0x3e6   : > { %6417 = vmatprep.subr.bf16.mxu0 %v9703_v2  ;;  %6991 = vmatprep.subr.bf16.mxu1 %v9706_v53 }
 0x3e9   : > { %6418 = vmatpush1.bf16.msra.mxu0 %v9701_v18  ;;  %6992 = vmatpush1.bf16.msra.mxu1 %v9704_v19 }
 0x3ea   : > { %6419 = vmatprep.subr.bf16.mxu0 %v9709_v10  ;;  %6993 = vmatprep.subr.bf16.mxu1 %v9712_v20 }
 0x3ed   : > { %6420 = vmatpush1.bf16.msra.mxu0 %v9707_v23  ;;  %6994 = vmatpush1.bf16.msra.mxu1 %v9710_v24 }
 0x3f0   : > { %6422 = vmatmul.mubr.bf16.vlgmr.msra.gmra.mrb[0].mxu0 %v1346_v25  ;;  %6996 = vmatmul.mubr.bf16.vlgmr.msra.gmra.mrb[0].mxu1 %v1346_v25 }
 0x4c3   : > { %v6423_v29 = vpop.f32.mrb[0].mxu0  ;;  %v6997_v30 = vpop.f32.mrb[0].mxu1 }
 0x4c4   : > { %v6425_v21 = vpop.f32.mrb[1].mxu0  ;;  %v6999_v16 = vpop.f32.mrb[1].mxu1 }
 0x4c5   : > { %v7008_v32 = vcombine.low %v6423_v29, %v6425_v21  ;;  %v7009_v33 = vcombine.low %v6997_v30, %v6999_v16  ;;  %v6427_v34 = vpop.f32.mrb[2].mxu0  ;;  %v7001_v26 = vpop.f32.mrb[2].mxu1 }
 0x4c6   : > { %v6428_v35 = vpop.f32.mrb[3].mxu0  ;;  %v7002_v37 = vpop.f32.mrb[3].mxu1 }
 0x4c7   : > { %v7016_v63 = vrot.slane %v7008_v32, %v7015_v31  ;;  %v7023_v38 = vrot.slane %v7009_v33, %v7015_v31  ;;  %7031 = sbr.rel (%p8146_p3) target bundleno = 1254 (0x4e6), region = 48 }
 0x4c9   : > { %v7024_v41 = vcombine.low %v7016_v63, %v7023_v38 }
 0x4cb   : > { %v7026_v22 = vadd.f32 %v7024_v41, %v272_v40 }
 0x4cd   : > { %7027 = vst [vmem:[#allocation2] sm:$0xff] %v7026_v22 }
 0x4d4   : > { %v7032_v59 = vld [vmem:[#allocation2] sm:$0xff] }
 0x4d5   : > { %v7069_v60 = vadd.f32 %v7067_v49, %v7032_v59 }
 0x4d7   : > { %v7070_v61 = vmax.f32 %v7069_v60, 0.0 }
 0x4d9   : > { %v7072_v14 = vcombine.high %v7070_v61, %v7070_v61  ;;  %v7079_v0 = vrot.slane %v7070_v61, %v7015_v31 }
 0x4db   : > { %v7086_v1 = vrot.slane %v7072_v14, %v7015_v31  ;;  %v7087_v36 = vcombine.high %v7079_v0, %v7079_v0 }
 0x4dd   : > { %v7088_v3 = vcombine.high %v7086_v1, %v7086_v1  ;;  %v8147_v4 = vpack.c.bf16 %v7087_v36, %v7079_v0 }
 0x4df   : > { %v8148_v44 = vpack.c.bf16 %v7088_v3, %v7086_v1  ;;  %v7109_v52 = vrot.slane %v8147_v4, %v10193_v50 }
 0x4e1   : > { %v7116_v5 = vrot.slane %v8148_v44, %v10193_v50 }
 0x4e3   : > { %v7117_v6 = vcombine.low %v7109_v52, %v7116_v5 }
 0x4e5   : > { %8149 = vst.sshfl [vmem:[%s265_s12] sm:$0x55 pattern:$0x73625140] %v7117_v6 }
 0x4e6 PF: > { %s19_s22 = sadd.s32 1, %s9869_s22   ;;  %s11264_s9 = sld [smem:[#allocation9_spill]] }
 0x4e7   : > { %p16_p11 = scmp.ge.s32.totalorder %s19_s22, 16   ;;  %s11265_s12 = smov %s9833_s13 }
 0x4e8   : > { %s11266_s13 = smov %s9837_s14  ;;  %s11267_s14 = smov %s10067_s10 }
 0x4e9   : > { %s11268_s15 = smov %s9845_s16  ;;  %s11269_s16 = smov %s9849_s17 }
 0x4ea   : > { %s11270_s17 = smov %s10072_s28  ;;  %s11271_s18 = smov %s9861_s20 }
 0x4eb   : > { %s11272_s19 = smov %s9865_s21  ;;  %s11273_s20 = smov %s11276_s23 }
 0x4ec   : > { %s11274_s21 = smov %s11264_s9  ;;  %18 = sbr.rel (!%p16_p11) target bundleno = 11 (0xb), region = 96 }
 0x4f3   :  { %7147 = vsyncpa [#allocation4], 1 }
 0x4f4   :  { %7149 = vsyncpa [#allocation4 + $0x1], 1 }
 0x4f5   :  { %7150 = vsyncpa [#allocation6], 1 }
 0x4f6   :  { %7152 = vsyncpa [#allocation6 + $0x1], 1 }

</bundles_post_ra>
